<compile_context>
chip_gen: v6e
topology: v6e:2x2x1
jax: 0.10.0
libtpu: 0.0.40
codegen_flags: <defaults>
</compile_context>

<pallas_src>
import functools

import jax
import jax.numpy as jnp
from jax.experimental import pallas as pl
from jax.experimental.pallas import tpu as pltpu


def deca_kernel(xin_ref, wcf_ref, bn_b_ref, w1t_ref, w2_ref,
                out_ref, shift_ref, acc_ref, *, h, w):
    bb, hw, c2 = xin_ref.shape
    c = c2 // 2
    hid = w1t_ref.shape[0]
    n = bb * hw

    # ---- kw-shifted, vertically zero-padded conv input in VMEM -------------
    # shift_ref[b, (i+1)*W + j, :] = [x[b,i,j-1,:] | x[b,i,j,:] | x[b,i,j+1,:]]
    # (out-of-range taps are zero).  Rows [0, W) and [(H+1)W, (H+2)W) are the
    # vertical halo; they are zero-filled every step because scratch persists
    # across grid iterations.
    xf = xin_ref[...].reshape(n, c2)                              # (BB*HW, 2C)
    col = jax.lax.broadcasted_iota(jnp.int32, (n, c2), 0) % w
    # pltpu.roll matches jnp.roll: roll(x, 1)[m] = x[m-1].  Row m-1 is the
    # j-1 neighbour except at j == 0, which we mask to zero (also kills the
    # cross-row / cross-batch leakage of the flattened roll).
    left = jnp.where(col == 0, 0.0, pltpu.roll(xf, 1, axis=0))          # x[., j-1]
    right = jnp.where(col == w - 1, 0.0, pltpu.roll(xf, n - 1, axis=0))  # x[., j+1]

    zrow = jnp.zeros((bb, w, 3 * c2), jnp.float32)
    shift_ref[:, 0:w, :] = zrow                                   # top halo
    shift_ref[:, (h + 1) * w:(h + 2) * w, :] = zrow               # bottom halo
    # Interior: three lane-aligned (offsets 0/128/256) unmasked stores.
    shift_ref[:, w:(h + 1) * w, 0:c2] = left.reshape(bb, hw, c2)
    shift_ref[:, w:(h + 1) * w, c2:2 * c2] = xf.reshape(bb, hw, c2)
    shift_ref[:, w:(h + 1) * w, 2 * c2:3 * c2] = right.reshape(bb, hw, c2)

    # ---- 3x3 conv = 3 deep-K shifted matmuls (K = 3*2C), f32 VMEM acc ------
    # kh row slices start at kh*W (multiple of 8) -> sublane-aligned loads.
    for kh in range(3):
        lhs = shift_ref[:, kh * w:kh * w + hw, :].reshape(n, 3 * c2)
        part = jnp.dot(lhs, wcf_ref[kh], preferred_element_type=jnp.float32)
        if kh == 0:
            acc_ref[...] = part
        else:
            acc_ref[...] += part

    # BN (scale folded into the weights) + SiLU + per-batch spatial mean.
    y = acc_ref[...] + bn_b_ref[...]
    y = y * jax.nn.sigmoid(y)                                     # SiLU
    glob = jnp.mean(y.reshape(bb, hw, c), axis=1)                 # (BB, C)

    # ---- SE channel attention: both modalities batched, VPU-only MLP -------
    pooled = jnp.mean(xin_ref[...], axis=1)                       # (BB, 2C)
    p = jnp.concatenate([pooled[:, :c], pooled[:, c:]], axis=0)   # (2BB, C)
    wgt = jnp.zeros((2 * bb, c), jnp.float32)
    for hh in range(hid):                                         # HID tiny (e.g. 4)
        hcol = jnp.sum(p * w1t_ref[hh:hh + 1, :], axis=1, keepdims=True)
        hcol = jnp.maximum(hcol, 0.0)                             # ReLU
        wgt = wgt + hcol * w2_ref[hh:hh + 1, :]
    wgt = jax.nn.sigmoid(wgt)                                     # (2BB, C)
    w_vi = wgt[:bb, :]                                            # fc(pool(x0))
    w_ir = wgt[bb:, :]                                            # fc(pool(x1))

    # ---- fused lane-dense gating: [x0*sig(w_ir*g) | x1*sig(w_vi*g)] --------
    gate = jax.nn.sigmoid(jnp.concatenate([w_ir * glob, w_vi * glob], axis=1))
    out_ref[...] = (xin_ref[...] * gate[:, None, :]).astype(out_ref.dtype)


def deca_forward(x0_nchw, x1_nchw, wc, bn_scale, bn_bias, w1, w2, *,
                 batch_block=None):
    b, c, h, w = x0_nchw.shape
    c2 = 2 * c
    hw = h * w
    hid = w1.shape[1]

    # Wrapper glue: NCHW -> NHWC, channel concat, flatten spatial so the
    # kernel sees one lane-dense (B, HW, 2C) activation (no padding needed).
    xcat = jnp.concatenate(
        [jnp.transpose(x0_nchw, (0, 2, 3, 1)),
         jnp.transpose(x1_nchw, (0, 2, 3, 1))], axis=-1).astype(jnp.float32)
    xin = xcat.reshape(b, hw, c2)

    # Fold BN scale into the conv weights; (kh, kw, Cin, Cout) -> (kh, kw*2C, C)
    # so the kw-concatenated shift buffer contracts against it directly.
    wcf = (wc.astype(jnp.float32) *
           bn_scale.reshape(1, 1, 1, c).astype(jnp.float32)).reshape(3, 3 * c2, c)
    bn_b = bn_bias.reshape(1, c).astype(jnp.float32)
    w1t = jnp.transpose(w1).astype(jnp.float32)                   # (HID, C)
    w2f = w2.astype(jnp.float32)                                  # (HID, C)

    # ---- VMEM-derived batch blocking + explicit vmem limit -----------------
    try:
        vmem_cap = int(pltpu.get_tpu_info().vmem_capacity_bytes)
    except Exception:
        vmem_cap = 64 * 1024 * 1024
    per_b = 4 * (2 * hw * c2           # double-buffered input block
                 + 2 * hw * c2         # double-buffered output block
                 + (h + 2) * w * 3 * c2  # kw-shift scratch
                 + hw * c)             # conv accumulator scratch
    fixed = 2 * 4 * (3 * 3 * c2 * c + c + 2 * hid * c)  # (2x-buffered) weights

    if batch_block is None:
        budget = int(vmem_cap * 0.6)
        cap = max(1, (budget - fixed) // per_b)
        # Prefer >= 2 grid steps when B allows: shards across v7x's two
        # TensorCores and lets 1-TC chips overlap DMA with compute.
        batch_block = min(b, cap, max(1, -(-b // 2)))
        while b % batch_block != 0:
            batch_block -= 1
    assert b % batch_block == 0
    nb = b // batch_block

    vmem_need = fixed + batch_block * per_b
    vmem_limit = int(min(vmem_cap, max(2 * vmem_need, 32 * 1024 * 1024)))

    def rep_spec(shape):
        nd = len(shape)
        return pl.BlockSpec(shape, lambda i, _nd=nd: (0,) * _nd)

    kernel = functools.partial(deca_kernel, h=h, w=w)

    out = pl.pallas_call(
        kernel,
        out_shape=jax.ShapeDtypeStruct((b, hw, c2), jnp.float32),
        grid_spec=pltpu.PrefetchScalarGridSpec(
            num_scalar_prefetch=0,
            grid=(nb,),
            in_specs=[
                pl.BlockSpec((batch_block, hw, c2), lambda i: (i, 0, 0)),
                rep_spec(wcf.shape),
                rep_spec(bn_b.shape),
                rep_spec(w1t.shape),
                rep_spec(w2f.shape),
            ],
            out_specs=pl.BlockSpec((batch_block, hw, c2), lambda i: (i, 0, 0)),
            scratch_shapes=[
                pltpu.VMEM((batch_block, (h + 2) * w, 3 * c2), jnp.float32),
                pltpu.VMEM((batch_block * hw, c), jnp.float32),
            ],
        ),
        compiler_params=pltpu.CompilerParams(
            dimension_semantics=("parallel",),
            vmem_limit_bytes=vmem_limit),
    )(xin, wcf, bn_b, w1t, w2f)

    # Fused (b, H*W, 2C) lane-dense output -> two NCHW tensors.
    out_nchw = jnp.transpose(out.reshape(b, h, w, c2), (0, 3, 1, 2))
    return out_nchw[:, :c], out_nchw[:, c:]


def deca_reference(x0, x1, wc, bn_scale, bn_bias, w1, w2):
    """Pure-JAX reference mirroring the PyTorch forward (NCHW)."""
    b, c, h, w = x0.shape

    def se(x):
        p = jnp.mean(x, axis=(2, 3))                 # (b, c)
        hdd = jax.nn.relu(p @ w1)
        return jax.nn.sigmoid(hdd @ w2)              # (b, c)

    w_vi = se(x0)[:, :, None, None]
    w_ir = se(x1)[:, :, None, None]

    xcat = jnp.concatenate([x0, x1], axis=1)
    w_oihw = jnp.transpose(wc, (3, 2, 0, 1))         # (C, 2C, 3, 3)
    y = jax.lax.conv_general_dilated(
        xcat, w_oihw, window_strides=(1, 1), padding=((1, 1), (1, 1)),
        dimension_numbers=("NCHW", "OIHW", "NCHW"))
    y = y * bn_scale.reshape(1, c, 1, 1) + bn_bias.reshape(1, c, 1, 1)
    y = y * jax.nn.sigmoid(y)                        # SiLU
    glob = jnp.mean(y, axis=(2, 3), keepdims=True)
    out_vi = x0 * jax.nn.sigmoid(w_ir * glob)
    out_ir = x1 * jax.nn.sigmoid(w_vi * glob)
    return out_vi, out_ir


if __name__ == "__main__":
    # Small shapes consistent with the module: channel=64, reduction=16,
    # kernel_size=80 (default) so min(h, w)=16 < 80 -> spatial-mean branch.
    B, C, H, W = 2, 64, 16, 16
    REDUCTION = 16
    HID = C // REDUCTION

    key = jax.random.PRNGKey(0)
    k = jax.random.split(key, 8)

    x0 = jax.random.normal(k[0], (B, C, H, W), jnp.float32)
    x1 = jax.random.normal(k[1], (B, C, H, W), jnp.float32)

    # fc weights stored transposed so x @ W matches nn.Linear:
    # Linear(C, HID, bias=False), Linear(HID, C, bias=False)
    w1 = jax.random.normal(k[2], (C, HID), jnp.float32) * 0.1
    w2 = jax.random.normal(k[3], (HID, C), jnp.float32) * 0.1

    # compress Conv2d(2C, C, 3, pad=1, bias=False) weights, laid out (kh, kw, Cin, Cout)
    wc = jax.random.normal(k[4], (3, 3, 2 * C, C), jnp.float32) * 0.05

    # BatchNorm2d(C) in eval mode with running_mean=0, running_var=1 (fresh init),
    # deterministic gamma/beta; folded into scale/bias.
    eps = 1e-5
    gamma = 1.0 + 0.1 * jax.random.normal(k[5], (C,), jnp.float32)
    beta = 0.1 * jax.random.normal(k[6], (C,), jnp.float32)
    bn_scale = (gamma / jnp.sqrt(1.0 + eps)).reshape(1, C)
    bn_bias = beta.reshape(1, C)

    out_vi, out_ir = deca_forward(x0, x1, wc, bn_scale, bn_bias, w1, w2)
    jax.block_until_ready((out_vi, out_ir))

    ref_vi, ref_ir = deca_reference(x0, x1, wc, bn_scale, bn_bias, w1, w2)
    assert jnp.allclose(out_vi, ref_vi, rtol=1e-4, atol=1e-4), "vi mismatch"
    assert jnp.allclose(out_ir, ref_ir, rtol=1e-4, atol=1e-4), "ir mismatch"

    print("KERNEL_OK")
</pallas_src>

<mosaic_0001>
module attributes {stable_mosaic.version = 11 : i64} {
  func.func @deca_kernel(%arg0: i32, %arg1: memref<1x256x128xf32, #tpu.memory_space<vmem>>, %arg2: memref<3x384x64xf32, #tpu.memory_space<vmem>>, %arg3: memref<1x64xf32, #tpu.memory_space<vmem>>, %arg4: memref<4x64xf32, #tpu.memory_space<vmem>>, %arg5: memref<4x64xf32, #tpu.memory_space<vmem>>, %arg6: memref<1x256x128xf32, #tpu.memory_space<vmem>>, %arg7: memref<1x288x384xf32, #tpu.memory_space<vmem>>, %arg8: memref<256x64xf32, #tpu.memory_space<vmem>>) attributes {dimension_semantics = [#tpu.dimension_semantics<parallel>], iteration_bounds = array<i64: 2>, scalar_prefetch = 0 : i64, scratch_operands = 2 : i64, tpu.core_type = #tpu.core_type<tc>, window_params = [{transform_indices = @transform_0, window_bounds = array<i64: 1, 256, 128>}, {pipeline_mode = #tpu.pipeline_mode<synchronous>, transform_indices = @transform_1, window_bounds = array<i64: 3, 384, 64>}, {pipeline_mode = #tpu.pipeline_mode<synchronous>, transform_indices = @transform_2, window_bounds = array<i64: 1, 64>}, {pipeline_mode = #tpu.pipeline_mode<synchronous>, transform_indices = @transform_3, window_bounds = array<i64: 4, 64>}, {pipeline_mode = #tpu.pipeline_mode<synchronous>, transform_indices = @transform_4, window_bounds = array<i64: 4, 64>}, {transform_indices = @transform_5, window_bounds = array<i64: 1, 256, 128>}]} {
    %c0 = arith.constant 0 : index
    %c0_0 = arith.constant 0 : index
    %c0_1 = arith.constant 0 : index
    %0 = vector.load %arg1[%c0, %c0_0, %c0_1] : memref<1x256x128xf32, #tpu.memory_space<vmem>>, vector<1x256x128xf32>
    %1 = vector.shape_cast %0 : vector<1x256x128xf32> to vector<256x128xf32>
    %2 = tpu.iota {dimensions = array<i32: 0>} : vector<256x128xi32>
    %c16_i32 = arith.constant 16 : i32
    %c0_i32 = arith.constant 0 : i32
    %3 = arith.cmpi eq, %c16_i32, %c0_i32 : i32
    %c1_i32 = arith.constant 1 : i32
    %4 = arith.select %3, %c1_i32, %c16_i32 : i32
    %5 = vector.broadcast %4 : i32 to vector<256x128xi32>
    %6 = arith.remsi %2, %5 : vector<256x128xi32>
    %c0_i32_2 = arith.constant 0 : i32
    %7 = vector.broadcast %c0_i32_2 : i32 to vector<256x128xi32>
    %8 = arith.cmpi ne, %6, %7 : vector<256x128xi32>
    %c0_i32_3 = arith.constant 0 : i32
    %9 = vector.broadcast %c0_i32_3 : i32 to vector<256x128xi32>
    %10 = arith.cmpi slt, %6, %9 : vector<256x128xi32>
    %c0_i32_4 = arith.constant 0 : i32
    %11 = arith.cmpi slt, %4, %c0_i32_4 : i32
    %12 = vector.broadcast %11 : i1 to vector<256x128xi1>
    %13 = vector.broadcast %12 : vector<256x128xi1> to vector<256x128xi1>
    %14 = arith.xori %10, %13 : vector<256x128xi1>
    %15 = arith.andi %14, %8 : vector<256x128xi1>
    %16 = vector.broadcast %4 : i32 to vector<256x128xi32>
    %17 = arith.addi %6, %16 : vector<256x128xi32>
    %18 = arith.select %15, %17, %6 : vector<256x128xi1>, vector<256x128xi32>
    %c0_i32_5 = arith.constant 0 : i32
    %19 = vector.broadcast %c0_i32_5 : i32 to vector<256x128xi32>
    %20 = arith.cmpi eq, %18, %19 : vector<256x128xi32>
    %c1_i32_6 = arith.constant 1 : i32
    %21 = tpu.dynamic_rotate %1 by %c1_i32_6 dim 0 : vector<256x128xf32>, i32 -> vector<256x128xf32>
    %cst = arith.constant 0.000000e+00 : f32
    %22 = vector.broadcast %cst : f32 to vector<256x128xf32>
    %23 = arith.select %20, %22, %21 : vector<256x128xi1>, vector<256x128xf32>
    %c15_i32 = arith.constant 15 : i32
    %24 = vector.broadcast %c15_i32 : i32 to vector<256x128xi32>
    %25 = arith.cmpi eq, %18, %24 : vector<256x128xi32>
    %c255_i32 = arith.constant 255 : i32
    %26 = tpu.dynamic_rotate %1 by %c255_i32 dim 0 : vector<256x128xf32>, i32 -> vector<256x128xf32>
    %cst_7 = arith.constant 0.000000e+00 : f32
    %27 = vector.broadcast %cst_7 : f32 to vector<256x128xf32>
    %28 = arith.select %25, %27, %26 : vector<256x128xi1>, vector<256x128xf32>
    %cst_8 = arith.constant 0.000000e+00 : f32
    %29 = vector.broadcast %cst_8 : f32 to vector<1x16x384xf32>
    %c0_9 = arith.constant 0 : index
    %c0_10 = arith.constant 0 : index
    %c0_11 = arith.constant 0 : index
    %30 = vector.load %arg7[%c0_9, %c0_10, %c0_11] : memref<1x288x384xf32, #tpu.memory_space<vmem>>, vector<1x16x384xf32>
    tpu.vector_store %arg7[%c0_9, %c0_10, %c0_11], %29 {strides = array<i32>} : memref<1x288x384xf32, #tpu.memory_space<vmem>>, vector<1x16x384xf32>,
    %c0_12 = arith.constant 0 : index
    %c272 = arith.constant 272 : index
    %c0_13 = arith.constant 0 : index
    %31 = vector.load %arg7[%c0_12, %c272, %c0_13] : memref<1x288x384xf32, #tpu.memory_space<vmem>>, vector<1x16x384xf32>
    tpu.vector_store %arg7[%c0_12, %c272, %c0_13], %29 {strides = array<i32>} : memref<1x288x384xf32, #tpu.memory_space<vmem>>, vector<1x16x384xf32>,
    %32 = vector.shape_cast %23 : vector<256x128xf32> to vector<1x256x128xf32>
    %c0_14 = arith.constant 0 : index
    %c16 = arith.constant 16 : index
    %c0_15 = arith.constant 0 : index
    %33 = vector.load %arg7[%c0_14, %c16, %c0_15] : memref<1x288x384xf32, #tpu.memory_space<vmem>>, vector<1x256x128xf32>
    tpu.vector_store %arg7[%c0_14, %c16, %c0_15], %32 {strides = array<i32>} : memref<1x288x384xf32, #tpu.memory_space<vmem>>, vector<1x256x128xf32>,
    %34 = vector.shape_cast %1 : vector<256x128xf32> to vector<1x256x128xf32>
    %c0_16 = arith.constant 0 : index
    %c16_17 = arith.constant 16 : index
    %c128 = arith.constant 128 : index
    %35 = vector.load %arg7[%c0_16, %c16_17, %c128] : memref<1x288x384xf32, #tpu.memory_space<vmem>>, vector<1x256x128xf32>
    tpu.vector_store %arg7[%c0_16, %c16_17, %c128], %34 {strides = array<i32>} : memref<1x288x384xf32, #tpu.memory_space<vmem>>, vector<1x256x128xf32>,
    %36 = vector.shape_cast %28 : vector<256x128xf32> to vector<1x256x128xf32>
    %c0_18 = arith.constant 0 : index
    %c16_19 = arith.constant 16 : index
    %c256 = arith.constant 256 : index
    %37 = vector.load %arg7[%c0_18, %c16_19, %c256] : memref<1x288x384xf32, #tpu.memory_space<vmem>>, vector<1x256x128xf32>
    tpu.vector_store %arg7[%c0_18, %c16_19, %c256], %36 {strides = array<i32>} : memref<1x288x384xf32, #tpu.memory_space<vmem>>, vector<1x256x128xf32>,
    %c0_20 = arith.constant 0 : index
    %c0_21 = arith.constant 0 : index
    %c0_22 = arith.constant 0 : index
    %38 = vector.load %arg7[%c0_20, %c0_21, %c0_22] : memref<1x288x384xf32, #tpu.memory_space<vmem>>, vector<1x256x384xf32>
    %39 = vector.shape_cast %38 : vector<1x256x384xf32> to vector<256x384xf32>
    %c0_23 = arith.constant 0 : index
    %c0_24 = arith.constant 0 : index
    %c0_25 = arith.constant 0 : index
    %40 = vector.load %arg2[%c0_23, %c0_24, %c0_25] : memref<3x384x64xf32, #tpu.memory_space<vmem>>, vector<1x384x64xf32>
    %41 = vector.shape_cast %40 : vector<1x384x64xf32> to vector<384x64xf32>
    %cst_26 = arith.constant dense<0.000000e+00> : vector<256x64xf32>
    %42 = tpu.matmul %39, %41, %cst_26 {dimension_numbers = #tpu.dot_dimension_numbers<[1], [0], [0], [1], [0, 0, 1, 1], [], []>} : vector<256x384xf32>, vector<384x64xf32>, vector<256x64xf32> -> vector<256x64xf32>
    %c0_27 = arith.constant 0 : index
    %c0_28 = arith.constant 0 : index
    %43 = vector.load %arg8[%c0_27, %c0_28] : memref<256x64xf32, #tpu.memory_space<vmem>>, vector<256x64xf32>
    tpu.vector_store %arg8[%c0_27, %c0_28], %42 {strides = array<i32>} : memref<256x64xf32, #tpu.memory_space<vmem>>, vector<256x64xf32>,
    %c0_29 = arith.constant 0 : index
    %c16_30 = arith.constant 16 : index
    %c0_31 = arith.constant 0 : index
    %44 = vector.load %arg7[%c0_29, %c16_30, %c0_31] : memref<1x288x384xf32, #tpu.memory_space<vmem>>, vector<1x256x384xf32>
    %45 = vector.shape_cast %44 : vector<1x256x384xf32> to vector<256x384xf32>
    %c1 = arith.constant 1 : index
    %c0_32 = arith.constant 0 : index
    %c0_33 = arith.constant 0 : index
    %46 = vector.load %arg2[%c1, %c0_32, %c0_33] : memref<3x384x64xf32, #tpu.memory_space<vmem>>, vector<1x384x64xf32>
    %47 = vector.shape_cast %46 : vector<1x384x64xf32> to vector<384x64xf32>
    %cst_34 = arith.constant dense<0.000000e+00> : vector<256x64xf32>
    %48 = tpu.matmul %45, %47, %cst_34 {dimension_numbers = #tpu.dot_dimension_numbers<[1], [0], [0], [1], [0, 0, 1, 1], [], []>} : vector<256x384xf32>, vector<384x64xf32>, vector<256x64xf32> -> vector<256x64xf32>
    %c0_35 = arith.constant 0 : index
    %c0_36 = arith.constant 0 : index
    %49 = vector.load %arg8[%c0_35, %c0_36] : memref<256x64xf32, #tpu.memory_space<vmem>>, vector<256x64xf32>
    %50 = arith.addf %49, %48 : vector<256x64xf32>
    %c0_37 = arith.constant 0 : index
    %c0_38 = arith.constant 0 : index
    %51 = vector.load %arg8[%c0_37, %c0_38] : memref<256x64xf32, #tpu.memory_space<vmem>>, vector<256x64xf32>
    tpu.vector_store %arg8[%c0_37, %c0_38], %50 {strides = array<i32>} : memref<256x64xf32, #tpu.memory_space<vmem>>, vector<256x64xf32>,
    %c0_39 = arith.constant 0 : index
    %c32 = arith.constant 32 : index
    %c0_40 = arith.constant 0 : index
    %52 = vector.load %arg7[%c0_39, %c32, %c0_40] : memref<1x288x384xf32, #tpu.memory_space<vmem>>, vector<1x256x384xf32>
    %53 = vector.shape_cast %52 : vector<1x256x384xf32> to vector<256x384xf32>
    %c2 = arith.constant 2 : index
    %c0_41 = arith.constant 0 : index
    %c0_42 = arith.constant 0 : index
    %54 = vector.load %arg2[%c2, %c0_41, %c0_42] : memref<3x384x64xf32, #tpu.memory_space<vmem>>, vector<1x384x64xf32>
    %55 = vector.shape_cast %54 : vector<1x384x64xf32> to vector<384x64xf32>
    %cst_43 = arith.constant dense<0.000000e+00> : vector<256x64xf32>
    %56 = tpu.matmul %53, %55, %cst_43 {dimension_numbers = #tpu.dot_dimension_numbers<[1], [0], [0], [1], [0, 0, 1, 1], [], []>} : vector<256x384xf32>, vector<384x64xf32>, vector<256x64xf32> -> vector<256x64xf32>
    %c0_44 = arith.constant 0 : index
    %c0_45 = arith.constant 0 : index
    %57 = vector.load %arg8[%c0_44, %c0_45] : memref<256x64xf32, #tpu.memory_space<vmem>>, vector<256x64xf32>
    %58 = arith.addf %57, %56 : vector<256x64xf32>
    %c0_46 = arith.constant 0 : index
    %c0_47 = arith.constant 0 : index
    %59 = vector.load %arg8[%c0_46, %c0_47] : memref<256x64xf32, #tpu.memory_space<vmem>>, vector<256x64xf32>
    tpu.vector_store %arg8[%c0_46, %c0_47], %58 {strides = array<i32>} : memref<256x64xf32, #tpu.memory_space<vmem>>, vector<256x64xf32>,
    %c0_48 = arith.constant 0 : index
    %c0_49 = arith.constant 0 : index
    %60 = vector.load %arg8[%c0_48, %c0_49] : memref<256x64xf32, #tpu.memory_space<vmem>>, vector<256x64xf32>
    %c0_50 = arith.constant 0 : index
    %c0_51 = arith.constant 0 : index
    %61 = vector.load %arg3[%c0_50, %c0_51] : memref<1x64xf32, #tpu.memory_space<vmem>>, vector<1x64xf32>
    %62 = vector.broadcast %61 : vector<1x64xf32> to vector<256x64xf32>
    %63 = arith.addf %60, %62 : vector<256x64xf32>
    %64 = arith.negf %63 : vector<256x64xf32>
    %65 = math.exp %64 : vector<256x64xf32>
    %cst_52 = arith.constant 1.000000e+00 : f32
    %66 = vector.broadcast %cst_52 : f32 to vector<256x64xf32>
    %67 = arith.addf %66, %65 : vector<256x64xf32>
    %68 = arith.divf %66, %67 : vector<256x64xf32>
    %69 = arith.mulf %63, %68 : vector<256x64xf32>
    %70 = vector.shape_cast %69 : vector<256x64xf32> to vector<1x256x64xf32>
    %cst_53 = arith.constant dense<0.000000e+00> : vector<1x64xf32>
    %71 = vector.multi_reduction <add>, %70, %cst_53 [1] : vector<1x256x64xf32> to vector<1x64xf32>
    %cst_54 = arith.constant 2.560000e+02 : f32
    %72 = vector.broadcast %cst_54 : f32 to vector<1x64xf32>
    %73 = arith.divf %71, %72 : vector<1x64xf32>
    %c0_55 = arith.constant 0 : index
    %c0_56 = arith.constant 0 : index
    %c0_57 = arith.constant 0 : index
    %74 = vector.load %arg1[%c0_55, %c0_56, %c0_57] : memref<1x256x128xf32, #tpu.memory_space<vmem>>, vector<1x256x128xf32>
    %cst_58 = arith.constant dense<0.000000e+00> : vector<1x128xf32>
    %75 = vector.multi_reduction <add>, %74, %cst_58 [1] : vector<1x256x128xf32> to vector<1x128xf32>
    %cst_59 = arith.constant 2.560000e+02 : f32
    %76 = vector.broadcast %cst_59 : f32 to vector<1x128xf32>
    %77 = arith.divf %75, %76 : vector<1x128xf32>
    %78 = vector.extract_strided_slice %77 {offsets = [0, 0], sizes = [1, 64], strides = [1, 1]} : vector<1x128xf32> to vector<1x64xf32>
    %79 = vector.extract_strided_slice %77 {offsets = [0, 64], sizes = [1, 64], strides = [1, 1]} : vector<1x128xf32> to vector<1x64xf32>
    %80 = tpu.concatenate %78, %79 in 0 : vector<1x64xf32>, vector<1x64xf32> -> vector<2x64xf32>
    %cst_60 = arith.constant 0.000000e+00 : f32
    %81 = vector.broadcast %cst_60 : f32 to vector<2x64xf32>
    %c0_61 = arith.constant 0 : index
    %c0_62 = arith.constant 0 : index
    %82 = vector.load %arg4[%c0_61, %c0_62] : memref<4x64xf32, #tpu.memory_space<vmem>>, vector<1x64xf32>
    %83 = vector.broadcast %82 : vector<1x64xf32> to vector<2x64xf32>
    %84 = arith.mulf %80, %83 : vector<2x64xf32>
    %cst_63 = arith.constant dense<0.000000e+00> : vector<2xf32>
    %85 = vector.multi_reduction <add>, %84, %cst_63 [1] : vector<2x64xf32> to vector<2xf32>
    %86 = vector.shape_cast %85 : vector<2xf32> to vector<2x1xf32>
    %cst_64 = arith.constant 0.000000e+00 : f32
    %87 = vector.broadcast %cst_64 : f32 to vector<2x1xf32>
    %88 = arith.maximumf %86, %87 : vector<2x1xf32>
    %c0_65 = arith.constant 0 : index
    %c0_66 = arith.constant 0 : index
    %89 = vector.load %arg5[%c0_65, %c0_66] : memref<4x64xf32, #tpu.memory_space<vmem>>, vector<1x64xf32>
    %90 = vector.broadcast %88 : vector<2x1xf32> to vector<2x64xf32>
    %91 = vector.broadcast %89 : vector<1x64xf32> to vector<2x64xf32>
    %92 = arith.mulf %90, %91 : vector<2x64xf32>
    %93 = arith.addf %81, %92 : vector<2x64xf32>
    %c1_67 = arith.constant 1 : index
    %c0_68 = arith.constant 0 : index
    %94 = vector.load %arg4[%c1_67, %c0_68] : memref<4x64xf32, #tpu.memory_space<vmem>>, vector<1x64xf32>
    %95 = vector.broadcast %94 : vector<1x64xf32> to vector<2x64xf32>
    %96 = arith.mulf %80, %95 : vector<2x64xf32>
    %cst_69 = arith.constant dense<0.000000e+00> : vector<2xf32>
    %97 = vector.multi_reduction <add>, %96, %cst_69 [1] : vector<2x64xf32> to vector<2xf32>
    %98 = vector.shape_cast %97 : vector<2xf32> to vector<2x1xf32>
    %cst_70 = arith.constant 0.000000e+00 : f32
    %99 = vector.broadcast %cst_70 : f32 to vector<2x1xf32>
    %100 = arith.maximumf %98, %99 : vector<2x1xf32>
    %c1_71 = arith.constant 1 : index
    %c0_72 = arith.constant 0 : index
    %101 = vector.load %arg5[%c1_71, %c0_72] : memref<4x64xf32, #tpu.memory_space<vmem>>, vector<1x64xf32>
    %102 = vector.broadcast %100 : vector<2x1xf32> to vector<2x64xf32>
    %103 = vector.broadcast %101 : vector<1x64xf32> to vector<2x64xf32>
    %104 = arith.mulf %102, %103 : vector<2x64xf32>
    %105 = arith.addf %93, %104 : vector<2x64xf32>
    %c2_73 = arith.constant 2 : index
    %c0_74 = arith.constant 0 : index
    %106 = vector.load %arg4[%c2_73, %c0_74] : memref<4x64xf32, #tpu.memory_space<vmem>>, vector<1x64xf32>
    %107 = vector.broadcast %106 : vector<1x64xf32> to vector<2x64xf32>
    %108 = arith.mulf %80, %107 : vector<2x64xf32>
    %cst_75 = arith.constant dense<0.000000e+00> : vector<2xf32>
    %109 = vector.multi_reduction <add>, %108, %cst_75 [1] : vector<2x64xf32> to vector<2xf32>
    %110 = vector.shape_cast %109 : vector<2xf32> to vector<2x1xf32>
    %cst_76 = arith.constant 0.000000e+00 : f32
    %111 = vector.broadcast %cst_76 : f32 to vector<2x1xf32>
    %112 = arith.maximumf %110, %111 : vector<2x1xf32>
    %c2_77 = arith.constant 2 : index
    %c0_78 = arith.constant 0 : index
    %113 = vector.load %arg5[%c2_77, %c0_78] : memref<4x64xf32, #tpu.memory_space<vmem>>, vector<1x64xf32>
    %114 = vector.broadcast %112 : vector<2x1xf32> to vector<2x64xf32>
    %115 = vector.broadcast %113 : vector<1x64xf32> to vector<2x64xf32>
    %116 = arith.mulf %114, %115 : vector<2x64xf32>
    %117 = arith.addf %105, %116 : vector<2x64xf32>
    %c3 = arith.constant 3 : index
    %c0_79 = arith.constant 0 : index
    %118 = vector.load %arg4[%c3, %c0_79] : memref<4x64xf32, #tpu.memory_space<vmem>>, vector<1x64xf32>
    %119 = vector.broadcast %118 : vector<1x64xf32> to vector<2x64xf32>
    %120 = arith.mulf %80, %119 : vector<2x64xf32>
    %cst_80 = arith.constant dense<0.000000e+00> : vector<2xf32>
    %121 = vector.multi_reduction <add>, %120, %cst_80 [1] : vector<2x64xf32> to vector<2xf32>
    %122 = vector.shape_cast %121 : vector<2xf32> to vector<2x1xf32>
    %cst_81 = arith.constant 0.000000e+00 : f32
    %123 = vector.broadcast %cst_81 : f32 to vector<2x1xf32>
    %124 = arith.maximumf %122, %123 : vector<2x1xf32>
    %c3_82 = arith.constant 3 : index
    %c0_83 = arith.constant 0 : index
    %125 = vector.load %arg5[%c3_82, %c0_83] : memref<4x64xf32, #tpu.memory_space<vmem>>, vector<1x64xf32>
    %126 = vector.broadcast %124 : vector<2x1xf32> to vector<2x64xf32>
    %127 = vector.broadcast %125 : vector<1x64xf32> to vector<2x64xf32>
    %128 = arith.mulf %126, %127 : vector<2x64xf32>
    %129 = arith.addf %117, %128 : vector<2x64xf32>
    %130 = arith.negf %129 : vector<2x64xf32>
    %131 = math.exp %130 : vector<2x64xf32>
    %cst_84 = arith.constant 1.000000e+00 : f32
    %132 = vector.broadcast %cst_84 : f32 to vector<2x64xf32>
    %133 = arith.addf %132, %131 : vector<2x64xf32>
    %134 = arith.divf %132, %133 : vector<2x64xf32>
    %135 = vector.extract_strided_slice %134 {offsets = [0, 0], sizes = [1, 64], strides = [1, 1]} : vector<2x64xf32> to vector<1x64xf32>
    %136 = vector.extract_strided_slice %134 {offsets = [1, 0], sizes = [1, 64], strides = [1, 1]} : vector<2x64xf32> to vector<1x64xf32>
    %137 = arith.mulf %136, %73 : vector<1x64xf32>
    %138 = arith.mulf %135, %73 : vector<1x64xf32>
    %139 = tpu.concatenate %137, %138 in 1 : vector<1x64xf32>, vector<1x64xf32> -> vector<1x128xf32>
    %140 = arith.negf %139 : vector<1x128xf32>
    %141 = math.exp %140 : vector<1x128xf32>
    %cst_85 = arith.constant 1.000000e+00 : f32
    %142 = vector.broadcast %cst_85 : f32 to vector<1x128xf32>
    %143 = arith.addf %142, %141 : vector<1x128xf32>
    %144 = arith.divf %142, %143 : vector<1x128xf32>
    %c0_86 = arith.constant 0 : index
    %c0_87 = arith.constant 0 : index
    %c0_88 = arith.constant 0 : index
    %145 = vector.load %arg1[%c0_86, %c0_87, %c0_88] : memref<1x256x128xf32, #tpu.memory_space<vmem>>, vector<1x256x128xf32>
    %146 = vector.shape_cast %144 : vector<1x128xf32> to vector<1x1x128xf32>
    %147 = vector.broadcast %146 : vector<1x1x128xf32> to vector<1x256x128xf32>
    %148 = arith.mulf %145, %147 : vector<1x256x128xf32>
    %c0_89 = arith.constant 0 : index
    %c0_90 = arith.constant 0 : index
    %c0_91 = arith.constant 0 : index
    %149 = vector.load %arg6[%c0_89, %c0_90, %c0_91] : memref<1x256x128xf32, #tpu.memory_space<vmem>>, vector<1x256x128xf32>
    tpu.vector_store %arg6[%c0_89, %c0_90, %c0_91], %148 {strides = array<i32>} : memref<1x256x128xf32, #tpu.memory_space<vmem>>, vector<1x256x128xf32>,
    return
  }
  func.func @transform_0(%arg0: i32) -> (i32, i32, i32) {
    %c0_i32 = arith.constant 0 : i32
    %c0_i32_0 = arith.constant 0 : i32
    %c0_i32_1 = arith.constant 0 : i32
    return %arg0, %c0_i32, %c0_i32_0 : i32, i32, i32
  }
  func.func @transform_1(%arg0: i32) -> (i32, i32, i32) {
    %c0_i32 = arith.constant 0 : i32
    %c0_i32_0 = arith.constant 0 : i32
    %c0_i32_1 = arith.constant 0 : i32
    %c0_i32_2 = arith.constant 0 : i32
    return %c0_i32, %c0_i32_0, %c0_i32_1 : i32, i32, i32
  }
  func.func @transform_2(%arg0: i32) -> (i32, i32) {
    %c0_i32 = arith.constant 0 : i32
    %c0_i32_0 = arith.constant 0 : i32
    %c0_i32_1 = arith.constant 0 : i32
    return %c0_i32, %c0_i32_0 : i32, i32
  }
  func.func @transform_3(%arg0: i32) -> (i32, i32) {
    %c0_i32 = arith.constant 0 : i32
    %c0_i32_0 = arith.constant 0 : i32
    %c0_i32_1 = arith.constant 0 : i32
    return %c0_i32, %c0_i32_0 : i32, i32
  }
  func.func @transform_4(%arg0: i32) -> (i32, i32) {
    %c0_i32 = arith.constant 0 : i32
    %c0_i32_0 = arith.constant 0 : i32
    %c0_i32_1 = arith.constant 0 : i32
    return %c0_i32, %c0_i32_0 : i32, i32
  }
  func.func @transform_5(%arg0: i32) -> (i32, i32, i32) {
    %c0_i32 = arith.constant 0 : i32
    %c0_i32_0 = arith.constant 0 : i32
    %c0_i32_1 = arith.constant 0 : i32
    return %arg0, %c0_i32, %c0_i32_0 : i32, i32, i32
  }
}

</mosaic_0001>

<bundles_post_ra>
// kernel: tpu_custom_call.1
= control target key start
LH: loop header
LB: loop body
LE: loop exit
PB: predicated region body
PF: predicated region fallthrough
CT: control target
= control target key end

     0   :  { %10 = vsyncpa [#allocation5], 0  ;;  %s7371_s0 = inlined_call_operand.vmem [shape: f32[2,256,128], index: 0, kind: input, shape index: {}]   ;;  %s7372_s1 = inlined_call_operand.vmem [shape: f32[3,384,64], index: 1, kind: input, shape index: {}]   ;;  %s7373_s2 = inlined_call_operand.vmem [shape: f32[1,64], index: 2, kind: input, shape index: {}]   ;;  %s7374_s3 = inlined_call_operand.vmem [shape: f32[4,64], index: 3, kind: input, shape index: {}]   ;;  %s7375_s4 = inlined_call_operand.vmem [shape: f32[4,64], index: 4, kind: input, shape index: {}]   ;;  %s7376_s5 = inlined_call_operand.hbm [shape: f32[2,256,128], index: 5, kind: output, shape index: {}]  }
   0x1   :  { %12 = vsyncpa [#allocation5 + $0x1], 0  ;;  %s4812_s18 = smov 0   ;;  %s4814_s19 = smov 0  }
   0x2   :  { %s4816_s20 = smov 0   ;;  %s4818_s21 = smov 0  }
   0x3 LB: > { %s4833_s22 = sadd.s32 4294967295, %s4775_s21   ;;  %s3721_s23 = sadd.s32 4294967294, %s4775_s21   ;;  %s4775_s21 = sphi %s4818_s21, %s7813_s21   ;;  %s4771_s20 = sphi %s4816_s20, %s7812_s20   ;;  %s4767_s19 = sphi %s4814_s19, %s7811_s19   ;;  %s4763_s18 = sphi %s4812_s18, %s7810_s18  }
   0x4   : > { %s4837_s24 = sadd.s32 1, %s4775_s21   ;;  %s135_s25 = sadd.s32 1, %s4771_s20 }
   0x5   : > { %s132_s26 = ssub.s32 %s4775_s21, %s4837_s24  ;;  %p145_p0 = scmp.ne.s32.totalorder %s4771_s20, %s4767_s19 }
   0x6   : > { %p133_p1 = scmp.eq.s32.totalorder %s132_s26, 0  ;;  %p146_p2 = scmp.eq.s32.totalorder %s4833_s22, 1 }
   0x7   : > { %p151_p3 = scmp.ne.s32.totalorder %s4767_s19, %s4763_s18  ;;  %p152_p4 = scmp.eq.s32.totalorder %s3721_s23, 1 }
   0x8   : > { %s4848_s27 = scalar_select %p133_p1, %s4771_s20, %s135_s25  }
   0x9   : > { %p4850_p5 = por %p146_p2, %p145_p0  ;;  %p4854_p6 = por %p152_p4, %p151_p3 }
   0xa   : > { %p3724_p7 = scmp.ge.s32.totalorder %s4775_s21, 1  ;;  %p190_p8 = scmp.lt.s32.totalorder %s4775_s21, 3 }
   0xc   : > { %p191_p9 = pnand %p3724_p7, %p190_p8 }
   0xe   : > { %194 = sbr.rel (%p191_p9) target bundleno = 822 (0x336), region = 40 }
  0x13   : > { %v1181_v0 = vld [vmem:[%s7372_s1 + $0x178] sm:$0xff]  ;;  %v1180_v2 = vld [vmem:[%s7372_s1 + $0x170] sm:$0xff]  ;;  %v255_v3 = vlaneseq  ;;  %v7386_v4 = vmov 0.0   ;;  %v1179_v6 = vld [vmem:[%s7372_s1 + $0x168] sm:$0xff]  ;;  %p218_p10 = scmp.lt.s32.totalorder %s4833_s22, 1  ;;  %s215_s25 = sand.u32 1, %s4767_s19  }
  0x14   : > { %v1149_v1 = vld [vmem:[%s7372_s1 + $0x78] sm:$0xff]  ;;  %1182 = vmatprep.subr.mxu0 %v7386_v4  ;;  %4202 = vmatprep.subr.mxu1 %v1181_v0  ;;  %v1148_v5 = vld [vmem:[%s7372_s1 + $0x70] sm:$0xff]  ;;  %v1147_v8 = vld [vmem:[%s7372_s1 + $0x68] sm:$0xff]  ;;  %s3725_s26 = sshll.u32 %s215_s25, 8  ;;  %s3873_s30 = sshll.u32 %s4833_s22, 12 }
  0x15   : > { %1183 = vmatpush1.msra.mxu0 %v1149_v1  ;;  %4203 = vmatpush3.msra.mxu1 %v1181_v0  ;;  %v4876_v7 = vshrl.u32 %v255_v3, 7  ;;  %v1178_v9 = vld [vmem:[%s7372_s1 + $0x160] sm:$0xff]  ;;  %v1177_v15 = vld [vmem:[%s7372_s1 + $0x158] sm:$0xff]  ;;  %v1176_v22 = vld [vmem:[%s7372_s1 + $0x150] sm:$0xff]  ;;  %s219_s13 = scalar_select %p218_p10, %s4833_s22, 1  ;;  %v7547_v0 = vmov 0 }
  0x16   : > { %1184 = vmatprep.subr.mxu0 %v7386_v4  ;;  %4204 = vmatprep.subr.mxu1 %v1180_v2  ;;  %v1146_v11 = vld [vmem:[%s7372_s1 + $0x60] sm:$0xff]  ;;  %v1145_v18 = vld [vmem:[%s7372_s1 + $0x58] sm:$0xff]  ;;  %v1144_v24 = vld [vmem:[%s7372_s1 + $0x50] sm:$0xff]  ;;  %s7303_s9 = scalar_lea.hbm %s7376_s5, %s3873_s30  ;;  %s7331_s22 = scalar_lea.sflag [#allocation5], %s215_s25 }
  0x17   : > { %1185 = vmatpush1.msra.mxu0 %v1148_v5  ;;  %4205 = vmatpush3.msra.mxu1 %v1180_v2  ;;  %v4886_v10 = vadd.s32 8, %v4876_v7  ;;  %v4893_v12 = vadd.s32 24, %v4876_v7  ;;  %v4896_v13 = vadd.s32 40, %v4876_v7  ;;  %v4899_v14 = vadd.s32 56, %v4876_v7  ;;  %v1175_v26 = vld [vmem:[%s7372_s1 + $0x148] sm:$0xff]  ;;  %v1174_v29 = vld [vmem:[%s7372_s1 + $0x140] sm:$0xff] }
  0x18   : > { %1186 = vmatprep.subr.mxu0 %v7386_v4  ;;  %4206 = vmatprep.subr.mxu1 %v1179_v6  ;;  %v4906_v17 = vadd.s32 72, %v4876_v7  ;;  %v4915_v21 = vadd.s32 88, %v4876_v7  ;;  %v1143_v27 = vld [vmem:[%s7372_s1 + $0x48] sm:$0xff]  ;;  %v4938_v30 = vadd.s32 104, %v4876_v7  ;;  %v4941_v31 = vadd.s32 120, %v4876_v7  ;;  %v1142_v32 = vld [vmem:[%s7372_s1 + $0x40] sm:$0xff] }
  0x19   : > { %1187 = vmatpush1.msra.mxu0 %v1147_v8  ;;  %4207 = vmatpush3.msra.mxu1 %v1179_v6  ;;  %v299_v16 = vand.u32 15, %v4886_v10  ;;  %v313_v19 = vand.u32 15, %v4893_v12  ;;  %v327_v20 = vand.u32 15, %v4896_v13  ;;  %v341_v23 = vand.u32 15, %v4899_v14  ;;  %v1173_v33 = vld [vmem:[%s7372_s1 + $0x138] sm:$0xff]  ;;  %v1172_v37 = vld [vmem:[%s7372_s1 + $0x130] sm:$0xff] }
  0x1a   : > { %1188 = vmatprep.subr.mxu0 %v7386_v4  ;;  %4208 = vmatprep.subr.mxu1 %v1178_v9  ;;  %v355_v25 = vand.u32 15, %v4906_v17  ;;  %v369_v28 = vand.u32 15, %v4915_v21  ;;  %v1141_v36 = vld [vmem:[%s7372_s1 + $0x38] sm:$0xff]  ;;  %v1140_v38 = vld [vmem:[%s7372_s1 + $0x30] sm:$0xff]  ;;  %v1171_v39 = vld [vmem:[%s7372_s1 + $0x128] sm:$0xff]  ;;  %v4971_v40 = vadd.s32 136, %v4876_v7 }
  0x1b   : > { %1189 = vmatpush1.msra.mxu0 %v1146_v11  ;;  %4209 = vmatpush3.msra.mxu1 %v1178_v9  ;;  %v1139_v42 = vld [vmem:[%s7372_s1 + $0x28] sm:$0xff]  ;;  %v1170_v43 = vld [vmem:[%s7372_s1 + $0x120] sm:$0xff]  ;;  %s3872_s6 = sshll.u32 %s219_s13, 8  ;;  %v1169_v46 = vld [vmem:[%s7372_s1 + $0x118] sm:$0xff]  ;;  %v5002_v49 = vadd.s32 152, %v4876_v7  ;;  %v5013_v53 = vadd.s32 168, %v4876_v7 }
  0x1c   : > { %1190 = vmatprep.subr.mxu0 %v7386_v4  ;;  %4210 = vmatprep.subr.mxu1 %v1177_v15  ;;  %v1138_v45 = vld [vmem:[%s7372_s1 + $0x20] sm:$0xff]  ;;  %v1137_v47 = vld [vmem:[%s7372_s1 + $0x18] sm:$0xff]  ;;  %v1168_v48 = vld [vmem:[%s7372_s1 + $0x110] sm:$0xff]  ;;  %s4999_s15 = scalar_lea.vmem %s7371_s0, %s3872_s6  ;;  %v5026_v57 = vadd.s32 16, %v4876_v7  ;;  %vm7460_vm0 = vcmp.lt.s32.totalorder %v4876_v7, 7  ;;  %v5071_v11 = vadd.s32 184, %v4876_v7 }
  0x1d   : > { %1191 = vmatpush1.msra.mxu0 %v1145_v18  ;;  %4211 = vmatpush3.msra.mxu1 %v1177_v15  ;;  %v1136_v50 = vld [vmem:[%s7372_s1 + $0x10] sm:$0xff]  ;;  %v1167_v51 = vld [vmem:[%s7372_s1 + $0x108] sm:$0xff]  ;;  %v5020_v55 = vld [vmem:[%s4999_s15] sm:$0xff]  ;;  %vm5085_vm1 = vcmp.ne.s32.totalorder %v299_v16, 15  ;;  %vm5138_vm2 = vcmp.ne.s32.totalorder %v313_v19, 15  ;;  %vm5192_vm3 = vcmp.ne.s32.totalorder %v327_v20, 15 }
  0x1e   : > { %1192 = vmatprep.subr.mxu0 %v7386_v4  ;;  %4212 = vmatprep.subr.mxu1 %v1176_v22  ;;  %v1135_v54 = vld [vmem:[%s7372_s1 + $0x8] sm:$0xff]  ;;  %v1166_v58 = vld [vmem:[%s7372_s1 + $0x100] sm:$0xff]  ;;  %v5036_v60 = vld [vmem:[%s4999_s15 + $0x10] sm:$0xff]  ;;  %v7377_v61 = vrot.slane %v5020_v55, 1  ;;  %vm5243_vm4 = vcmp.ne.s32.totalorder %v341_v23, 15  ;;  %vm5293_vm5 = vcmp.ne.s32.totalorder %v355_v25, 15 }
  0x1f   : > { %1193 = vmatpush1.msra.mxu0 %v1144_v24  ;;  %4213 = vmatpush3.msra.mxu1 %v1176_v22  ;;  %v5023_v56 = vld [vmem:[%s4999_s15 + $0x8] sm:$0xff]  ;;  %v1134_v59 = vld [vmem:[%s7372_s1] sm:$0xff]  ;;  %v1165_v1 = vld [vmem:[%s7372_s1 + $0xf8] sm:$0xff]  ;;  %v835_v3 = vrot.slane %v5036_v60, 1  ;;  %v7527_v24 = vmov 0  ;;  %v7548_v0 = vsel %vm5293_vm5, 4294967295, %v7547_v0 }
  0x20   : > { %1194 = vmatprep.subr.mxu0 %v7386_v4  ;;  %4214 = vmatprep.subr.mxu1 %v1175_v26  ;;  %v834_v62 = vrot.slane %v5023_v56, 1  ;;  %v3743_v2 = vld [vmem:[%s7372_s1 + $0x1f8] sm:$0xff]  ;;  %v1164_v6 = vld [vmem:[%s7372_s1 + $0xf0] sm:$0xff]  ;;  %v5068_v9 = vld [vmem:[%s4999_s15 + $0x20] sm:$0xff]  ;;  %v7528_v24 = vsel %vm5085_vm1, 4294967295, %v7527_v24  ;;  %7549 = vst [vmem:[#allocation21_spill] sm:$0xff] %v7548_v0 }
  0x21   : > { %1195 = vmatpush1.msra.mxu0 %v1143_v27  ;;  %4215 = vmatpush3.msra.mxu1 %v1175_v26  ;;  %v5052_v5 = vld [vmem:[%s4999_s15 + $0x18] sm:$0xff]  ;;  %v3742_v15 = vld [vmem:[%s7372_s1 + $0x1f0] sm:$0xff]  ;;  %7529 = vst [vmem:[#allocation9_spill] sm:$0xff] %v7528_v24  ;;  %v5091_v27 = vadd.s32 200, %v4876_v7  ;;  %v3741_v10 = vld [vmem:[%s7372_s1 + $0x1e8] sm:$0xff]  ;;  %v837_v16 = vrot.slane %v5068_v9, 1 }
  0x22   : > { %1196 = vmatprep.subr.mxu0 %v7386_v4  ;;  %4216 = vmatprep.subr.mxu1 %v1174_v29  ;;  %v5065_v8 = vsel %vm7460_vm0, %v7377_v61, %v834_v62  ;;  %v836_v18 = vrot.slane %v5052_v5, 1  ;;  %v5081_v22 = vsel %vm7460_vm0, %v834_v62, %v835_v3  ;;  %v3739_v12 = vld [vmem:[%s7372_s1 + $0x1d8] sm:$0xff]  ;;  %v5206_v20 = vld [vmem:[%s4999_s15 + $0x48] sm:$0xff]  ;;  %v3736_v61 = vld [vmem:[%s7372_s1 + $0x1c0] sm:$0xff]  ;;  %v5337_v34 = vadd.s32 176, %v4876_v7  ;;  %s4778_s13 = smov 64  }
  0x23   : > { %1197 = vmatpush1.msra.mxu0 %v1142_v32  ;;  %4217 = vmatpush3.msra.mxu1 %v1174_v29  ;;  %7525 = vst [vmem:[#allocation7_spill] sm:$0xff] %v5065_v8  ;;  %7526 = vst [vmem:[#allocation8_spill] sm:$0xff] %v5081_v22  ;;  %v1163_v29 = vld [vmem:[%s7372_s1 + $0xe8] sm:$0xff]  ;;  %v5259_v23 = vld [vmem:[%s4999_s15 + $0x58] sm:$0xff]  ;;  %vm5347_vm6 = vcmp.ne.s32.totalorder %v369_v28, 15  ;;  %v5361_v28 = vadd.s32 192, %v4876_v7 }
  0x24   : > { %1198 = vmatprep.subr.mxu0 %v7386_v4  ;;  %4218 = vmatprep.subr.mxu1 %v1173_v33  ;;  %v5102_v32 = vld [vmem:[%s4999_s15 + $0x28] sm:$0xff]  ;;  %v844_v26 = vrot.slane %v5259_v23, 1  ;;  %v1154_v52 = vld [vmem:[%s7372_s1 + $0xa0] sm:$0xff]  ;;  %v5329_v44 = vld [vmem:[%s4999_s15 + $0x70] sm:$0xff]  ;;  %vm736_vm10 = vcmp.lt.s32.totalorder %v4876_v7, 1  ;;  %s4779_s10 = smov [#allocation4]  }
  0x25   : > { %1199 = vmatpush1.msra.mxu0 %v1141_v36  ;;  %4219 = vmatpush3.msra.mxu1 %v1173_v33  ;;  %v1162_v36 = vld [vmem:[%s7372_s1 + $0xe0] sm:$0xff]  ;;  %v3733_v17 = vld [vmem:[%s7372_s1 + $0x1a8] sm:$0xff]  ;;  %v1152_v21 = vld [vmem:[%s7372_s1 + $0x90] sm:$0xff]  ;;  %s4719_s11 = sshll.u32 %s4779_s10, 4  ;;  %s4720_s11 = int_to_ptr.vmem [resolvable:$false] %s4719_s11 }
  0x26   : > { %1200 = vmatprep.subr.mxu0 %v7386_v4  ;;  %4220 = vmatprep.subr.mxu1 %v1172_v37  ;;  %v5310_v63 = vld [vmem:[%s4999_s15 + $0x68] sm:$0xff]  ;;  %v5382_v0 = vld [vmem:[%s4999_s15 + $0x80] sm:$0xff]  ;;  %s4721_s12 = scalar_lea.vmem %s4720_s11, 8192 }
  0x27   : > { %1201 = vmatpush1.msra.mxu0 %v1140_v38  ;;  %4221 = vmatpush3.msra.mxu1 %v1172_v37  ;;  %v5115_v37 = vsel %vm7460_vm0, %v835_v3, %v836_v18  ;;  %v5118_v38 = vld [vmem:[%s4999_s15 + $0x30] sm:$0xff]  ;;  %v5175_v3 = vadd.s32 48, %v4876_v7  ;;  %v846_v35 = vrot.slane %v5310_v63, 1  ;;  %v5555_v24 = vld [vmem:[%s4999_s15 + $0xc0] sm:$0xff] }
  0x28   : > { %1202 = vmatprep.subr.mxu0 %v7386_v4  ;;  %4222 = vmatprep.subr.mxu1 %v1171_v39  ;;  %7530 = vst [vmem:[#allocation10_spill] sm:$0xff] %v5115_v37  ;;  %v839_v19 = vrot.slane %v5118_v38, 1 }
  0x29   : > { %1203 = vmatpush1.msra.mxu0 %v1139_v42  ;;  %4223 = vmatpush3.msra.mxu1 %v1171_v39  ;;  %v5121_v39 = vadd.s32 32, %v4876_v7  ;;  %v5124_v42 = vadd.s32 216, %v4876_v7 }
  0x2a   : > { %1204 = vmatprep.subr.mxu0 %v7386_v4  ;;  %4224 = vmatprep.subr.mxu1 %v1170_v43 }
  0x2b   : > { %1205 = vmatpush1.msra.mxu0 %v1138_v45  ;;  %4225 = vmatpush3.msra.mxu1 %v1170_v43  ;;  %v3740_v43 = vld [vmem:[%s7372_s1 + $0x1e0] sm:$0xff]  ;;  %v838_v45 = vrot.slane %v5102_v32, 1 }
  0x2c   : > { %1206 = vmatprep.subr.mxu0 %v7386_v4  ;;  %4226 = vmatprep.subr.mxu1 %v1169_v46 }
  0x2d   : > { %1207 = vmatpush1.msra.mxu0 %v1137_v47  ;;  %4227 = vmatpush3.msra.mxu1 %v1169_v46  ;;  %v5134_v46 = vsel %vm7460_vm0, %v836_v18, %v837_v16  ;;  %v7532_v47 = vmov 0  ;;  %v5168_v62 = vsel %vm7460_vm0, %v837_v16, %v838_v45  ;;  %v5182_v18 = vadd.s32 64, %v4876_v7  ;;  %v1157_v16 = vld [vmem:[%s7372_s1 + $0xb8] sm:$0xff] }
  0x2e   : > { %1208 = vmatprep.subr.mxu0 %v7386_v4  ;;  %4228 = vmatprep.subr.mxu1 %v1168_v48  ;;  %7531 = vst [vmem:[#allocation11_spill] sm:$0xff] %v5134_v46  ;;  %v7533_v47 = vsel %vm5138_vm2, 4294967295, %v7532_v47  ;;  %7535 = vst [vmem:[#allocation13_spill] sm:$0xff] %v5168_v62 }
  0x2f   : > { %1209 = vmatpush1.msra.mxu0 %v1136_v50  ;;  %4229 = vmatpush3.msra.mxu1 %v1168_v48  ;;  %7534 = vst [vmem:[#allocation12_spill] sm:$0xff] %v7533_v47  ;;  %v1156_v48 = vld [vmem:[%s7372_s1 + $0xb0] sm:$0xff]  ;;  %v5276_v50 = vld [vmem:[%s4999_s15 + $0x60] sm:$0xff] }
  0x30   : > { %1210 = vmatprep.subr.mxu0 %v7386_v4  ;;  %4230 = vmatprep.subr.mxu1 %v1167_v51  ;;  %v845_v25 = vrot.slane %v5276_v50, 1 }
  0x31   : > { %1211 = vmatpush1.msra.mxu0 %v1135_v54  ;;  %4231 = vmatpush3.msra.mxu1 %v1167_v51  ;;  %v1161_v51 = vld [vmem:[%s7372_s1 + $0xd8] sm:$0xff] }
  0x32   : > { %1212 = vmatprep.subr.mxu0 %v7386_v4  ;;  %4232 = vmatprep.subr.mxu1 %v1166_v58  ;;  %v5153_v54 = vld [vmem:[%s4999_s15 + $0x38] sm:$0xff] }
  0x33   : > { %1213 = vmatpush1.msra.mxu0 %v1134_v59  ;;  %4233 = vmatpush3.msra.mxu1 %v1166_v58  ;;  %v5156_v58 = vadd.s32 232, %v4876_v7  ;;  %v1160_v59 = vld [vmem:[%s7372_s1 + $0xd0] sm:$0xff] }
  0x34   : > { %4234 = vmatprep.mubr.f32.mxu1 %v7386_v4  ;;  %1214 = vmatprep.subr.mxu0 %v7386_v4 }
  0x35   : > { %4235 = vmatmul.mubr.f32.vlgmr.msra.gmra.mxu1 %v7386_v4  ;;  %1810 = vmatprep.subr.mxu1 %v7386_v4 }
  0x36   : > { %1215 = vmatpush2.msra.mxu0 %v1165_v1  ;;  %1811 = vmatpush1.msra.mxu1 %v3743_v2  ;;  %v5171_v1 = vld [vmem:[%s4999_s15 + $0x40] sm:$0xff]  ;;  %v5233_v2 = vadd.s32 96, %v4876_v7 }
  0x37   : > { %1216 = vmatprep.subr.mxu0 %v7386_v4  ;;  %1812 = vmatprep.subr.mxu1 %v7386_v4  ;;  %v841_v13 = vrot.slane %v5171_v1, 1 }
  0x38   : > { %1217 = vmatpush2.msra.mxu0 %v1164_v6  ;;  %4237 = vmatprep.mubr.f32.mxu1 %v5065_v8  ;;  %v3738_v6 = vld [vmem:[%s7372_s1 + $0x1d0] sm:$0xff] }
  0x39   : > { %1813 = vmatpush1.msra.mxu1 %v3742_v15  ;;  %1218 = vmatprep.subr.mxu0 %v7386_v4  ;;  %v840_v15 = vrot.slane %v5153_v54, 1  ;;  %v5598_v8 = vld [vmem:[%s4999_s15 + $0xd0] sm:$0xff] }
  0x3a   : > { %4238 = vmatmul.mubr.msk.f32.gmra.mxu1 %vm5085_vm1, %v5081_v22  ;;  %1814 = vmatprep.subr.mxu1 %v7386_v4  ;;  %v7590_v22 = vmov 0  ;;  %7593 = vst [vmem:[#allocation43_spill] sm:$0xff] %v5598_v8 }
  0x3b   : > { %1219 = vmatpush2.msra.mxu0 %v1163_v29  ;;  %1815 = vmatpush1.msra.mxu1 %v3741_v10  ;;  %v5188_v29 = vsel %vm7460_vm0, %v838_v45, %v839_v19  ;;  %v7537_v10 = vmov 0  ;;  %v842_v45 = vrot.slane %v5206_v20, 1 }
  0x3c   : > { %1220 = vmatprep.subr.mxu0 %v7386_v4  ;;  %1816 = vmatprep.subr.mxu1 %v7386_v4  ;;  %7536 = vst [vmem:[#allocation14_spill] sm:$0xff] %v5188_v29  ;;  %v7538_v10 = vsel %vm5192_vm3, 4294967295, %v7537_v10 }
  0x3d   : > { %1221 = vmatpush2.msra.mxu0 %v1162_v36  ;;  %4240 = vmatprep.mubr.f32.mxu1 %v5115_v37  ;;  %7539 = vst [vmem:[#allocation15_spill] sm:$0xff] %v7538_v10  ;;  %v1159_v36 = vld [vmem:[%s7372_s1 + $0xc8] sm:$0xff]  ;;  %v5273_v33 = vsel %vm7460_vm0, %v841_v13, %v842_v45  ;;  %v7584_v37 = vmov 0 }
  0x3e   : > { %1817 = vmatpush1.msra.mxu1 %v3740_v43  ;;  %1222 = vmatprep.subr.mxu0 %v7386_v4  ;;  %v3737_v43 = vld [vmem:[%s7372_s1 + $0x1c8] sm:$0xff]  ;;  %7545 = vst [vmem:[#allocation19_spill] sm:$0xff] %v5273_v33 }
  0x3f   : > { %4241 = vmatmul.mubr.msk.f32.gmra.mxu1 %vm5138_vm2, %v5134_v46  ;;  %1818 = vmatprep.subr.mxu1 %v7386_v4  ;;  %v3790_v46 = vld [vmem:[%s7372_s1 + $0x370] sm:$0xff] }
  0x40   : > { %1223 = vmatpush2.msra.mxu0 %v1161_v51  ;;  %1819 = vmatpush1.msra.mxu1 %v3739_v12  ;;  %v5211_v51 = vadd.s32 80, %v4876_v7  ;;  %v1158_v12 = vld [vmem:[%s7372_s1 + $0xc0] sm:$0xff] }
  0x41   : > { %1224 = vmatprep.subr.mxu0 %v7386_v4  ;;  %1820 = vmatprep.subr.mxu1 %v7386_v4 }
  0x42   : > { %1225 = vmatpush2.msra.mxu0 %v1160_v59  ;;  %4243 = vmatprep.mubr.f32.mxu1 %v5168_v62  ;;  %v5222_v59 = vsel %vm7460_vm0, %v839_v19, %v840_v15  ;;  %v5239_v19 = vsel %vm7460_vm0, %v840_v15, %v841_v13  ;;  %v3735_v15 = vld [vmem:[%s7372_s1 + $0x1b8] sm:$0xff]  ;;  %v7574_v62 = vmov 0 }
  0x43   : > { %1821 = vmatpush1.msra.mxu1 %v3738_v6  ;;  %1226 = vmatprep.subr.mxu0 %v7386_v4  ;;  %7540 = vst [vmem:[#allocation16_spill] sm:$0xff] %v5222_v59  ;;  %v5225_v6 = vld [vmem:[%s4999_s15 + $0x50] sm:$0xff]  ;;  %7541 = vst [vmem:[#allocation17_spill] sm:$0xff] %v5239_v19 }
  0x44   : > { %4244 = vmatmul.mubr.msk.f32.gmra.mxu1 %vm5192_vm3, %v5188_v29  ;;  %1822 = vmatprep.subr.mxu1 %v7386_v4  ;;  %v843_v14 = vrot.slane %v5225_v6, 1  ;;  %v7573_v29 = vand.u32 15, %v4971_v40 }
  0x45   : > { %1227 = vmatpush2.msra.mxu0 %v1159_v36  ;;  %1823 = vmatpush1.msra.mxu1 %v3737_v43  ;;  %v7542_v36 = vmov 0  ;;  %v5248_v43 = vadd.s32 112, %v4876_v7 }
  0x46   : > { %1228 = vmatprep.subr.mxu0 %v7386_v4  ;;  %1824 = vmatprep.subr.mxu1 %v7386_v4  ;;  %v7543_v36 = vsel %vm5243_vm4, 4294967295, %v7542_v36  ;;  %v5289_v13 = vsel %vm7460_vm0, %v842_v45, %v843_v14  ;;  %v1155_v45 = vld [vmem:[%s7372_s1 + $0xa8] sm:$0xff]  ;;  %v5326_v41 = vsel %vm7460_vm0, %v843_v14, %v844_v26  ;;  %v5343_v14 = vsel %vm7460_vm0, %v844_v26, %v845_v25 }
  0x47   : > { %7544 = vst [vmem:[#allocation18_spill] sm:$0xff] %v7543_v36  ;;  %1229 = vmatpush2.msra.mxu0 %v1158_v12  ;;  %4246 = vmatprep.mubr.f32.mxu1 %v5222_v59  ;;  %v3734_v12 = vld [vmem:[%s7372_s1 + $0x1b0] sm:$0xff]  ;;  %7546 = vst [vmem:[#allocation20_spill] sm:$0xff] %v5289_v13  ;;  %v847_v26 = vrot.slane %v5329_v44, 1  ;;  %v3728_v36 = vld [vmem:[%s7372_s1 + $0x180] sm:$0xff]  ;;  %vm5494_vm9 = vcmp.ne.s32.totalorder %v7573_v29, 15 }
  0x48   : > { %1825 = vmatpush1.msra.mxu1 %v3736_v61  ;;  %1230 = vmatprep.subr.mxu0 %v7386_v4  ;;  %v5279_v61 = vadd.s32 128, %v4876_v7  ;;  %7550 = vst [vmem:[#allocation22_spill] sm:$0xff] %v5326_v41  ;;  %7551 = vst [vmem:[#allocation23_spill] sm:$0xff] %v5343_v14  ;;  %v5454_v59 = vld [vmem:[%s4999_s15 + $0xf8] sm:$0xff]  ;;  %v7575_v62 = vsel %vm5494_vm9, 4294967295, %v7574_v62 }
  0x49   : > { %4247 = vmatmul.mubr.msk.f32.gmra.mxu1 %vm5243_vm4, %v5239_v19  ;;  %1826 = vmatprep.subr.mxu1 %v7386_v4  ;;  %v5427_v19 = vld [vmem:[%s4999_s15 + $0x90] sm:$0xff]  ;;  %7570 = vst [vmem:[#allocation33_spill] sm:$0xff] %v5454_v59  ;;  %7576 = vst [vmem:[#allocation36_spill] sm:$0xff] %v7575_v62  ;;  %v705_v62 = vrot.slane %v5023_v56, 7 }
  0x4a   : > { %1231 = vmatpush2.msra.mxu0 %v1157_v16  ;;  %1827 = vmatpush1.msra.mxu1 %v3735_v15  ;;  %v5299_v15 = vadd.s32 144, %v4876_v7  ;;  %v5313_v16 = vadd.s32 160, %v4876_v7 }
  0x4b   : > { %1232 = vmatprep.subr.mxu0 %v7386_v4  ;;  %1828 = vmatprep.subr.mxu1 %v7386_v4 }
  0x4c   : > { %1233 = vmatpush2.msra.mxu0 %v1156_v48  ;;  %4249 = vmatprep.mubr.f32.mxu1 %v5273_v33  ;;  %v3732_v48 = vld [vmem:[%s7372_s1 + $0x1a0] sm:$0xff]  ;;  %v849_v33 = vrot.slane %v5382_v0, 1 }
  0x4d   : > { %1829 = vmatpush1.msra.mxu1 %v3734_v12  ;;  %1234 = vmatprep.subr.mxu0 %v7386_v4  ;;  %v3731_v12 = vld [vmem:[%s7372_s1 + $0x198] sm:$0xff] }
  0x4e   : > { %4250 = vmatmul.mubr.msk.f32.gmra.mxu1 %vm5293_vm5, %v5289_v13  ;;  %1830 = vmatprep.subr.mxu1 %v7386_v4  ;;  %v5403_v13 = vld [vmem:[%s4999_s15 + $0x88] sm:$0xff] }
  0x4f   : > { %1235 = vmatpush2.msra.mxu0 %v1155_v45  ;;  %1831 = vmatpush1.msra.mxu1 %v3733_v17  ;;  %v7552_v45 = vmov 0  ;;  %v1153_v17 = vld [vmem:[%s7372_s1 + $0x98] sm:$0xff] }
  0x50   : > { %1236 = vmatprep.subr.mxu0 %v7386_v4  ;;  %1832 = vmatprep.subr.mxu1 %v7386_v4  ;;  %v7553_v45 = vsel %vm5347_vm6, 4294967295, %v7552_v45 }
  0x51   : > { %7554 = vst [vmem:[#allocation24_spill] sm:$0xff] %v7553_v45  ;;  %1237 = vmatpush2.msra.mxu0 %v1154_v52  ;;  %4252 = vmatprep.mubr.f32.mxu1 %v5326_v41  ;;  %v5365_v52 = vld [vmem:[%s4999_s15 + $0x78] sm:$0xff]  ;;  %v5368_v41 = vadd.s32 208, %v4876_v7  ;;  %v3730_v45 = vld [vmem:[%s7372_s1 + $0x190] sm:$0xff] }
  0x52   : > { %1833 = vmatpush1.msra.mxu1 %v3732_v48  ;;  %1238 = vmatprep.subr.mxu0 %v7386_v4  ;;  %v5379_v48 = vsel %vm7460_vm0, %v845_v25, %v846_v35  ;;  %v7561_v25 = vmov 0.0  }
  0x53   : > { %7555 = vst [vmem:[#allocation25_spill] sm:$0xff] %v5368_v41  ;;  %4253 = vmatmul.mubr.msk.f32.gmra.mxu1 %vm5347_vm6, %v5343_v14  ;;  %1834 = vmatprep.subr.mxu1 %v7386_v4  ;;  %7556 = vst [vmem:[#allocation26_spill] sm:$0xff] %v5379_v48  ;;  %v7557_v4 = vand.u32 15, %v4938_v30  ;;  %v7558_v14 = vmov 0  ;;  %v1151_v30 = vld [vmem:[%s7372_s1 + $0x88] sm:$0xff]  ;;  %v5645_v41 = vld [vmem:[%s4999_s15 + $0xe0] sm:$0xff] }
  0x54   : > { %1239 = vmatpush2.msra.mxu0 %v1153_v17  ;;  %1835 = vmatpush1.msra.mxu1 %v3731_v12  ;;  %v5399_v17 = vsel %vm7460_vm0, %v846_v35, %v847_v26  ;;  %v848_v12 = vrot.slane %v5365_v52, 1  ;;  %v3729_v35 = vld [vmem:[%s7372_s1 + $0x188] sm:$0xff]  ;;  %7604 = vst [vmem:[#allocation48_spill] sm:$0xff] %v5645_v41 }
  0x55   : > { %vm5390_vm7 = vcmp.ne.s32.totalorder %v7557_v4, 15  ;;  %1240 = vmatprep.subr.mxu0 %v7561_v25  ;;  %1836 = vmatprep.subr.mxu1 %v7561_v25  ;;  %7562 = vst [vmem:[#allocation28_spill] sm:$0xff] %v5399_v17  ;;  %v5406_v4 = vadd.s32 224, %v4876_v7 }
  0x56   : > { %v7559_v14 = vsel %vm5390_vm7, 4294967295, %v7558_v14  ;;  %1241 = vmatpush2.msra.mxu0 %v1152_v21  ;;  %4255 = vmatprep.mubr.f32.mxu1 %v5379_v48  ;;  %v1150_v21 = vld [vmem:[%s7372_s1 + $0x80] sm:$0xff]  ;;  %v850_v48 = vrot.slane %v5403_v13, 1 }
  0x57   : > { %7560 = vst [vmem:[#allocation27_spill] sm:$0xff] %v7559_v14  ;;  %7563 = vst [vmem:[#allocation29_spill] sm:$0xff] %v5406_v4  ;;  %1837 = vmatpush1.msra.mxu1 %v3730_v45  ;;  %1242 = vmatprep.subr.mxu0 %v7561_v25  ;;  %v5431_v45 = vsel %vm7460_vm0, %v847_v26, %v848_v12  ;;  %v5440_v14 = vsel %vm7460_vm0, %v848_v12, %v849_v33  ;;  %v5449_v26 = vld [vmem:[%s4999_s15 + $0x98] sm:$0xff] }
  0x58   : > { %4256 = vmatmul.mubr.msk.f32.gmra.mxu1 %vm5390_vm7, %v5399_v17  ;;  %1838 = vmatprep.subr.mxu1 %v7561_v25  ;;  %7564 = vst [vmem:[#allocation30_spill] sm:$0xff] %v5431_v45  ;;  %7565 = vst [vmem:[#allocation31_spill] sm:$0xff] %v5440_v14  ;;  %v851_v17 = vrot.slane %v5427_v19, 1  ;;  %v5462_v12 = vsel %vm7460_vm0, %v849_v33, %v850_v48  ;;  %v3758_v33 = vld [vmem:[%s7372_s1 + $0x270] sm:$0xff]  ;;  %v5625_v4 = vld [vmem:[%s4999_s15 + $0xd8] sm:$0xff] }
  0x59   : > { %1243 = vmatpush2.msra.mxu0 %v1151_v30  ;;  %1839 = vmatpush1.msra.mxu1 %v3729_v35  ;;  %v7566_v30 = vand.u32 15, %v4941_v31  ;;  %v7567_v35 = vmov 0  ;;  %v3759_v31 = vld [vmem:[%s7372_s1 + $0x278] sm:$0xff]  ;;  %7571 = vst [vmem:[#allocation34_spill] sm:$0xff] %v5462_v12  ;;  %7598 = vst [vmem:[#allocation45_spill] sm:$0xff] %v5625_v4 }
  0x5a   : > { %1244 = vmatprep.subr.mxu0 %v7561_v25  ;;  %1840 = vmatprep.subr.mxu1 %v7561_v25  ;;  %v5490_v10 = vsel %vm7460_vm0, %v850_v48, %v851_v17  ;;  %v3756_v48 = vld [vmem:[%s7372_s1 + $0x260] sm:$0xff] }
  0x5b   : > { %vm5444_vm8 = vcmp.ne.s32.totalorder %v7566_v30, 15  ;;  %1245 = vmatpush2.msra.mxu0 %v1150_v21  ;;  %1246 = vmatprep.mubr.f32.mxu0 %v7561_v25  ;;  %v5465_v30 = vld [vmem:[%s4999_s15 + $0xa0] sm:$0xff]  ;;  %v852_v21 = vrot.slane %v5449_v26, 1  ;;  %7572 = vst [vmem:[#allocation35_spill] sm:$0xff] %v5490_v10 }
  0x5c   : > { %v7568_v35 = vsel %vm5444_vm8, 4294967295, %v7567_v35  ;;  %4258 = vmatprep.mubr.f32.mxu1 %v5431_v45  ;;  %1841 = vmatpush1.msra.mxu1 %v3728_v36  ;;  %v5475_v36 = vld [vmem:[%s7372_s1 + $0x2f8] sm:$0xff]  ;;  %v704_v45 = vrot.slane %v5020_v55, 7 }
  0x5d   : > { %7569 = vst [vmem:[#allocation32_spill] sm:$0xff] %v7568_v35  ;;  %1247 = vmatmul.mubr.f32.vlgmr.msra.gmra.mxu0 %v7561_v25  ;;  %4259 = vmatmul.mubr.msk.f32.gmra.mxu1 %vm5444_vm8, %v5440_v14  ;;  %v5485_v14 = vld [vmem:[%s4999_s15 + $0xa8] sm:$0xff]  ;;  %v853_v35 = vrot.slane %v5465_v30, 1  ;;  %v5511_v40 = vsel %vm7460_vm0, %v851_v17, %v852_v21  ;;  %v7579_v17 = vand.u32 15, %v4876_v7 }
  0x5e   : > { %1842 = vmatprep.subr.mxu1 %v7561_v25  ;;  %1251 = vmatprep.mubr.f32.mxu0 %v7561_v25  ;;  %7577 = vst [vmem:[#allocation37_spill] sm:$0xff] %v5511_v40  ;;  %v854_v29 = vrot.slane %v5485_v14, 1 }
  0x5f   : > { %1843 = vmatpush2.msra.mxu1 %v3759_v31  ;;  %4261 = vmatprep.mubr.f32.mxu1 %v5462_v12  ;;  %v3757_v31 = vld [vmem:[%s7372_s1 + $0x268] sm:$0xff]  ;;  %v5505_v12 = vld [vmem:[%s4999_s15 + $0xb0] sm:$0xff]  ;;  %vm5529_vm11 = vcmp.ne.s32.totalorder %v7579_v17, 0 }
  0x60   : > { %1844 = vmatprep.subr.mxu1 %v7561_v25  ;;  %4282 = vmatprep.subr.mxu0 %v5475_v36  ;;  %v855_v17 = vrot.slane %v5505_v12, 1 }
  0x61   : > { %1845 = vmatpush2.msra.mxu1 %v3758_v33  ;;  %1252 = vmatmul.mubr.f32.gmra.mxu0 %v7561_v25  ;;  %v7578_v33 = vrot.slane %v5454_v59, 7  ;;  %v5540_v59 = vsel %vm7460_vm0, %v852_v21, %v853_v35 }
  0x62   : > { %4262 = vmatmul.mubr.msk.f32.gmra.mxu1 %vm5494_vm9, %v5490_v10  ;;  %1846 = vmatprep.subr.mxu1 %v7561_v25  ;;  %v5535_v10 = vld [vmem:[%s4999_s15 + $0xb8] sm:$0xff]  ;;  %7582 = vst [vmem:[#allocation38_spill] sm:$0xff] %v5540_v59 }
  0x63   : > { %v5525_v47 = vsel %vm736_vm10, %v7578_v33, %v704_v45  ;;  %1847 = vmatpush2.msra.mxu1 %v3757_v31  ;;  %1256 = vmatprep.mubr.f32.mxu0 %v5020_v55  ;;  %v7583_v33 = vand.u32 15, %v5002_v49  ;;  %v3755_v31 = vld [vmem:[%s7372_s1 + $0x258] sm:$0xff]  ;;  %v5562_v49 = vsel %vm7460_vm0, %v853_v35, %v854_v29  ;;  %v856_v21 = vrot.slane %v5535_v10, 1 }
  0x64   : > { %1848 = vmatprep.subr.mxu1 %v7561_v25  ;;  %4264 = vmatprep.mubr.f32.mxu1 %v5511_v40  ;;  %7587 = vst [vmem:[#allocation40_spill] sm:$0xff] %v5562_v49  ;;  %v706_v35 = vrot.slane %v5036_v60, 7  ;;  %v5578_v40 = vld [vmem:[%s4999_s15 + $0xc8] sm:$0xff] }
  0x65   : > { %vm5544_vm12 = vcmp.ne.s32.totalorder %v7583_v33, 15  ;;  %1849 = vmatpush2.msra.mxu1 %v3756_v48  ;;  %3875 = vmatmul.mubr.msk.f32.gmra.mxu0 %vm5529_vm11, %v5525_v47  ;;  %v3754_v48 = vld [vmem:[%s7372_s1 + $0x250] sm:$0xff]  ;;  %v5574_v33 = vsel %vm736_vm10, %v704_v45, %v705_v62  ;;  %v857_v45 = vrot.slane %v5555_v24, 1 }
  0x66   : > { %v7585_v37 = vsel %vm5544_vm12, 4294967295, %v7584_v37  ;;  %4265 = vmatmul.mubr.msk.f32.gmra.mxu1 %vm5544_vm12, %v5540_v59  ;;  %1850 = vmatprep.subr.mxu1 %v7561_v25  ;;  %v7589_v59 = vand.u32 15, %v5013_v53  ;;  %v5603_v53 = vsel %vm7460_vm0, %v855_v17, %v856_v21 }
  0x67   : > { %7586 = vst [vmem:[#allocation39_spill] sm:$0xff] %v7585_v37  ;;  %1851 = vmatpush2.msra.mxu1 %v3755_v31  ;;  %1261 = vmatprep.mubr.f32.mxu0 %v5023_v56  ;;  %v5583_v37 = vsel %vm7460_vm0, %v854_v29, %v855_v17  ;;  %v3753_v31 = vld [vmem:[%s7372_s1 + $0x248] sm:$0xff]  ;;  %7594 = vst [vmem:[#allocation44_spill] sm:$0xff] %v5603_v53  ;;  %v3752_v29 = vld [vmem:[%s7372_s1 + $0x240] sm:$0xff]  ;;  %v7595_v17 = vand.u32 15, %v5026_v57  ;;  %v7601_v57 = vmov 0 }
  0x68   : > { %7588 = vst [vmem:[#allocation41_spill] sm:$0xff] %v5583_v37  ;;  %vm5587_vm13 = vcmp.ne.s32.totalorder %v7589_v59, 15  ;;  %1852 = vmatprep.subr.mxu1 %v7561_v25  ;;  %4267 = vmatprep.mubr.f32.mxu1 %v5562_v49  ;;  %v858_v59 = vrot.slane %v5578_v40, 1  ;;  %v3813_v49 = vld [vmem:[%s7372_s1 + $0x428] sm:$0xff] }
  0x69   : > { %v7591_v22 = vsel %vm5587_vm13, 4294967295, %v7590_v22  ;;  %1853 = vmatpush2.msra.mxu1 %v3754_v48  ;;  %1262 = vmatmul.mubr.f32.gmra.mxu0 %v5574_v33  ;;  %v5615_v48 = vsel %vm736_vm10, %v705_v62, %v706_v35  ;;  %vm5619_vm14 = vcmp.ne.s32.totalorder %v7595_v17, 0  ;;  %v7600_v62 = vand.u32 15, %v5071_v11 }
  0x6a   : > { %7592 = vst [vmem:[#allocation42_spill] sm:$0xff] %v7591_v22  ;;  %4268 = vmatmul.mubr.msk.f32.gmra.mxu1 %vm5587_vm13, %v5583_v37  ;;  %1854 = vmatprep.subr.mxu1 %v7561_v25  ;;  %v707_v22 = vrot.slane %v5052_v5, 7  ;;  %v5630_v37 = vsel %vm7460_vm0, %v856_v21, %v857_v45  ;;  %v859_v17 = vrot.slane %v5598_v8, 1  ;;  %v5652_v11 = vsel %vm7460_vm0, %v857_v45, %v858_v59  ;;  %v5688_v8 = vld [vmem:[%s4999_s15 + $0xf0] sm:$0xff] }
  0x6b   : > { %1855 = vmatpush2.msra.mxu1 %v3753_v31  ;;  %1266 = vmatprep.mubr.f32.mxu0 %v5036_v60  ;;  %7599 = vst [vmem:[#allocation46_spill] sm:$0xff] %v5630_v37  ;;  %vm5634_vm15 = vcmp.ne.s32.totalorder %v7600_v62, 15  ;;  %v3751_v31 = vld [vmem:[%s7372_s1 + $0x238] sm:$0xff]  ;;  %7605 = vst [vmem:[#allocation49_spill] sm:$0xff] %v5652_v11  ;;  %v860_v21 = vrot.slane %v5625_v4, 1  ;;  %v708_v45 = vrot.slane %v5068_v9, 7 }
  0x6c   : > { %v7602_v57 = vsel %vm5634_vm15, 4294967295, %v7601_v57  ;;  %1856 = vmatprep.subr.mxu1 %v7561_v25  ;;  %4270 = vmatprep.mubr.f32.mxu1 %v5603_v53  ;;  %v5664_v62 = vsel %vm736_vm10, %v706_v35, %v707_v22  ;;  %v5668_v53 = vld [vmem:[%s4999_s15 + $0xe8] sm:$0xff]  ;;  %v7609_v4 = vmov 0  ;;  %v861_v35 = vrot.slane %v5645_v41, 1 }
  0x6d   : > { %7603 = vst [vmem:[#allocation47_spill] sm:$0xff] %v7602_v57  ;;  %1857 = vmatpush2.msra.mxu1 %v3752_v29  ;;  %3877 = vmatmul.mubr.msk.f32.gmra.mxu0 %vm5619_vm14, %v5615_v48  ;;  %v3750_v29 = vld [vmem:[%s7372_s1 + $0x230] sm:$0xff]  ;;  %7606 = vst [vmem:[#allocation50_spill] sm:$0xff] %v5668_v53  ;;  %v5673_v57 = vsel %vm7460_vm0, %v858_v59, %v859_v17  ;;  %v5697_v59 = vadd.s32 240, %v4876_v7  ;;  %v709_v41 = vrot.slane %v5102_v32, 7 }
  0x6e   : > { %4271 = vmatmul.mubr.msk.f32.gmra.mxu1 %vm5634_vm15, %v5630_v37  ;;  %1858 = vmatprep.subr.mxu1 %v7561_v25  ;;  %7607 = vst [vmem:[#allocation51_spill] sm:$0xff] %v5673_v57  ;;  %v7608_v37 = vand.u32 15, %v5091_v27  ;;  %v5693_v27 = vsel %vm7460_vm0, %v859_v17, %v860_v21  ;;  %v7612_v17 = vand.u32 15, %v5121_v39  ;;  %v7479_v39 = vrot.slane %v5688_v8, 1 }
  0x6f   : > { %1859 = vmatpush2.msra.mxu1 %v3751_v31  ;;  %1271 = vmatprep.mubr.f32.mxu0 %v5052_v5  ;;  %v3749_v31 = vld [vmem:[%s7372_s1 + $0x228] sm:$0xff] }
  0x70   : > { %vm5677_vm15 = vcmp.ne.s32.totalorder %v7608_v37, 15  ;;  %1860 = vmatprep.subr.mxu1 %v7561_v25  ;;  %4273 = vmatprep.mubr.f32.mxu1 %v5652_v11  ;;  %v862_v37 = vrot.slane %v5668_v53, 1  ;;  %v5708_v11 = vsel %vm736_vm10, %v707_v22, %v708_v45  ;;  %vm5712_vm0 = vcmp.ne.s32.totalorder %v7612_v17, 0 }
  0x71   : > { %v7610_v4 = vsel %vm5677_vm15, 4294967295, %v7609_v4  ;;  %1861 = vmatpush2.msra.mxu1 %v3750_v29  ;;  %1272 = vmatmul.mubr.f32.gmra.mxu0 %v5664_v62  ;;  %v3748_v29 = vld [vmem:[%s7372_s1 + $0x220] sm:$0xff]  ;;  %v7613_v53 = vmov 0  ;;  %v7618_v22 = vmov 0  ;;  %v7622_v17 = vmov 0 }
  0x72   : > { %7611 = vst [vmem:[#allocation52_spill] sm:$0xff] %v7610_v4  ;;  %4274 = vmatmul.mubr.msk.f32.gmra.mxu1 %vm5677_vm15, %v5673_v57  ;;  %1862 = vmatprep.subr.mxu1 %v7561_v25  ;;  %v7614_v53 = vsel %vm5712_vm0, 4294967295, %v7613_v53  ;;  %vm7615_vm15 = vcmp.lt.s32.totalorder %v4876_v7, 7  ;;  %v7617_v57 = vand.u32 15, %v5124_v42 }
  0x73   : > { %1863 = vmatpush2.msra.mxu1 %v3749_v31  ;;  %1276 = vmatprep.mubr.f32.mxu0 %v5068_v9  ;;  %v5720_v4 = vsel %vm7615_vm15, %v860_v21, %v861_v35  ;;  %v3747_v31 = vld [vmem:[%s7372_s1 + $0x218] sm:$0xff]  ;;  %v5740_v42 = vsel %vm7615_vm15, %v861_v35, %v862_v37  ;;  %v5751_v21 = vsel %vm736_vm10, %v708_v45, %v709_v41  ;;  %v3745_v45 = vld [vmem:[%s7372_s1 + $0x208] sm:$0xff] }
  0x74   : > { %7616 = vst [vmem:[#allocation53_spill] sm:$0xff] %v5720_v4  ;;  %vm5724_vm13 = vcmp.ne.s32.totalorder %v7617_v57, 15  ;;  %1864 = vmatprep.subr.mxu1 %v7561_v25  ;;  %4276 = vmatprep.mubr.f32.mxu1 %v5693_v27  ;;  %v3746_v57 = vld [vmem:[%s7372_s1 + $0x210] sm:$0xff]  ;;  %v5758_v35 = vsel %vm7615_vm15, %v862_v37, %v7479_v39  ;;  %v3744_v37 = vld [vmem:[%s7372_s1 + $0x200] sm:$0xff]  ;;  %v711_v39 = vrot.slane %v5153_v54, 7 }
  0x75   : > { %v7619_v22 = vsel %vm5724_vm13, 4294967295, %v7618_v22  ;;  %1865 = vmatpush2.msra.mxu1 %v3748_v29  ;;  %3879 = vmatmul.mubr.msk.f32.gmra.mxu0 %vm5712_vm0, %v5708_v11  ;;  %v7621_v29 = vand.u32 15, %v5156_v58 }
  0x76   : > { %7620 = vst [vmem:[#allocation54_spill] sm:$0xff] %v7619_v22  ;;  %4277 = vmatmul.mubr.msk.f32.gmra.mxu1 %vm5724_vm13, %v5720_v4  ;;  %1866 = vmatprep.subr.mxu1 %v7561_v25  ;;  %v710_v22 = vrot.slane %v5118_v38, 7  ;;  %v3414_v4 = vld [vmem:[%s4999_s15 + $0x8] sm:$0xff] }
  0x77   : > { %1867 = vmatpush2.msra.mxu1 %v3747_v31  ;;  %1281 = vmatprep.mubr.f32.mxu0 %v5102_v32  ;;  %vm5762_vm13 = vcmp.ne.s32.totalorder %v7621_v29, 15  ;;  %v3413_v31 = vld [vmem:[%s4999_s15] sm:$0xff]  ;;  %v3415_v29 = vld [vmem:[%s4999_s15 + $0x10] sm:$0xff] }
  0x78   : > { %v7623_v17 = vsel %vm5762_vm13, 4294967295, %v7622_v17  ;;  %1868 = vmatprep.subr.mxu1 %v7561_v25  ;;  %4279 = vmatprep.mubr.f32.mxu1 %v5740_v42  ;;  %v3445_v58 = vadd.f32 %v3414_v4, %v3413_v31  ;;  %v7625_v4 = vand.u32 15, %v5175_v3  ;;  %v7626_v31 = vmov 0 }
  0x79   : > { %7624 = vst [vmem:[#allocation55_spill] sm:$0xff] %v7623_v17  ;;  %1869 = vmatpush2.msra.mxu1 %v3746_v57  ;;  %1282 = vmatmul.mubr.f32.gmra.mxu0 %v5751_v21  ;;  %v5786_v57 = vsel %vm736_vm10, %v709_v41, %v710_v22  ;;  %v3791_v41 = vld [vmem:[%s7372_s1 + $0x378] sm:$0xff] }
  0x7a   : > { %4280 = vmatmul.mubr.msk.f32.gmra.mxu1 %vm5762_vm13, %v5758_v35  ;;  %1870 = vmatprep.subr.mxu1 %v7561_v25  ;;  %vm5790_vm15 = vcmp.ne.s32.totalorder %v7625_v4, 0  ;;  %v3446_v17 = vadd.f32 %v3445_v58, %v3415_v29  ;;  %v3417_v58 = vld [vmem:[%s4999_s15 + $0x20] sm:$0xff] }
  0x7b   : > { %1871 = vmatpush2.msra.mxu1 %v3745_v45  ;;  %4283 = vmatpush3.msra.mxu0 %v5475_v36  ;;  %v7627_v31 = vsel %vm5790_vm15, 4294967295, %v7626_v31  ;;  %v3416_v45 = vld [vmem:[%s4999_s15 + $0x18] sm:$0xff]  ;;  %v3774_v36 = vld [vmem:[%s7372_s1 + $0x2f0] sm:$0xff] }
  0x7c   : > { %1872 = vmatprep.subr.mxu1 %v7561_v25  ;;  %1286 = vmatprep.mubr.f32.mxu0 %v5118_v38  ;;  %v3447_v3 = vadd.f32 %v3446_v17, %v3416_v45  ;;  %v5816_v17 = vsel %vm736_vm10, %v710_v22, %v711_v39  ;;  %v3773_v22 = vld [vmem:[%s7372_s1 + $0x2e8] sm:$0xff]  ;;  %v3419_v45 = vld [vmem:[%s4999_s15 + $0x30] sm:$0xff] }
  0x7d   : > { %1873 = vmatpush2.msra.mxu1 %v3744_v37  ;;  %1874 = vmatprep.mubr.f32.mxu1 %v5020_v55  ;;  %v712_v37 = vrot.slane %v5171_v1, 7 }
  0x7e   : > { %3881 = vmatmul.mubr.msk.f32.gmra.mxu0 %vm5790_vm15, %v5786_v57  ;;  %3935 = vmatmul.mubr.msk.f32.vlgmr.msra.gmra.mxu1 %vm5529_vm11, %v5525_v47  ;;  %v3448_v29 = vadd.f32 %v3447_v3, %v3417_v58  ;;  %v3418_v47 = vld [vmem:[%s4999_s15 + $0x28] sm:$0xff]  ;;  %v7629_v3 = vmov 0 }
  0x7f   : > { %2501 = vmatprep.subr.mxu1 %v7561_v25  ;;  %1291 = vmatprep.mubr.f32.mxu0 %v5153_v54 }
  0x80   : > { %2502 = vmatpush1.msra.mxu1 %v3791_v41  ;;  %1879 = vmatprep.mubr.f32.mxu1 %v5023_v56  ;;  %v3449_v4 = vadd.f32 %v3448_v29, %v3418_v47  ;;  %v5833_v56 = vsel %vm736_vm10, %v711_v39, %v712_v37  ;;  %v7628_v41 = vand.u32 15, %v5182_v18  ;;  %v3420_v39 = vld [vmem:[%s4999_s15 + $0x38] sm:$0xff]  ;;  %v3421_v29 = vld [vmem:[%s4999_s15 + $0x40] sm:$0xff]  ;;  %v714_v47 = vrot.slane %v5225_v6, 7 }
  0x81   : > { %4284 = vmatprep.subr.mxu0 %v3774_v36  ;;  %2503 = vmatprep.subr.mxu1 %v7561_v25 }
  0x82   : > { %1292 = vmatmul.mubr.f32.gmra.mxu0 %v5816_v17  ;;  %1880 = vmatmul.mubr.f32.gmra.mxu1 %v5574_v33  ;;  %vm5837_vm11 = vcmp.ne.s32.totalorder %v7628_v41, 0  ;;  %v713_v33 = vrot.slane %v5206_v20, 7  ;;  %v3450_v58 = vadd.f32 %v3449_v4, %v3419_v45  ;;  %v3422_v45 = vld [vmem:[%s4999_s15 + $0x48] sm:$0xff]  ;;  %v3772_v41 = vld [vmem:[%s7372_s1 + $0x2e0] sm:$0xff] }
  0x83   : > { %4285 = vmatpush3.msra.mxu0 %v3774_v36  ;;  %2504 = vmatpush1.msra.mxu1 %v3790_v46  ;;  %v7630_v3 = vsel %vm5837_vm11, 4294967295, %v7629_v3  ;;  %v3789_v36 = vld [vmem:[%s7372_s1 + $0x368] sm:$0xff] }
  0x84   : > { %1296 = vmatprep.mubr.f32.mxu0 %v5171_v1  ;;  %1884 = vmatprep.mubr.f32.mxu1 %v5036_v60  ;;  %v3451_v18 = vadd.f32 %v3450_v58, %v3420_v39  ;;  %v3788_v60 = vld [vmem:[%s7372_s1 + $0x360] sm:$0xff]  ;;  %v5862_v46 = vsel %vm736_vm10, %v712_v37, %v713_v33  ;;  %v3787_v37 = vld [vmem:[%s7372_s1 + $0x358] sm:$0xff]  ;;  %v7632_v39 = vmov 0 }
  0x85   : > { %2505 = vmatprep.subr.mxu1 %v7561_v25  ;;  %4286 = vmatprep.subr.mxu0 %v3773_v22 }
  0x86   : > { %3883 = vmatmul.mubr.msk.f32.gmra.mxu0 %vm5837_vm11, %v5833_v56  ;;  %3937 = vmatmul.mubr.msk.f32.gmra.mxu1 %vm5619_vm14, %v5615_v48  ;;  %v3452_v4 = vadd.f32 %v3451_v18, %v3421_v29  ;;  %v715_v18 = vrot.slane %v5259_v23, 7  ;;  %v3424_v29 = vld [vmem:[%s4999_s15 + $0x58] sm:$0xff] }
  0x87   : > { %2506 = vmatpush1.msra.mxu1 %v3789_v36  ;;  %1301 = vmatprep.mubr.f32.mxu0 %v5206_v20  ;;  %v7631_v36 = vand.u32 15, %v5211_v51  ;;  %v3786_v51 = vld [vmem:[%s7372_s1 + $0x350] sm:$0xff] }
  0x88   : > { %1889 = vmatprep.mubr.f32.mxu1 %v5052_v5  ;;  %2507 = vmatprep.subr.mxu1 %v7561_v25  ;;  %v3453_v58 = vadd.f32 %v3452_v4, %v3422_v45  ;;  %v3423_v5 = vld [vmem:[%s4999_s15 + $0x50] sm:$0xff]  ;;  %v3425_v4 = vld [vmem:[%s4999_s15 + $0x60] sm:$0xff]  ;;  %v5909_v45 = vsel %vm736_vm10, %v714_v47, %v715_v18 }
  0x89   : > { %4287 = vmatpush3.msra.mxu0 %v3773_v22  ;;  %2508 = vmatpush1.msra.mxu1 %v3788_v60  ;;  %v5881_v22 = vsel %vm736_vm10, %v713_v33, %v714_v47  ;;  %vm5885_vm13 = vcmp.ne.s32.totalorder %v7631_v36, 0  ;;  %v3427_v47 = vld [vmem:[%s4999_s15 + $0x70] sm:$0xff] }
  0x8a   : > { %1302 = vmatmul.mubr.f32.gmra.mxu0 %v5862_v46  ;;  %1890 = vmatmul.mubr.f32.gmra.mxu1 %v5664_v62  ;;  %v7633_v39 = vsel %vm5885_vm13, 4294967295, %v7632_v39  ;;  %v3454_v60 = vadd.f32 %v3453_v58, %v3423_v5  ;;  %v3770_v5 = vld [vmem:[%s7372_s1 + $0x2d0] sm:$0xff] }
  0x8b   : > { %1306 = vmatprep.mubr.f32.mxu0 %v5225_v6  ;;  %1894 = vmatprep.mubr.f32.mxu1 %v5068_v9  ;;  %v3771_v9 = vld [vmem:[%s7372_s1 + $0x2d8] sm:$0xff] }
  0x8c   : > { %2509 = vmatprep.subr.mxu1 %v7561_v25  ;;  %4288 = vmatprep.subr.mxu0 %v3772_v41  ;;  %v3455_v33 = vadd.f32 %v3454_v60, %v3424_v29  ;;  %v7634_v29 = vand.u32 15, %v5233_v2  ;;  %v5942_v2 = vadd.s32 248, %v4876_v7 }
  0x8d   : > { %2510 = vmatpush1.msra.mxu1 %v3787_v37  ;;  %4289 = vmatpush3.msra.mxu0 %v3772_v41  ;;  %v716_v41 = vrot.slane %v5276_v50, 7  ;;  %v3426_v37 = vld [vmem:[%s4999_s15 + $0x68] sm:$0xff] }
  0x8e   : > { %3885 = vmatmul.mubr.msk.f32.gmra.mxu0 %vm5885_vm13, %v5881_v22  ;;  %3939 = vmatmul.mubr.msk.f32.gmra.mxu1 %vm5712_vm0, %v5708_v11  ;;  %v3456_v58 = vadd.f32 %v3455_v33, %v3425_v4  ;;  %vm5931_vm0 = vcmp.ne.s32.totalorder %v7634_v29, 0  ;;  %v717_v33 = vrot.slane %v5310_v63, 7  ;;  %v3428_v4 = vld [vmem:[%s4999_s15 + $0x78] sm:$0xff]  ;;  %v3430_v29 = vld [vmem:[%s4999_s15 + $0x88] sm:$0xff] }
  0x8f   : > { %1311 = vmatprep.mubr.f32.mxu0 %v5259_v23  ;;  %1899 = vmatprep.mubr.f32.mxu1 %v5102_v32  ;;  %v3785_v32 = vld [vmem:[%s7372_s1 + $0x348] sm:$0xff]  ;;  %v5927_v60 = vsel %vm736_vm10, %v715_v18, %v716_v41 }
  0x90   : > { %2511 = vmatprep.subr.mxu1 %v7561_v25  ;;  %4290 = vmatprep.subr.mxu0 %v3771_v9  ;;  %v3457_v36 = vadd.f32 %v3456_v58, %v3426_v37  ;;  %v3784_v58 = vld [vmem:[%s7372_s1 + $0x340] sm:$0xff] }
  0x91   : > { %2512 = vmatpush1.msra.mxu1 %v3786_v51  ;;  %4291 = vmatpush3.msra.mxu0 %v3771_v9  ;;  %v7635_v9 = vmov 0  ;;  %v3429_v37 = vld [vmem:[%s4999_s15 + $0x80] sm:$0xff] }
  0x92   : > { %1312 = vmatmul.mubr.f32.gmra.mxu0 %v5909_v45  ;;  %1900 = vmatmul.mubr.f32.gmra.mxu1 %v5751_v21  ;;  %v7636_v9 = vsel %vm5931_vm0, 4294967295, %v7635_v9  ;;  %v3458_v51 = vadd.f32 %v3457_v36, %v3427_v47  ;;  %v718_v36 = vrot.slane %v5329_v44, 7 }
  0x93   : > { %1316 = vmatprep.mubr.f32.mxu0 %v5276_v50  ;;  %1904 = vmatprep.mubr.f32.mxu1 %v5118_v38  ;;  %v3769_v38 = vld [vmem:[%s7372_s1 + $0x2c8] sm:$0xff] }
  0x94   : > { %2513 = vmatprep.subr.mxu1 %v7561_v25  ;;  %4292 = vmatprep.subr.mxu0 %v3770_v5  ;;  %v3459_v18 = vadd.f32 %v3458_v51, %v3428_v4  ;;  %v3431_v4 = vld [vmem:[%s4999_s15 + $0x90] sm:$0xff] }
  0x95   : > { %2514 = vmatpush1.msra.mxu1 %v3785_v32  ;;  %4293 = vmatpush3.msra.mxu0 %v3770_v5  ;;  %v5958_v5 = vsel %vm736_vm10, %v716_v41, %v717_v33  ;;  %v3783_v41 = vld [vmem:[%s7372_s1 + $0x338] sm:$0xff] }
  0x96   : > { %3887 = vmatmul.mubr.msk.f32.gmra.mxu0 %vm5931_vm0, %v5927_v60  ;;  %3941 = vmatmul.mubr.msk.f32.gmra.mxu1 %vm5790_vm15, %v5786_v57  ;;  %v3460_v47 = vadd.f32 %v3459_v18, %v3429_v37  ;;  %v7637_v18 = vand.u32 15, %v5248_v43  ;;  %v719_v37 = vrot.slane %v5365_v52, 7  ;;  %v3782_v43 = vld [vmem:[%s7372_s1 + $0x330] sm:$0xff] }
  0x97   : > { %1321 = vmatprep.mubr.f32.mxu0 %v5310_v63  ;;  %1909 = vmatprep.mubr.f32.mxu1 %v5153_v54  ;;  %v3768_v54 = vld [vmem:[%s7372_s1 + $0x2c0] sm:$0xff] }
  0x98   : > { %2515 = vmatprep.subr.mxu1 %v7561_v25  ;;  %4294 = vmatprep.subr.mxu0 %v3769_v38  ;;  %v3461_v51 = vadd.f32 %v3460_v47, %v3430_v29  ;;  %vm5981_vm15 = vcmp.ne.s32.totalorder %v7637_v18, 0  ;;  %v3432_v29 = vld [vmem:[%s4999_s15 + $0x98] sm:$0xff]  ;;  %v3434_v18 = vld [vmem:[%s4999_s15 + $0xa8] sm:$0xff] }
  0x99   : > { %2516 = vmatpush1.msra.mxu1 %v3784_v58  ;;  %4295 = vmatpush3.msra.mxu0 %v3769_v38  ;;  %v5977_v38 = vsel %vm736_vm10, %v717_v33, %v718_v36  ;;  %v7638_v58 = vmov 0 }
  0x9a   : > { %1322 = vmatmul.mubr.f32.gmra.mxu0 %v5958_v5  ;;  %1910 = vmatmul.mubr.f32.gmra.mxu1 %v5816_v17  ;;  %v7639_v58 = vsel %vm5981_vm15, 4294967295, %v7638_v58  ;;  %v3462_v47 = vadd.f32 %v3461_v51, %v3431_v4  ;;  %v3433_v51 = vld [vmem:[%s4999_s15 + $0xa0] sm:$0xff] }
  0x9b   : > { %1326 = vmatprep.mubr.f32.mxu0 %v5329_v44  ;;  %1914 = vmatprep.mubr.f32.mxu1 %v5171_v1  ;;  %v3767_v1 = vld [vmem:[%s7372_s1 + $0x2b8] sm:$0xff] }
  0x9c   : > { %2517 = vmatprep.subr.mxu1 %v7561_v25  ;;  %4296 = vmatprep.subr.mxu0 %v3768_v54  ;;  %v3463_v33 = vadd.f32 %v3462_v47, %v3432_v29  ;;  %v3766_v47 = vld [vmem:[%s7372_s1 + $0x2b0] sm:$0xff] }
  0x9d   : > { %2518 = vmatpush1.msra.mxu1 %v3783_v41  ;;  %4297 = vmatpush3.msra.mxu0 %v3768_v54  ;;  %v6005_v54 = vsel %vm736_vm10, %v718_v36, %v719_v37  ;;  %v720_v41 = vrot.slane %v5382_v0, 7  ;;  %v3435_v36 = vld [vmem:[%s4999_s15 + $0xb0] sm:$0xff] }
  0x9e   : > { %3889 = vmatmul.mubr.msk.f32.gmra.mxu0 %vm5981_vm15, %v5977_v38  ;;  %3943 = vmatmul.mubr.msk.f32.gmra.mxu1 %vm5837_vm11, %v5833_v56  ;;  %v3464_v4 = vadd.f32 %v3463_v33, %v3433_v51  ;;  %v7640_v33 = vand.u32 15, %v5279_v61  ;;  %v721_v51 = vrot.slane %v5403_v13, 7  ;;  %v3780_v61 = vld [vmem:[%s7372_s1 + $0x320] sm:$0xff] }
  0x9f   : > { %1331 = vmatprep.mubr.f32.mxu0 %v5365_v52  ;;  %1919 = vmatprep.mubr.f32.mxu1 %v5206_v20  ;;  %v3781_v20 = vld [vmem:[%s7372_s1 + $0x328] sm:$0xff] }
  0xa0   : > { %2519 = vmatprep.subr.mxu1 %v7561_v25  ;;  %4298 = vmatprep.subr.mxu0 %v3767_v1  ;;  %v3465_v29 = vadd.f32 %v3464_v4, %v3434_v18  ;;  %vm6027_vm11 = vcmp.ne.s32.totalorder %v7640_v33, 0  ;;  %v3436_v18 = vld [vmem:[%s4999_s15 + $0xb8] sm:$0xff]  ;;  %v3438_v33 = vld [vmem:[%s4999_s15 + $0xc8] sm:$0xff] }
  0xa1   : > { %2520 = vmatpush1.msra.mxu1 %v3782_v43  ;;  %4299 = vmatpush3.msra.mxu0 %v3767_v1  ;;  %v6023_v1 = vsel %vm736_vm10, %v719_v37, %v720_v41  ;;  %v7641_v43 = vmov 0 }
  0xa2   : > { %1332 = vmatmul.mubr.f32.gmra.mxu0 %v6005_v54  ;;  %1920 = vmatmul.mubr.f32.gmra.mxu1 %v5862_v46  ;;  %v7642_v43 = vsel %vm6027_vm11, 4294967295, %v7641_v43  ;;  %v3466_v4 = vadd.f32 %v3465_v29, %v3435_v36  ;;  %v3437_v29 = vld [vmem:[%s4999_s15 + $0xc0] sm:$0xff] }
  0xa3   : > { %1336 = vmatprep.mubr.f32.mxu0 %v5382_v0  ;;  %1924 = vmatprep.mubr.f32.mxu1 %v5225_v6  ;;  %v3765_v6 = vld [vmem:[%s7372_s1 + $0x2a8] sm:$0xff] }
  0xa4   : > { %2521 = vmatprep.subr.mxu1 %v7561_v25  ;;  %4300 = vmatprep.subr.mxu0 %v3766_v47  ;;  %v3467_v37 = vadd.f32 %v3466_v4, %v3436_v18  ;;  %v3764_v4 = vld [vmem:[%s7372_s1 + $0x2a0] sm:$0xff] }
  0xa5   : > { %2522 = vmatpush1.msra.mxu1 %v3781_v20  ;;  %4301 = vmatpush3.msra.mxu0 %v3766_v47  ;;  %v6051_v47 = vsel %vm736_vm10, %v720_v41, %v721_v51  ;;  %v722_v20 = vrot.slane %v5427_v19, 7  ;;  %v3439_v41 = vld [vmem:[%s4999_s15 + $0xd0] sm:$0xff] }
  0xa6   : > { %3891 = vmatmul.mubr.msk.f32.gmra.mxu0 %vm6027_vm11, %v6023_v1  ;;  %3945 = vmatmul.mubr.msk.f32.gmra.mxu1 %vm5885_vm13, %v5881_v22  ;;  %7643 = vst [vmem:[#allocation56_spill] sm:$0xff] %v6051_v47  ;;  %v3468_v36 = vadd.f32 %v3467_v37, %v3437_v29  ;;  %v7645_v37 = vand.u32 15, %v5299_v15  ;;  %v723_v29 = vrot.slane %v5449_v26, 7  ;;  %v3778_v15 = vld [vmem:[%s7372_s1 + $0x310] sm:$0xff] }
  0xa7   : > { %1341 = vmatprep.mubr.f32.mxu0 %v5403_v13  ;;  %1929 = vmatprep.mubr.f32.mxu1 %v5259_v23  ;;  %v3779_v23 = vld [vmem:[%s7372_s1 + $0x318] sm:$0xff] }
  0xa8   : > { %2523 = vmatprep.subr.mxu1 %v7561_v25  ;;  %4302 = vmatprep.subr.mxu0 %v3765_v6  ;;  %v3469_v18 = vadd.f32 %v3468_v36, %v3438_v33  ;;  %vm6073_vm13 = vcmp.ne.s32.totalorder %v7645_v37, 0  ;;  %v3440_v33 = vld [vmem:[%s4999_s15 + $0xd8] sm:$0xff]  ;;  %v3442_v37 = vld [vmem:[%s4999_s15 + $0xe8] sm:$0xff] }
  0xa9   : > { %2524 = vmatpush1.msra.mxu1 %v3780_v61  ;;  %4303 = vmatpush3.msra.mxu0 %v3765_v6  ;;  %v6069_v6 = vsel %vm736_vm10, %v721_v51, %v722_v20  ;;  %v7646_v61 = vmov 0 }
  0xaa   : > { %1342 = vmatmul.mubr.f32.gmra.mxu0 %v6051_v47  ;;  %1930 = vmatmul.mubr.f32.gmra.mxu1 %v5909_v45  ;;  %7644 = vst [vmem:[#allocation57_spill] sm:$0xff] %v6069_v6  ;;  %v7647_v61 = vsel %vm6073_vm13, 4294967295, %v7646_v61  ;;  %v3470_v36 = vadd.f32 %v3469_v18, %v3439_v41  ;;  %v3441_v18 = vld [vmem:[%s4999_s15 + $0xe0] sm:$0xff] }
  0xab   : > { %1346 = vmatprep.mubr.f32.mxu0 %v5427_v19  ;;  %1934 = vmatprep.mubr.f32.mxu1 %v5276_v50  ;;  %7648 = vst [vmem:[#allocation58_spill] sm:$0xff] %v7647_v61  ;;  %v3763_v50 = vld [vmem:[%s7372_s1 + $0x298] sm:$0xff]  ;;  %v7719_v61 = vld [vmem:[#allocation31_spill] sm:$0xff] }
  0xac   : > { %2525 = vmatprep.subr.mxu1 %v7561_v25  ;;  %4304 = vmatprep.subr.mxu0 %v3764_v4  ;;  %v3471_v51 = vadd.f32 %v3470_v36, %v3440_v33  ;;  %v3762_v36 = vld [vmem:[%s7372_s1 + $0x290] sm:$0xff] }
  0xad   : > { %2526 = vmatpush1.msra.mxu1 %v3779_v23  ;;  %4305 = vmatpush3.msra.mxu0 %v3764_v4  ;;  %v6097_v4 = vsel %vm736_vm10, %v722_v20, %v723_v29  ;;  %v724_v23 = vrot.slane %v5465_v30, 7  ;;  %v3443_v20 = vld [vmem:[%s4999_s15 + $0xf0] sm:$0xff] }
  0xae   : > { %3893 = vmatmul.mubr.msk.f32.gmra.mxu0 %vm6073_vm13, %v6069_v6  ;;  %3947 = vmatmul.mubr.msk.f32.gmra.mxu1 %vm5931_vm0, %v5927_v60  ;;  %7649 = vst [vmem:[#allocation59_spill] sm:$0xff] %v6097_v4  ;;  %v3472_v41 = vadd.f32 %v3471_v51, %v3441_v18  ;;  %v7651_v51 = vand.u32 15, %v5313_v16  ;;  %v725_v18 = vrot.slane %v5485_v14, 7  ;;  %v3776_v16 = vld [vmem:[%s7372_s1 + $0x300] sm:$0xff] }
  0xaf   : > { %1351 = vmatprep.mubr.f32.mxu0 %v5449_v26  ;;  %1939 = vmatprep.mubr.f32.mxu1 %v5310_v63  ;;  %v3777_v63 = vld [vmem:[%s7372_s1 + $0x308] sm:$0xff] }
  0xb0   : > { %2527 = vmatprep.subr.mxu1 %v7561_v25  ;;  %4306 = vmatprep.subr.mxu0 %v3763_v50  ;;  %v3473_v33 = vadd.f32 %v3472_v41, %v3442_v37  ;;  %vm6119_vm0 = vcmp.ne.s32.totalorder %v7651_v51, 0  ;;  %v3444_v37 = vld [vmem:[%s4999_s15 + $0xf8] sm:$0xff] }
  0xb1   : > { %2528 = vmatpush1.msra.mxu1 %v3778_v15  ;;  %4307 = vmatpush3.msra.mxu0 %v3763_v50  ;;  %v6115_v50 = vsel %vm736_vm10, %v723_v29, %v724_v23  ;;  %v7652_v15 = vmov 0 }
  0xb2   : > { %1352 = vmatmul.mubr.f32.gmra.mxu0 %v6097_v4  ;;  %1940 = vmatmul.mubr.f32.gmra.mxu1 %v5958_v5  ;;  %7650 = vst [vmem:[#allocation60_spill] sm:$0xff] %v6115_v50  ;;  %v7653_v15 = vsel %vm6119_vm0, 4294967295, %v7652_v15  ;;  %v3474_v41 = vadd.f32 %v3473_v33, %v3443_v20  ;;  %v726_v33 = vrot.slane %v5505_v12, 7  ;;  %v3760_v20 = vld [vmem:[%s7372_s1 + $0x280] sm:$0xff] }
  0xb3   : > { %1356 = vmatprep.mubr.f32.mxu0 %v5465_v30  ;;  %1944 = vmatprep.mubr.f32.mxu1 %v5329_v44  ;;  %7654 = vst [vmem:[#allocation61_spill] sm:$0xff] %v7653_v15  ;;  %v3761_v44 = vld [vmem:[%s7372_s1 + $0x288] sm:$0xff]  ;;  %v7685_v15 = vld [vmem:[#allocation50_spill] sm:$0xff] }
  0xb4   : > { %2529 = vmatprep.subr.mxu1 %v7561_v25  ;;  %4308 = vmatprep.subr.mxu0 %v3762_v36  ;;  %v3475_v29 = vadd.f32 %v3474_v41, %v3444_v37  ;;  %v7657_v41 = vand.u32 15, %v5337_v34  ;;  %v7658_v37 = vmov 0  ;;  %v3806_v34 = vld [vmem:[%s7372_s1 + $0x3f0] sm:$0xff] }
  0xb5   : > { %2530 = vmatpush1.msra.mxu1 %v3777_v63  ;;  %4309 = vmatpush3.msra.mxu0 %v3762_v36  ;;  %v6142_v36 = vsel %vm736_vm10, %v724_v23, %v725_v18  ;;  %v6158_v23 = vsel %vm736_vm10, %v725_v18, %v726_v33 }
  0xb6   : > { %3895 = vmatmul.mubr.msk.f32.gmra.mxu0 %vm6119_vm0, %v6115_v50  ;;  %3949 = vmatmul.mubr.msk.f32.gmra.mxu1 %vm5981_vm15, %v5977_v38  ;;  %7655 = vst [vmem:[#allocation62_spill] sm:$0xff] %v6142_v36  ;;  %v3476_v63 = vrot.slane %v3475_v29, 4  ;;  %7656 = vst [vmem:[#allocation63_spill] sm:$0xff] %v6158_v23  ;;  %vm6162_vm15 = vcmp.ne.s32.totalorder %v7657_v41, 0  ;;  %v7664_v41 = vmov 0 }
  0xb7   : > { %1361 = vmatprep.mubr.f32.mxu0 %v5485_v14  ;;  %1949 = vmatprep.mubr.f32.mxu1 %v5365_v52  ;;  %v3807_v52 = vld [vmem:[%s7372_s1 + $0x3f8] sm:$0xff]  ;;  %v7659_v37 = vsel %vm6162_vm15, 4294967295, %v7658_v37 }
  0xb8   : > { %2531 = vmatprep.subr.mxu1 %v7561_v25  ;;  %4310 = vmatprep.subr.mxu0 %v3761_v44  ;;  %v3477_v51 = vadd.f32 %v3476_v63, %v3475_v29  ;;  %7660 = vst [vmem:[#allocation64_spill] sm:$0xff] %v7659_v37  ;;  %v728_v63 = vrot.slane %v5555_v24, 7  ;;  %v7709_v37 = vmov 0 }
  0xb9   : > { %2532 = vmatpush1.msra.mxu1 %v3776_v16  ;;  %4311 = vmatpush3.msra.mxu0 %v3761_v44  ;;  %v727_v44 = vrot.slane %v5535_v10, 7 }
  0xba   : > { %1362 = vmatmul.mubr.f32.gmra.mxu0 %v6142_v36  ;;  %1950 = vmatmul.mubr.f32.gmra.mxu1 %v6005_v54  ;;  %v3478_v29 = vrot.slane %v3477_v51, 2 }
  0xbb   : > { %1366 = vmatprep.mubr.f32.mxu0 %v5505_v12  ;;  %1954 = vmatprep.mubr.f32.mxu1 %v5382_v0  ;;  %v6171_v0 = vld [vmem:[%s7372_s1 + $0x478] sm:$0xff]  ;;  %v6186_v16 = vsel %vm736_vm10, %v726_v33, %v727_v44  ;;  %v6200_v33 = vsel %vm736_vm10, %v727_v44, %v728_v63  ;;  %v7669_v44 = vld [vmem:[#allocation43_spill] sm:$0xff] }
  0xbc   : > { %2533 = vmatprep.subr.mxu1 %v7561_v25  ;;  %4312 = vmatprep.subr.mxu0 %v3760_v20  ;;  %v3479_v18 = vadd.f32 %v3478_v29, %v3477_v51  ;;  %7661 = vst [vmem:[#allocation65_spill] sm:$0xff] %v6186_v16  ;;  %7662 = vst [vmem:[#allocation66_spill] sm:$0xff] %v6200_v33  ;;  %v729_v29 = vrot.slane %v5578_v40, 7 }
  0xbd   : > { %2534 = vmatpush2.msra.mxu1 %v3807_v52  ;;  %4313 = vmatpush3.msra.mxu0 %v3760_v20  ;;  %v7663_v52 = vand.u32 15, %v5361_v28 }
  0xbe   : > { %3897 = vmatmul.mubr.msk.f32.gmra.mxu0 %vm6162_vm15, %v6158_v23  ;;  %3951 = vmatmul.mubr.msk.f32.gmra.mxu1 %vm6027_vm11, %v6023_v1  ;;  %v3480_v20 = vrot.slane %v3479_v18, 1  ;;  %v6227_v28 = vsel %vm736_vm10, %v728_v63, %v729_v29  ;;  %v7671_v63 = vld [vmem:[#allocation25_spill] sm:$0xff] }
  0xbf   : > { %1371 = vmatprep.mubr.f32.mxu0 %v5535_v10  ;;  %1959 = vmatprep.mubr.f32.mxu1 %v5403_v13  ;;  %v3805_v13 = vld [vmem:[%s7372_s1 + $0x3e8] sm:$0xff]  ;;  %vm6204_vm11 = vcmp.ne.s32.totalorder %v7663_v52, 0  ;;  %7668 = vst [vmem:[#allocation69_spill] sm:$0xff] %v6227_v28  ;;  %v7676_v52 = vld [vmem:[#allocation45_spill] sm:$0xff] }
  0xc0   : > { %2535 = vmatprep.subr.mxu1 %v7561_v25  ;;  %4362 = vmatprep.subr.mxu0 %v6171_v0  ;;  %v3481_v51 = vadd.f32 %v3480_v20, %v3479_v18  ;;  %v7665_v41 = vsel %vm6204_vm11, 4294967295, %v7664_v41  ;;  %v3803_v20 = vld [vmem:[%s7372_s1 + $0x3d8] sm:$0xff] }
  0xc1   : > { %2536 = vmatpush2.msra.mxu1 %v3806_v34  ;;  %7666 = vst [vmem:[#allocation67_spill] sm:$0xff] %v7665_v41  ;;  %v730_v34 = vrot.slane %v7669_v44, 7  ;;  %v3793_v41 = vld [vmem:[%s7372_s1 + $0x388] sm:$0xff] }
  0xc2   : > { %1372 = vmatmul.mubr.f32.gmra.mxu0 %v6186_v16  ;;  %1960 = vmatmul.mubr.f32.gmra.mxu1 %v6051_v47  ;;  %v6209_v18 = vmul.f32 0.00390625, %v3481_v51  ;;  %v7672_v51 = vand.u32 15, %v7671_v63 }
  0xc3   : > { %1376 = vmatprep.mubr.f32.mxu0 %v5555_v24  ;;  %1964 = vmatprep.mubr.f32.mxu1 %v5427_v19  ;;  %v3804_v19 = vld [vmem:[%s7372_s1 + $0x3e0] sm:$0xff] }
  0xc4   : > { %7667 = vst [vmem:[#allocation68_spill] sm:$0xff] %v6209_v18  ;;  %2537 = vmatprep.subr.mxu1 %v7561_v25  ;;  %3484 = vrot.lane.b32.xlu0 %v6209_v18, %s4778_s13  ;;  %v7724_v18 = vld [vmem:[#allocation37_spill] sm:$0xff] }
  0xc5   : > { %2538 = vmatpush2.msra.mxu1 %v3805_v13  ;;  %v7673_v13 = vmov 0 }
  0xc6   : > { %3899 = vmatmul.mubr.msk.f32.gmra.mxu0 %vm6204_vm11, %v6200_v33  ;;  %3953 = vmatmul.mubr.msk.f32.gmra.mxu1 %vm6073_vm13, %v6069_v6  ;;  %vm6244_vm13 = vcmp.ne.s32.totalorder %v7672_v51, 0  ;;  %v3801_v51 = vld [vmem:[%s7372_s1 + $0x3c8] sm:$0xff]  ;;  %v7729_v6 = vld [vmem:[#allocation42_spill] sm:$0xff] }
  0xc7   : > { %1381 = vmatprep.mubr.f32.mxu0 %v5578_v40  ;;  %1969 = vmatprep.mubr.f32.mxu1 %v5449_v26  ;;  %v6240_v26 = vsel %vm736_vm10, %v729_v29, %v730_v34  ;;  %v7674_v13 = vsel %vm6244_vm13, 4294967295, %v7673_v13 }
  0xc8   : > { %2539 = vmatprep.subr.mxu1 %v7561_v25  ;;  %7670 = vst [vmem:[#allocation43_spill] sm:$0xff] %v6240_v26  ;;  %7675 = vst [vmem:[#allocation25_spill] sm:$0xff] %v7674_v13 }
  0xc9   : > { %2540 = vmatpush2.msra.mxu1 %v3804_v19  ;;  %v731_v19 = vrot.slane %v7676_v52, 7 }
  0xca   : > { %1382 = vmatmul.mubr.f32.gmra.mxu0 %v6227_v28  ;;  %1970 = vmatmul.mubr.f32.gmra.mxu1 %v6097_v4 }
  0xcb   : > { %1386 = vmatprep.mubr.f32.mxu0 %v7669_v44  ;;  %1974 = vmatprep.mubr.f32.mxu1 %v5465_v30  ;;  %v3802_v30 = vld [vmem:[%s7372_s1 + $0x3d0] sm:$0xff]  ;;  %v6263_v29 = vsel %vm736_vm10, %v730_v34, %v731_v19 }
  0xcc   : > { %2541 = vmatprep.subr.mxu1 %v7561_v25  ;;  %7677 = vst [vmem:[#allocation45_spill] sm:$0xff] %v6263_v29  ;;  %v7680_v34 = vld [vmem:[#allocation29_spill] sm:$0xff] }
  0xcd   : > { %2542 = vmatpush2.msra.mxu1 %v3803_v20  ;;  %v7678_v20 = vld [vmem:[#allocation48_spill] sm:$0xff]  ;;  %v7681_v32 = vand.u32 15, %v7680_v34  ;;  %v3798_v34 = vld [vmem:[%s7372_s1 + $0x3b0] sm:$0xff] }
  0xce   : > { %3901 = vmatmul.mubr.msk.f32.gmra.mxu0 %vm6244_vm13, %v6240_v26  ;;  %3955 = vmatmul.mubr.msk.f32.gmra.mxu1 %vm6119_vm0, %v6115_v50  ;;  %v732_v63 = vrot.slane %v7678_v20, 7 }
  0xcf   : > { %1391 = vmatprep.mubr.f32.mxu0 %v7676_v52  ;;  %1979 = vmatprep.mubr.f32.mxu1 %v5485_v14  ;;  %vm6280_vm0 = vcmp.ne.s32.totalorder %v7681_v32, 0 }
  0xd0   : > { %2543 = vmatprep.subr.mxu1 %v7561_v25  ;;  %v6276_v14 = vsel %vm736_vm10, %v731_v19, %v732_v63  ;;  %v3799_v19 = vld [vmem:[%s7372_s1 + $0x3b8] sm:$0xff] }
  0xd1   : > { %2544 = vmatpush2.msra.mxu1 %v3802_v30  ;;  %7679 = vst [vmem:[#allocation48_spill] sm:$0xff] %v6276_v14  ;;  %v7682_v30 = vmov 0 }
  0xd2   : > { %1392 = vmatmul.mubr.f32.gmra.mxu0 %v6263_v29  ;;  %1980 = vmatmul.mubr.f32.gmra.mxu1 %v6142_v36  ;;  %v7683_v30 = vsel %vm6280_vm0, 4294967295, %v7682_v30  ;;  %v7495_v36 = vrot.slane %v7685_v15, 7 }
  0xd3   : > { %1396 = vmatprep.mubr.f32.mxu0 %v7678_v20  ;;  %1984 = vmatprep.mubr.f32.mxu1 %v5505_v12  ;;  %7684 = vst [vmem:[#allocation29_spill] sm:$0xff] %v7683_v30  ;;  %v3800_v12 = vld [vmem:[%s7372_s1 + $0x3c0] sm:$0xff] }
  0xd4   : > { %2545 = vmatprep.subr.mxu1 %v7561_v25  ;;  %v6301_v32 = vsel %vm736_vm10, %v732_v63, %v7495_v36  ;;  %v7688_v63 = vld [vmem:[#allocation8_spill] sm:$0xff]  ;;  %v3796_v36 = vld [vmem:[%s7372_s1 + $0x3a0] sm:$0xff] }
  0xd5   : > { %2546 = vmatpush2.msra.mxu1 %v3801_v51  ;;  %7686 = vst [vmem:[#allocation50_spill] sm:$0xff] %v6301_v32  ;;  %v7693_v51 = vld [vmem:[#allocation13_spill] sm:$0xff]  ;;  %v7703_v30 = vld [vmem:[#allocation23_spill] sm:$0xff] }
  0xd6   : > { %3903 = vmatmul.mubr.msk.f32.gmra.mxu0 %vm6280_vm0, %v6276_v14  ;;  %3957 = vmatmul.mubr.msk.f32.gmra.mxu1 %vm6162_vm15, %v6158_v23 }
  0xd7   : > { %1401 = vmatprep.mubr.f32.mxu0 %v7685_v15  ;;  %1989 = vmatprep.mubr.f32.mxu1 %v5535_v10  ;;  %v7687_v10 = vld [vmem:[#allocation7_spill] sm:$0xff] }
  0xd8   : > { %2547 = vmatprep.subr.mxu1 %v7561_v25 }
  0xd9   : > { %2548 = vmatpush2.msra.mxu1 %v3800_v12  ;;  %v7690_v12 = vld [vmem:[#allocation10_spill] sm:$0xff] }
  0xda   : > { %1402 = vmatmul.mubr.f32.gmra.mxu0 %v6301_v32  ;;  %1990 = vmatmul.mubr.f32.gmra.mxu1 %v6186_v16  ;;  %v7708_v16 = vand.u32 15, %v5697_v59  ;;  %v3792_v59 = vld [vmem:[%s7372_s1 + $0x380] sm:$0xff] }
  0xdb   : > { %1994 = vmatprep.mubr.f32.mxu1 %v5555_v24  ;;  %4314 = vmatprep.mubr.f32.mxu0 %v7687_v10  ;;  %v3822_v24 = vld [vmem:[%s7372_s1 + $0x470] sm:$0xff] }
  0xdc   : > { %2549 = vmatprep.subr.mxu1 %v7561_v25 }
  0xdd   : > { %2550 = vmatpush2.msra.mxu1 %v3799_v19  ;;  %v7691_v19 = vld [vmem:[#allocation11_spill] sm:$0xff] }
  0xde   : > { %3959 = vmatmul.mubr.msk.f32.gmra.mxu1 %vm6204_vm11, %v6200_v33  ;;  %4315 = vmatmul.mubr.msk.f32.vlgmr.msra.gmra.mxu0 %vm5085_vm1, %v7688_v63  ;;  %v3797_v63 = vld [vmem:[%s7372_s1 + $0x3a8] sm:$0xff]  ;;  %vm6405_vm1 = vcmp.ne.s32.totalorder %v7708_v16, 0  ;;  %v3816_v16 = vld [vmem:[%s7372_s1 + $0x440] sm:$0xff] }
  0xdf   : > { %1999 = vmatprep.mubr.f32.mxu1 %v5578_v40  ;;  %4317 = vmatprep.mubr.f32.mxu0 %v7690_v12  ;;  %v3821_v40 = vld [vmem:[%s7372_s1 + $0x468] sm:$0xff]  ;;  %v7710_v37 = vsel %vm6405_vm1, 4294967295, %v7709_v37 }
  0xe0   : > { %2551 = vmatprep.subr.mxu1 %v7561_v25  ;;  %4363 = vmatpush3.msra.mxu0 %v6171_v0  ;;  %v7694_v0 = vld [vmem:[#allocation14_spill] sm:$0xff]  ;;  %v3817_v33 = vld [vmem:[%s7372_s1 + $0x448] sm:$0xff]  ;;  %7711 = vst [vmem:[#allocation8_spill] sm:$0xff] %v7710_v37  ;;  %v7716_v37 = vld [vmem:[#allocation33_spill] sm:$0xff] }
  0xe1   : > { %2552 = vmatpush2.msra.mxu1 %v3798_v34  ;;  %4364 = vmatprep.subr.mxu0 %v3822_v24 }
  0xe2   : > { %2000 = vmatmul.mubr.f32.gmra.mxu1 %v6227_v28  ;;  %4318 = vmatmul.mubr.msk.f32.gmra.mxu0 %vm5138_vm2, %v7691_v19  ;;  %v7699_v28 = vld [vmem:[#allocation19_spill] sm:$0xff] }
  0xe3   : > { %2004 = vmatprep.mubr.f32.mxu1 %v7669_v44  ;;  %4320 = vmatprep.mubr.f32.mxu0 %v7693_v51  ;;  %v3820_v44 = vld [vmem:[%s7372_s1 + $0x460] sm:$0xff] }
  0xe4   : > { %2553 = vmatprep.subr.mxu1 %v7561_v25  ;;  %4365 = vmatpush3.msra.mxu0 %v3822_v24  ;;  %v7696_v24 = vld [vmem:[#allocation16_spill] sm:$0xff] }
  0xe5   : > { %2554 = vmatpush2.msra.mxu1 %v3797_v63  ;;  %4366 = vmatprep.subr.mxu0 %v3821_v40  ;;  %v7697_v63 = vld [vmem:[#allocation17_spill] sm:$0xff] }
  0xe6   : > { %3961 = vmatmul.mubr.msk.f32.gmra.mxu1 %vm6244_vm13, %v6240_v26  ;;  %4321 = vmatmul.mubr.msk.f32.gmra.mxu0 %vm5192_vm3, %v7694_v0  ;;  %v3795_v26 = vld [vmem:[%s7372_s1 + $0x398] sm:$0xff] }
  0xe7   : > { %2009 = vmatprep.mubr.f32.mxu1 %v7676_v52  ;;  %4323 = vmatprep.mubr.f32.mxu0 %v7696_v24  ;;  %v3819_v52 = vld [vmem:[%s7372_s1 + $0x458] sm:$0xff] }
  0xe8   : > { %2555 = vmatprep.subr.mxu1 %v7561_v25  ;;  %4367 = vmatpush3.msra.mxu0 %v3821_v40 }
  0xe9   : > { %2556 = vmatpush2.msra.mxu1 %v3796_v36  ;;  %4368 = vmatprep.subr.mxu0 %v3820_v44  ;;  %v7700_v36 = vld [vmem:[#allocation20_spill] sm:$0xff] }
  0xea   : > { %2010 = vmatmul.mubr.f32.gmra.mxu1 %v6263_v29  ;;  %4324 = vmatmul.mubr.msk.f32.gmra.mxu0 %vm5243_vm4, %v7697_v63  ;;  %v3794_v29 = vld [vmem:[%s7372_s1 + $0x390] sm:$0xff] }
  0xeb   : > { %2014 = vmatprep.mubr.f32.mxu1 %v7678_v20  ;;  %4326 = vmatprep.mubr.f32.mxu0 %v7699_v28  ;;  %v3818_v20 = vld [vmem:[%s7372_s1 + $0x450] sm:$0xff] }
  0xec   : > { %2557 = vmatprep.subr.mxu1 %v7561_v25  ;;  %4369 = vmatpush3.msra.mxu0 %v3820_v44  ;;  %v734_v44 = vrot.slane %v5688_v8, 7 }
  0xed   : > { %2558 = vmatpush2.msra.mxu1 %v3795_v26  ;;  %4370 = vmatprep.subr.mxu0 %v3819_v52  ;;  %v7702_v26 = vld [vmem:[#allocation22_spill] sm:$0xff] }
  0xee   : > { %3963 = vmatmul.mubr.msk.f32.gmra.mxu1 %vm6280_vm0, %v6276_v14  ;;  %4327 = vmatmul.mubr.msk.f32.gmra.mxu0 %vm5293_vm5, %v7700_v36  ;;  %vm7741_vm0 = vnez %v7627_v31  ;;  %v4660_v31 = vld [vmem:[%s4999_s15 + $0x40] sm:$0xff] }
  0xef   : > { %2019 = vmatprep.mubr.f32.mxu1 %v7685_v15  ;;  %4329 = vmatprep.mubr.f32.mxu0 %v7702_v26 }
  0xf0   : > { %2559 = vmatprep.subr.mxu1 %v7561_v25  ;;  %4371 = vmatpush3.msra.mxu0 %v3819_v52  ;;  %v7705_v52 = vld [vmem:[#allocation26_spill] sm:$0xff] }
  0xf1   : > { %2560 = vmatpush2.msra.mxu1 %v3794_v29  ;;  %4372 = vmatprep.subr.mxu0 %v3818_v20  ;;  %v7706_v29 = vrot.slane %v7685_v15, 7  ;;  %v7712_v15 = vld [vmem:[#allocation28_spill] sm:$0xff] }
  0xf2   : > { %2020 = vmatmul.mubr.f32.gmra.mxu1 %v6301_v32  ;;  %4330 = vmatmul.mubr.msk.f32.gmra.mxu0 %vm5347_vm6, %v7703_v30 }
  0xf3   : > { %2024 = vmatprep.mubr.f32.mxu1 %v5688_v8  ;;  %4332 = vmatprep.mubr.f32.mxu0 %v7705_v52  ;;  %v6401_v32 = vsel %vm736_vm10, %v7706_v29, %v734_v44  ;;  %v4669_v29 = vld [vmem:[%s4999_s15 + $0x88] sm:$0xff] }
  0xf4   : > { %7707 = vst [vmem:[#allocation7_spill] sm:$0xff] %v6401_v32  ;;  %2561 = vmatprep.subr.mxu1 %v7561_v25  ;;  %4373 = vmatpush3.msra.mxu0 %v3818_v20  ;;  %v7715_v20 = vld [vmem:[#allocation30_spill] sm:$0xff] }
  0xf5   : > { %2562 = vmatpush2.msra.mxu1 %v3793_v41  ;;  %v6410_v23 = vpop.f32.mrf.mxu1  ;;  %4374 = vmatprep.subr.mxu0 %v3817_v33  ;;  %v6425_v41 = vld [vmem:[%s4999_s15 + $0xf8] sm:$0xff] }
  0xf6   : > { %3965 = vmatmul.mubr.msk.f32.gmra.mxu1 %vm6405_vm1, %v6401_v32  ;;  %4333 = vmatmul.mubr.msk.f32.gmra.mxu0 %vm5390_vm7, %v7712_v15  ;;  %7714 = vst [vmem:[#allocation9_spill] sm:$0xff] %v6425_v41  ;;  %v7717_v32 = vrot.slane %v7716_v37, 7  ;;  %v3815_v37 = vld [vmem:[%s7372_s1 + $0x438] sm:$0xff] }
  0xf7   : > { %2029 = vmatprep.mubr.f32.mxu1 %v6425_v41  ;;  %4335 = vmatprep.mubr.f32.mxu0 %v7715_v20  ;;  %v6435_v4 = vpop.f32.mrf.mxu1 }
  0xf8   : > { %v6433_v50 = vsel %vm736_vm10, %v734_v44, %v7717_v32  ;;  %2563 = vmatprep.subr.mxu1 %v7561_v25  ;;  %4375 = vmatpush3.msra.mxu0 %v3817_v33  ;;  %v7721_v32 = vld [vmem:[#allocation34_spill] sm:$0xff]  ;;  %v4654_v44 = vld [vmem:[%s4999_s15 + $0x10] sm:$0xff]  ;;  %vm7730_vm10 = vnez %v7729_v6 }
  0xf9   : > { %7718 = vst [vmem:[#allocation10_spill] sm:$0xff] %v6433_v50  ;;  %2564 = vmatpush2.msra.mxu1 %v3792_v59  ;;  %4376 = vmatprep.subr.mxu0 %v3816_v16  ;;  %v7722_v59 = vld [vmem:[#allocation35_spill] sm:$0xff]  ;;  %v3814_v25 = vld [vmem:[%s7372_s1 + $0x430] sm:$0xff]  ;;  %v7734_v6 = vld [vmem:[#allocation46_spill] sm:$0xff] }
  0xfa   : > { %2030 = vmatmul.mubr.f32.gmra.mxu1 %v6433_v50  ;;  %4336 = vmatmul.mubr.msk.f32.gmra.mxu0 %vm5444_vm8, %v7719_v61  ;;  %v6442_v47 = vpop.f32.mrf.mxu1  ;;  %v7725_v50 = vld [vmem:[#allocation38_spill] sm:$0xff] }
  0xfb   : > { %4338 = vmatprep.mubr.f32.mxu0 %v7721_v32  ;;  %2565 = vmatprep.mubr.f32.mxu1 %v4654_v44  ;;  %v4655_v44 = vld [vmem:[%s4999_s15 + $0x18] sm:$0xff] }
  0xfc   : > { %v6449_v33 = vpop.f32.mrf.mxu1  ;;  %4377 = vmatpush3.msra.mxu0 %v3816_v16 }
  0xfd   : > { %4378 = vmatprep.subr.mxu0 %v3815_v37 }
  0xfe   : > { %4339 = vmatmul.mubr.msk.f32.gmra.mxu0 %vm5494_vm9, %v7722_v59  ;;  %3999 = vmatmul.mubr.msk.f32.vlgmr.msra.gmra.mxu1 %vm5619_vm14, %v5615_v48  ;;  %v7727_v48 = vld [vmem:[#allocation40_spill] sm:$0xff]  ;;  %vm7731_vm14 = vnez %v7614_v53  ;;  %v3811_v53 = vld [vmem:[%s7372_s1 + $0x418] sm:$0xff] }
  0xff   : > { %4341 = vmatprep.mubr.f32.mxu0 %v7724_v18  ;;  %2570 = vmatprep.mubr.f32.mxu1 %v4655_v44  ;;  %v6462_v32 = vpop.f32.mrf.mxu1  ;;  %v4656_v44 = vld [vmem:[%s4999_s15 + $0x20] sm:$0xff]  ;;  %v4657_v59 = vld [vmem:[%s4999_s15 + $0x28] sm:$0xff] }
 0x100   : > { %4379 = vmatpush3.msra.mxu0 %v3815_v37  ;;  %v7728_v37 = vld [vmem:[#allocation41_spill] sm:$0xff] }
 0x101   : > { %v6464_v16 = vpop.f32.mrf.mxu1  ;;  %4380 = vmatprep.subr.mxu0 %v3814_v25 }
 0x102   : > { %4342 = vmatmul.mubr.msk.f32.gmra.mxu0 %vm5544_vm12, %v7725_v50  ;;  %2571 = vmatmul.mubr.f32.gmra.mxu1 %v5664_v62 }
 0x103   : > { %4344 = vmatprep.mubr.f32.mxu0 %v7727_v48  ;;  %2575 = vmatprep.mubr.f32.mxu1 %v4656_v44  ;;  %v3812_v48 = vld [vmem:[%s7372_s1 + $0x420] sm:$0xff]  ;;  %v7732_v44 = vld [vmem:[#allocation44_spill] sm:$0xff] }
 0x104   : > { %v6475_v18 = vpop.f32.mrf.mxu1  ;;  %4381 = vmatpush3.msra.mxu0 %v3814_v25 }
 0x105   : > { %4382 = vmatprep.subr.mxu0 %v3813_v49 }
 0x106   : > { %4345 = vmatmul.mubr.msk.f32.gmra.mxu0 %vm7730_vm10, %v7728_v37  ;;  %4001 = vmatmul.mubr.msk.f32.gmra.mxu1 %vm7731_vm14, %v5708_v11  ;;  %v6483_v62 = vpop.f32.mrf.mxu1  ;;  %v7735_v37 = vld [vmem:[#allocation47_spill] sm:$0xff]  ;;  %v7737_v11 = vld [vmem:[#allocation49_spill] sm:$0xff] }
 0x107   : > { %4347 = vmatprep.mubr.f32.mxu0 %v7732_v44  ;;  %2580 = vmatprep.mubr.f32.mxu1 %v4657_v59  ;;  %vm7736_vm1 = vnez %v7735_v37  ;;  %v4658_v44 = vld [vmem:[%s4999_s15 + $0x30] sm:$0xff]  ;;  %v7743_v37 = vld [vmem:[#allocation54_spill] sm:$0xff] }
 0x108   : > { %4383 = vmatpush3.msra.mxu0 %v3813_v49  ;;  %v7738_v49 = vld [vmem:[#allocation51_spill] sm:$0xff]  ;;  %vm7744_vm13 = vnez %v7743_v37 }
 0x109   : > { %v6490_v25 = vpop.f32.mrf.mxu1  ;;  %4384 = vmatprep.subr.mxu0 %v3812_v48 }
 0x10a   : > { %7733 = vst [vmem:[#allocation11_spill] sm:$0xff] %v6490_v25  ;;  %4348 = vmatmul.mubr.msk.f32.gmra.mxu0 %vm7736_vm1, %v7734_v6  ;;  %2581 = vmatmul.mubr.f32.gmra.mxu1 %v5751_v21  ;;  %v7739_v25 = vld [vmem:[#allocation52_spill] sm:$0xff] }
 0x10b   : > { %4350 = vmatprep.mubr.f32.mxu0 %v7737_v11  ;;  %2585 = vmatprep.mubr.f32.mxu1 %v4658_v44  ;;  %v6501_v59 = vpop.f32.mrf.mxu1  ;;  %vm7740_vm14 = vnez %v7739_v25  ;;  %v3810_v11 = vld [vmem:[%s7372_s1 + $0x410] sm:$0xff]  ;;  %v4659_v44 = vld [vmem:[%s4999_s15 + $0x38] sm:$0xff]  ;;  %v864_v25 = vrot.slane %v6425_v41, 1 }
 0x10c   : > { %4385 = vmatpush3.msra.mxu0 %v3812_v48 }
 0x10d   : > { %4386 = vmatprep.subr.mxu0 %v3811_v53 }
 0x10e   : > { %4351 = vmatmul.mubr.msk.f32.gmra.mxu0 %vm7740_vm14, %v7738_v49  ;;  %4003 = vmatmul.mubr.msk.f32.gmra.mxu1 %vm7741_vm0, %v5786_v57  ;;  %v6509_v21 = vpop.f32.mrf.mxu1  ;;  %v7742_v49 = vld [vmem:[#allocation53_spill] sm:$0xff]  ;;  %v3809_v57 = vld [vmem:[%s7372_s1 + $0x408] sm:$0xff]  ;;  %vm7747_vm0 = vcmp.lt.s32.totalorder %v4876_v7, 7 }
 0x10f   : > { %4353 = vmatprep.mubr.f32.mxu0 %v5693_v27  ;;  %2590 = vmatprep.mubr.f32.mxu1 %v4659_v44 }
 0x110   : > { %v6516_v48 = vpop.f32.mrf.mxu1  ;;  %4387 = vmatpush3.msra.mxu0 %v3811_v53  ;;  %v7746_v53 = vrot.slane %v5688_v8, 1  ;;  %v3808_v8 = vld [vmem:[%s7372_s1 + $0x400] sm:$0xff] }
 0x111   : > { %4388 = vmatprep.subr.mxu0 %v3810_v11 }
 0x112   : > { %4354 = vmatmul.mubr.msk.f32.gmra.mxu0 %vm7744_vm13, %v7742_v49  ;;  %2591 = vmatmul.mubr.f32.gmra.mxu1 %v5816_v17  ;;  %v6534_v41 = vsel %vm7747_vm0, %v7746_v53, %v864_v25  ;;  %v7748_v17 = vld [vmem:[#allocation55_spill] sm:$0xff]  ;;  %vm7750_vm13 = vnez %v7630_v3  ;;  %v4662_v3 = vld [vmem:[%s4999_s15 + $0x50] sm:$0xff] }
 0x113   : > { %4356 = vmatprep.mubr.f32.mxu0 %v5740_v42  ;;  %2595 = vmatprep.mubr.f32.mxu1 %v4660_v31  ;;  %v6528_v44 = vpop.f32.mrf.mxu1  ;;  %vm7749_vm11 = vnez %v7748_v17  ;;  %v4661_v31 = vld [vmem:[%s4999_s15 + $0x48] sm:$0xff] }
 0x114   : > { %7745 = vst [vmem:[#allocation12_spill] sm:$0xff] %v6528_v44  ;;  %4389 = vmatpush3.msra.mxu0 %v3810_v11  ;;  %v7751_v11 = vrot.slane %v5020_v55, 1  ;;  %v7752_v44 = vand.u32 15, %v5942_v2 }
 0x115   : > { %v6536_v37 = vpop.f32.mrf.mxu1  ;;  %4390 = vmatprep.subr.mxu0 %v3809_v57 }
 0x116   : > { %4357 = vmatmul.mubr.msk.f32.gmra.mxu0 %vm7749_vm11, %v5758_v35  ;;  %4005 = vmatmul.mubr.msk.f32.gmra.mxu1 %vm7750_vm13, %v5833_v56  ;;  %v6553_v53 = vsel %vm7747_vm0, %v864_v25, %v7751_v11  ;;  %vm6557_vm11 = vcmp.ne.s32.totalorder %v7752_v44, 15  ;;  %vm1632_vm13 = vcmask 523264   ;;  %vm7755_vm0 = vnez %v7633_v39  ;;  %v4664_v39 = vld [vmem:[%s4999_s15 + $0x60] sm:$0xff] }
 0x117   : > { %4359 = vmatprep.mubr.f32.mxu0 %v6534_v41  ;;  %2600 = vmatprep.mubr.f32.mxu1 %v4661_v31 }
 0x118   : > { %v6561_v56 = vpop.f32.mrf.mxu1  ;;  %4391 = vmatpush3.msra.mxu0 %v3809_v57 }
 0x119   : > { %4392 = vmatprep.subr.mxu0 %v3808_v8 }
 0x11a   : > { %4360 = vmatmul.mubr.msk.f32.gmra.mxu0 %vm6557_vm11, %v6553_v53  ;;  %2601 = vmatmul.mubr.f32.gmra.mxu1 %v5862_v46  ;;  %v6567_v55 = vpop.f32.mrf.mxu1 }
 0x11b   : > { %2605 = vmatprep.mubr.f32.mxu1 %v4662_v3  ;;  %4393 = vmatpush3.msra.mxu0 %v3808_v8  ;;  %v4663_v8 = vld [vmem:[%s4999_s15 + $0x58] sm:$0xff] }
 0x11c   : > { %4394 = vmatprep.mubr.f32.mxu0 %v7690_v12 }
 0x11d   : > { %v1248_v2 = vpop.f32.mrf.mxu0  ;;  %v6571_v25 = vpop.f32.mrf.mxu1 }
 0x11e   : > { %v1474_v57 = vadd.f32 %v6435_v4, %v1248_v2  ;;  %4007 = vmatmul.mubr.msk.f32.gmra.mxu1 %vm7755_vm0, %v5881_v22  ;;  %4395 = vmatmul.mubr.msk.f32.vlgmr.msra.gmra.mxu0 %vm5138_vm2, %v7691_v19  ;;  %vm7756_vm2 = vnez %v7636_v9  ;;  %v4666_v9 = vld [vmem:[%s4999_s15 + $0x70] sm:$0xff] }
 0x11f   : > { %v1250_v46 = vpop.f32.mrf.mxu0  ;;  %v6580_v44 = vpop.f32.mrf.mxu1  ;;  %2610 = vmatprep.mubr.f32.mxu1 %v4663_v8  ;;  %4397 = vmatprep.mubr.f32.mxu0 %v7693_v51 }
 0x120   : > { %1633 = vst.msk [vmem:[#allocation3] sm:$0xff] %vm1632_vm13, %v1474_v57  ;;  %v7761_v57 = vld [vmem:[#allocation68_spill] sm:$0xff] }
 0x121   : > { %v1253_v12 = vpop.f32.mrf.mxu0 }
 0x122   : > { %v1479_v4 = vadd.f32 %v6410_v23, %v1253_v12  ;;  %v6586_v31 = vpop.f32.mrf.mxu1  ;;  %2611 = vmatmul.mubr.f32.gmra.mxu1 %v5909_v45  ;;  %4398 = vmatmul.mubr.msk.f32.gmra.mxu0 %vm5192_vm3, %v7694_v0  ;;  %v4665_v0 = vld [vmem:[%s4999_s15 + $0x68] sm:$0xff]  ;;  %vm7757_vm3 = vnez %v7639_v58  ;;  %v4668_v58 = vld [vmem:[%s4999_s15 + $0x80] sm:$0xff] }
 0x123   : > { %v1255_v22 = vpop.f32.mrf.mxu0  ;;  %2615 = vmatprep.mubr.f32.mxu1 %v4664_v39  ;;  %4400 = vmatprep.mubr.f32.mxu0 %v7696_v24 }
 0x124   : > { %1634 = vst.msk [vmem:[#allocation3 + $0x8] sm:$0xff] %vm1632_vm13, %v1479_v4  ;;  %v6595_v19 = vpop.f32.mrf.mxu1  ;;  %v7762_v4 = vld [vmem:[#allocation56_spill] sm:$0xff]  ;;  %v7763_v22 = vld [vmem:[#allocation35_spill] sm:$0xff] }
 0x125   : > { %v1258_v10 = vpop.f32.mrf.mxu0 }
 0x126   : > { %v1484_v23 = vadd.f32 %v6449_v33, %v1258_v10  ;;  %v6598_v51 = vpop.f32.mrf.mxu1  ;;  %4009 = vmatmul.mubr.msk.f32.gmra.mxu1 %vm7756_vm2, %v5927_v60  ;;  %4401 = vmatmul.mubr.msk.f32.gmra.mxu0 %vm5243_vm4, %v7697_v63  ;;  %vm7758_vm4 = vnez %v7642_v43 }
 0x127   : > { %v1260_v45 = vpop.f32.mrf.mxu0  ;;  %2620 = vmatprep.mubr.f32.mxu1 %v4665_v0  ;;  %4403 = vmatprep.mubr.f32.mxu0 %v7699_v28 }
 0x128   : > { %1635 = vst.msk [vmem:[#allocation3 + $0x10] sm:$0xff] %vm1632_vm13, %v1484_v23  ;;  %v6609_v34 = vpop.f32.mrf.mxu1  ;;  %v4670_v23 = vld [vmem:[%s4999_s15 + $0x90] sm:$0xff] }
 0x129   : > { %v1263_v24 = vpop.f32.mrf.mxu0  ;;  %v7765_v45 = vld [vmem:[#allocation37_spill] sm:$0xff] }
 0x12a   : > { %v1489_v33 = vadd.f32 %v6442_v47, %v1263_v24  ;;  %v6612_v11 = vpop.f32.mrf.mxu1  ;;  %2621 = vmatmul.mubr.f32.gmra.mxu1 %v5958_v5  ;;  %4404 = vmatmul.mubr.msk.f32.gmra.mxu0 %vm5293_vm5, %v7700_v36  ;;  %v4667_v36 = vld [vmem:[%s4999_s15 + $0x78] sm:$0xff]  ;;  %vm3487_vm5 = vcmask 1040384   ;;  %v3861_v24 = vld [vmem:[%s7374_s3 + $0x2] ss:$0 sm:$0xff] }
 0x12b   : > { %v1265_v60 = vpop.f32.mrf.mxu0  ;;  %2625 = vmatprep.mubr.f32.mxu1 %v4666_v9  ;;  %4406 = vmatprep.mubr.f32.mxu0 %v7702_v26 }
 0x12c   : > { %1636 = vst.msk [vmem:[#allocation3 + $0x18] sm:$0xff] %vm1632_vm13, %v1489_v33  ;;  %v6621_v28 = vpop.f32.mrf.mxu1  ;;  %v3857_v33 = vld [vmem:[%s7374_s3] ss:$0 sm:$0xff] }
 0x12d   : > { %v1268_v13 = vpop.f32.mrf.mxu0 }
 0x12e   : > { %v1494_v47 = vadd.f32 %v6464_v16, %v1268_v13  ;;  %v6624_v63 = vpop.f32.mrf.mxu1  ;;  %4011 = vmatmul.mubr.msk.f32.gmra.mxu1 %vm7757_vm3, %v5977_v38  ;;  %4407 = vmatmul.mubr.msk.f32.gmra.mxu0 %vm5347_vm6, %v7703_v30  ;;  %vm3495_vm6 = vcmask 517120  }
 0x12f   : > { %v1270_v5 = vpop.f32.mrf.mxu0  ;;  %2630 = vmatprep.mubr.f32.mxu1 %v4667_v36  ;;  %4409 = vmatprep.mubr.f32.mxu0 %v7705_v52  ;;  %v7767_v36 = vld [vmem:[#allocation58_spill] sm:$0xff] }
 0x130   : > { %1637 = vst.msk [vmem:[#allocation3 + $0x20] sm:$0xff] %vm1632_vm13, %v1494_v47  ;;  %v6635_v40 = vpop.f32.mrf.mxu1  ;;  %v7766_v5 = vld [vmem:[#allocation57_spill] sm:$0xff] }
 0x131   : > { %v1273_v26 = vpop.f32.mrf.mxu0 }
 0x132   : > { %v1499_v16 = vadd.f32 %v6462_v32, %v1273_v26  ;;  %v6638_v3 = vpop.f32.mrf.mxu1  ;;  %2631 = vmatmul.mubr.f32.gmra.mxu1 %v6005_v54  ;;  %4410 = vmatmul.mubr.msk.f32.gmra.mxu0 %vm5390_vm7, %v7712_v15  ;;  %vm7768_vm7 = vnez %v7767_v36 }
 0x133   : > { %v1275_v38 = vpop.f32.mrf.mxu0  ;;  %2635 = vmatprep.mubr.f32.mxu1 %v4668_v58  ;;  %4412 = vmatprep.mubr.f32.mxu0 %v7715_v20  ;;  %v7760_v20 = vld [vmem:[#allocation34_spill] sm:$0xff]  ;;  %v7770_v58 = vld [vmem:[#allocation40_spill] sm:$0xff] }
 0x134   : > { %1638 = vst.msk [vmem:[#allocation3 + $0x28] sm:$0xff] %vm1632_vm13, %v1499_v16  ;;  %v6647_v14 = vpop.f32.mrf.mxu1  ;;  %v4671_v38 = vld [vmem:[%s4999_s15 + $0x98] sm:$0xff] }
 0x135   : > { %v1278_v30 = vpop.f32.mrf.mxu0 }
 0x136   : > { %v1504_v52 = vadd.f32 %v6483_v62, %v1278_v30  ;;  %v6650_v32 = vpop.f32.mrf.mxu1  ;;  %4013 = vmatmul.mubr.msk.f32.gmra.mxu1 %vm7758_vm4, %v6023_v1  ;;  %4413 = vmatmul.mubr.msk.f32.gmra.mxu0 %vm5444_vm8, %v7719_v61  ;;  %v3485_v2 = vpop.permute.xlu0 %3484  ;;  %v3859_v1 = vld [vmem:[%s7374_s3 + $0x1] ss:$0 sm:$0xff] }
 0x137   : > { %v1280_v15 = vpop.f32.mrf.mxu0  ;;  %2640 = vmatprep.mubr.f32.mxu1 %v4669_v29  ;;  %4415 = vmatprep.mubr.f32.mxu0 %v7760_v20  ;;  %v3488_v46 = vsel %vm3487_vm5, %v7761_v57, %v3485_v2  ;;  %v3863_v29 = vld [vmem:[%s7374_s3 + $0x3] ss:$0 sm:$0xff]  ;;  %v7772_v57 = vld [vmem:[#allocation41_spill] sm:$0xff] }
 0x138   : > { %1639 = vst.msk [vmem:[#allocation3 + $0x30] sm:$0xff] %vm1632_vm13, %v1504_v52  ;;  %v6661_v62 = vpop.f32.mrf.mxu1  ;;  %v3512_v61 = vmul.f32 %v3859_v1, %v3488_v46  ;;  %v3529_v60 = vmul.f32 %v3861_v24, %v3488_v46  ;;  %v3494_v9 = vmul.f32 %v3857_v33, %v3488_v46  ;;  %v7771_v2 = vld [vmem:[#allocation59_spill] sm:$0xff] }
 0x139   : > { %v1283_v43 = vpop.f32.mrf.mxu0 }
 0x13a   : > { %v1509_v8 = vadd.f32 %v6475_v18, %v1283_v43  ;;  %v6668_v12 = vpop.f32.mrf.mxu1  ;;  %2641 = vmatmul.mubr.f32.gmra.mxu1 %v7762_v4  ;;  %4416 = vmatmul.mubr.msk.f32.gmra.mxu0 %vm5494_vm9, %v7763_v22  ;;  %v3513_v0 = vsel %vm3495_vm6, %v3512_v61, 0.0  ;;  %v3530_v30 = vsel %vm3495_vm6, %v3529_v60, 0.0  ;;  %v3496_v52 = vsel %vm3495_vm6, %v3494_v9, 0.0  ;;  %v7774_v43 = vld [vmem:[#allocation11_spill] sm:$0xff]  ;;  %v7775_v4 = vld [vmem:[#allocation44_spill] sm:$0xff]  ;;  %v7780_v9 = vld [vmem:[#allocation49_spill] sm:$0xff] }
 0x13b   : > { %v1285_v10 = vpop.f32.mrf.mxu0  ;;  %2645 = vmatprep.mubr.f32.mxu1 %v4670_v23  ;;  %4418 = vmatprep.mubr.f32.mxu0 %v7765_v45  ;;  %v7776_v45 = vld [vmem:[#allocation60_spill] sm:$0xff] }
 0x13c   : > { %1640 = vst.msk [vmem:[#allocation3 + $0x38] sm:$0xff] %vm1632_vm13, %v1509_v8  ;;  %v6678_v18 = vpop.f32.mrf.mxu1  ;;  %3514 = vadd.xlane.f32.xlu1 %v3513_v0  ;;  %3497 = vadd.xlane.f32.xlu0 %v3496_v52  ;;  %v4672_v8 = vld [vmem:[%s4999_s15 + $0xa0] sm:$0xff]  ;;  %v7777_v0 = vld [vmem:[#allocation61_spill] sm:$0xff]  ;;  %v4673_v60 = vld [vmem:[%s4999_s15 + $0xa8] sm:$0xff] }
 0x13d   : > { %vm7778_vm8 = vnez %v7777_v0  ;;  %v4677_v0 = vld [vmem:[%s4999_s15 + $0xc8] sm:$0xff] }
 0x13e   : > { %v1288_v13 = vpop.f32.mrf.mxu0  ;;  %v6686_v47 = vpop.f32.mrf.mxu1  ;;  %4015 = vmatmul.mubr.msk.f32.gmra.mxu1 %vm7768_vm7, %v7766_v5  ;;  %4419 = vmatmul.mubr.msk.f32.gmra.mxu0 %vm5544_vm12, %v7725_v50  ;;  %v3546_v50 = vmul.f32 %v3863_v29, %v3488_v46  ;;  %v7784_v29 = vld [vmem:[#allocation63_spill] sm:$0xff] }
 0x13f   : > { %v1514_v16 = vadd.f32 %v6501_v59, %v1288_v13  ;;  %2650 = vmatprep.mubr.f32.mxu1 %v4671_v38  ;;  %4421 = vmatprep.mubr.f32.mxu0 %v7770_v58  ;;  %v7782_v38 = vld [vmem:[#allocation51_spill] sm:$0xff]  ;;  %v7798_v58 = vld [vmem:[#allocation25_spill] sm:$0xff] }
 0x140   : > { %v1290_v54 = vpop.f32.mrf.mxu0  ;;  %v1878_v15 = vpop.f32.mrf.mxu1  ;;  %3531 = vadd.xlane.f32.xlu1 %v3530_v30  ;;  %v3547_v22 = vsel %vm3495_vm6, %v3546_v50, 0.0 }
 0x141   : > { %1641 = vst.msk [vmem:[#allocation3 + $0x40] sm:$0xff] %vm1632_vm13, %v1514_v16  ;;  %v7781_v16 = vld [vmem:[#allocation62_spill] sm:$0xff] }
 0x142   : > { %v1293_v59 = vpop.f32.mrf.mxu0  ;;  %v6703_v20 = vpop.f32.mrf.mxu1  ;;  %2651 = vmatmul.mubr.f32.gmra.mxu1 %v7771_v2  ;;  %4422 = vmatmul.mubr.msk.f32.gmra.mxu0 %vm7730_vm10, %v7772_v57  ;;  %v4675_v2 = vld [vmem:[%s4999_s15 + $0xb8] sm:$0xff] }
 0x143   : > { %v1519_v61 = vadd.f32 %v7774_v43, %v1293_v59  ;;  %2655 = vmatprep.mubr.f32.mxu1 %v4672_v8  ;;  %4424 = vmatprep.mubr.f32.mxu0 %v7775_v4  ;;  %v7786_v59 = vld [vmem:[#allocation54_spill] sm:$0xff]  ;;  %v7789_v8 = vld [vmem:[#allocation55_spill] sm:$0xff] }
 0x144   : > { %v1295_v39 = vpop.f32.mrf.mxu0  ;;  %v1883_v46 = vpop.f32.mrf.mxu1  ;;  %3548 = vadd.xlane.f32.xlu1 %v3547_v22  ;;  %vm7787_vm9 = vnez %v7786_v59  ;;  %vm7790_vm12 = vnez %v7789_v8  ;;  %v4676_v4 = vld [vmem:[%s4999_s15 + $0xc0] sm:$0xff]  ;;  %v4681_v8 = vld [vmem:[%s4999_s15 + $0xe8] sm:$0xff] }
 0x145   : > { %1642 = vst.msk [vmem:[#allocation3 + $0x48] sm:$0xff] %vm1632_vm13, %v1519_v61  ;;  %v7788_v61 = vld [vmem:[#allocation65_spill] sm:$0xff]  ;;  %v4680_v59 = vld [vmem:[%s4999_s15 + $0xe0] sm:$0xff] }
 0x146   : > { %v1298_v10 = vpop.f32.mrf.mxu0  ;;  %v6714_v23 = vpop.f32.mrf.mxu1  ;;  %4017 = vmatmul.mubr.msk.f32.gmra.mxu1 %vm7778_vm8, %v7776_v45  ;;  %4425 = vmatmul.mubr.msk.f32.gmra.mxu0 %vm7736_vm1, %v7734_v6  ;;  %v7793_v45 = vld [vmem:[#allocation67_spill] sm:$0xff] }
 0x147   : > { %v1524_v33 = vadd.f32 %v6516_v48, %v1298_v10  ;;  %2660 = vmatprep.mubr.f32.mxu1 %v4673_v60  ;;  %4427 = vmatprep.mubr.f32.mxu0 %v7780_v9  ;;  %v4674_v48 = vld [vmem:[%s4999_s15 + $0xb0] sm:$0xff]  ;;  %v7792_v10 = vld [vmem:[#allocation66_spill] sm:$0xff] }
 0x148   : > { %v1300_v13 = vpop.f32.mrf.mxu0  ;;  %v1888_v5 = vpop.f32.mrf.mxu1 }
 0x149   : > { %1643 = vst.msk [vmem:[#allocation3 + $0x50] sm:$0xff] %vm1632_vm13, %v1524_v33  ;;  %v7796_v13 = vld [vmem:[#allocation69_spill] sm:$0xff] }
 0x14a   : > { %v1303_v36 = vpop.f32.mrf.mxu0  ;;  %v6726_v26 = vpop.f32.mrf.mxu1  ;;  %2661 = vmatmul.mubr.f32.gmra.mxu1 %v7781_v16  ;;  %4428 = vmatmul.mubr.msk.f32.gmra.mxu0 %vm7740_vm14, %v7782_v38  ;;  %v7797_v38 = vld [vmem:[#allocation43_spill] sm:$0xff] }
 0x14b   : > { %v1529_v6 = vadd.f32 %v6509_v21, %v1303_v36  ;;  %2665 = vmatprep.mubr.f32.mxu1 %v4674_v48  ;;  %4430 = vmatprep.mubr.f32.mxu0 %v5693_v27  ;;  %v4679_v48 = vld [vmem:[%s4999_s15 + $0xd8] sm:$0xff] }
 0x14c   : > { %v1305_v30 = vpop.f32.mrf.mxu0  ;;  %v1893_v52 = vpop.f32.mrf.mxu1 }
 0x14d   : > { %1644 = vst.msk [vmem:[#allocation3 + $0x58] sm:$0xff] %vm1632_vm13, %v1529_v6 }
 0x14e   : > { %v1308_v54 = vpop.f32.mrf.mxu0  ;;  %v6736_v15 = vpop.f32.mrf.mxu1  ;;  %4019 = vmatmul.mubr.msk.f32.gmra.mxu1 %vm6162_vm15, %v7784_v29  ;;  %4431 = vmatmul.mubr.msk.f32.gmra.mxu0 %vm7787_vm9, %v7742_v49  ;;  %v7791_v49 = vld [vmem:[#allocation12_spill] sm:$0xff]  ;;  %vm7794_vm15 = vnez %v7793_v45  ;;  %v7800_v29 = vld [vmem:[#allocation45_spill] sm:$0xff] }
 0x14f   : > { %v1534_v21 = vadd.f32 %v6536_v37, %v1308_v54  ;;  %2670 = vmatprep.mubr.f32.mxu1 %v4675_v2  ;;  %4433 = vmatprep.mubr.f32.mxu0 %v5740_v42 }
 0x150   : > { %v1310_v27 = vpop.f32.mrf.mxu0  ;;  %v1898_v57 = vpop.f32.mrf.mxu1 }
 0x151   : > { %1645 = vst.msk [vmem:[#allocation3 + $0x60] sm:$0xff] %vm1632_vm13, %v1534_v21  ;;  %v7801_v57 = vld [vmem:[#allocation48_spill] sm:$0xff] }
 0x152   : > { %v1313_v1 = vpop.f32.mrf.mxu0  ;;  %v6748_v43 = vpop.f32.mrf.mxu1  ;;  %2671 = vmatmul.mubr.f32.gmra.mxu1 %v7788_v61  ;;  %4434 = vmatmul.mubr.msk.f32.gmra.mxu0 %vm7790_vm12, %v5758_v35 }
 0x153   : > { %v1539_v37 = vadd.f32 %v7791_v49, %v1313_v1  ;;  %2675 = vmatprep.mubr.f32.mxu1 %v4676_v4  ;;  %4436 = vmatprep.mubr.f32.mxu0 %v6534_v41  ;;  %v7795_v41 = vmov 0.0   ;;  %v7802_v1 = vld [vmem:[#allocation29_spill] sm:$0xff] }
 0x154   : > { %v1315_v42 = vpop.f32.mrf.mxu0  ;;  %v1903_v22 = vpop.f32.mrf.mxu1  ;;  %vm7803_vm1 = vnez %v7802_v1 }
 0x155   : > { %1646 = vst.msk [vmem:[#allocation3 + $0x68] sm:$0xff] %vm1632_vm13, %v1539_v37  ;;  %v7804_v42 = vld [vmem:[#allocation50_spill] sm:$0xff] }
 0x156   : > { %v1318_v39 = vpop.f32.mrf.mxu0  ;;  %v6758_v46 = vpop.f32.mrf.mxu1  ;;  %4021 = vmatmul.mubr.msk.f32.gmra.mxu1 %vm7794_vm15, %v7792_v10  ;;  %4437 = vmatmul.mubr.msk.f32.gmra.mxu0 %vm6557_vm11, %v6553_v53  ;;  %v4678_v53 = vld [vmem:[%s4999_s15 + $0xd0] sm:$0xff]  ;;  %vm7799_vm11 = vnez %v7798_v58 }
 0x157   : > { %v1544_v35 = vadd.f32 %v6567_v55, %v1318_v39  ;;  %2680 = vmatprep.mubr.f32.mxu1 %v4677_v0  ;;  %4439 = vmatprep.mubr.f32.mxu0 %v7795_v41  ;;  %v4682_v39 = vld [vmem:[%s4999_s15 + $0xf0] sm:$0xff]  ;;  %v7805_v0 = vld [vmem:[#allocation7_spill] sm:$0xff] }
 0x158   : > { %v1320_v24 = vpop.f32.mrf.mxu0  ;;  %v1908_v33 = vpop.f32.mrf.mxu1 }
 0x159   : > { %1647 = vst.msk [vmem:[#allocation3 + $0x70] sm:$0xff] %vm1632_vm13, %v1544_v35  ;;  %v7806_v24 = vld [vmem:[#allocation8_spill] sm:$0xff] }
 0x15a   : > { %v1323_v60 = vpop.f32.mrf.mxu0  ;;  %v6770_v9 = vpop.f32.mrf.mxu1  ;;  %2681 = vmatmul.mubr.f32.gmra.mxu1 %v7796_v13  ;;  %4440 = vmatmul.mubr.f32.gmra.mxu0 %v7795_v41  ;;  %vm7807_vm10 = vnez %v7806_v24 }
 0x15b   : > { %v1549_v17 = vadd.f32 %v6561_v56, %v1323_v60  ;;  %2685 = vmatprep.mubr.f32.mxu1 %v4678_v53  ;;  %v7808_v60 = vld [vmem:[#allocation9_spill] sm:$0xff] }
 0x15c   : > { %v1325_v55 = vpop.f32.mrf.mxu0  ;;  %v1913_v5 = vpop.f32.mrf.mxu1 }
 0x15d   : > { %1648 = vst.msk [vmem:[#allocation3 + $0x78] sm:$0xff] %vm1632_vm13, %v1549_v17  ;;  %v7809_v55 = vld [vmem:[#allocation10_spill] sm:$0xff] }
 0x15e   : > { %v1328_v36 = vpop.f32.mrf.mxu0  ;;  %v6777_v16 = vpop.f32.mrf.mxu1  ;;  %4023 = vmatmul.mubr.msk.f32.gmra.mxu1 %vm7799_vm11, %v7797_v38 }
 0x15f   : > { %v1554_v6 = vadd.f32 %v6580_v44, %v1328_v36  ;;  %2690 = vmatprep.mubr.f32.mxu1 %v4679_v48 }
 0x160   : > { %v1330_v30 = vpop.f32.mrf.mxu0  ;;  %v1918_v56 = vpop.f32.mrf.mxu1 }
 0x161   : > { %1649 = vst.msk [vmem:[#allocation3 + $0x80] sm:$0xff] %vm1632_vm13, %v1554_v6 }
 0x162   : > { %v1333_v52 = vpop.f32.mrf.mxu0  ;;  %v6785_v54 = vpop.f32.mrf.mxu1  ;;  %2691 = vmatmul.mubr.f32.gmra.mxu1 %v7800_v29 }
 0x163   : > { %v1559_v50 = vadd.f32 %v6571_v25, %v1333_v52  ;;  %2695 = vmatprep.mubr.f32.mxu1 %v4680_v59 }
 0x164   : > { %v1335_v21 = vpop.f32.mrf.mxu0  ;;  %v1923_v2 = vpop.f32.mrf.mxu1 }
 0x165   : > { %1650 = vst.msk [vmem:[#allocation3 + $0x88] sm:$0xff] %vm1632_vm13, %v1559_v50 }
 0x166   : > { %v1338_v44 = vpop.f32.mrf.mxu0  ;;  %v6791_v27 = vpop.f32.mrf.mxu1  ;;  %4025 = vmatmul.mubr.msk.f32.gmra.mxu1 %vm7803_vm1, %v7801_v57 }
 0x167   : > { %v1564_v61 = vadd.f32 %v6595_v19, %v1338_v44  ;;  %2700 = vmatprep.mubr.f32.mxu1 %v4681_v8 }
 0x168   : > { %v1340_v49 = vpop.f32.mrf.mxu0  ;;  %v1928_v25 = vpop.f32.mrf.mxu1 }
 0x169   : > { %1651 = vst.msk [vmem:[#allocation3 + $0x90] sm:$0xff] %vm1632_vm13, %v1564_v61 }
 0x16a   : > { %v1343_v37 = vpop.f32.mrf.mxu0  ;;  %v6799_v4 = vpop.f32.mrf.mxu1  ;;  %2701 = vmatmul.mubr.f32.gmra.mxu1 %v7804_v42 }
 0x16b   : > { %v1569_v22 = vadd.f32 %v6586_v31, %v1343_v37  ;;  %2705 = vmatprep.mubr.f32.mxu1 %v4682_v39 }
 0x16c   : > { %v1345_v10 = vpop.f32.mrf.mxu0  ;;  %v1933_v45 = vpop.f32.mrf.mxu1 }
 0x16d   : > { %1652 = vst.msk [vmem:[#allocation3 + $0x98] sm:$0xff] %vm1632_vm13, %v1569_v22 }
 0x16e   : > { %v1348_v19 = vpop.f32.mrf.mxu0  ;;  %v6805_v35 = vpop.f32.mrf.mxu1  ;;  %4027 = vmatmul.mubr.msk.f32.gmra.mxu1 %vm7807_vm10, %v7805_v0 }
 0x16f   : > { %v1574_v33 = vadd.f32 %v6609_v34, %v1348_v19  ;;  %2710 = vmatprep.mubr.f32.mxu1 %v7808_v60 }
 0x170   : > { %v1350_v13 = vpop.f32.mrf.mxu0  ;;  %v1938_v17 = vpop.f32.mrf.mxu1 }
 0x171   : > { %1653 = vst.msk [vmem:[#allocation3 + $0xa0] sm:$0xff] %vm1632_vm13, %v1574_v33 }
 0x172   : > { %v1353_v31 = vpop.f32.mrf.mxu0  ;;  %v6813_v53 = vpop.f32.mrf.mxu1  ;;  %2711 = vmatmul.mubr.f32.gmra.mxu1 %v7809_v55 }
 0x173   : > { %v1579_v5 = vadd.f32 %v6598_v51, %v1353_v31  ;;  %2715 = vmatprep.mubr.f32.mxu1 %v7795_v41 }
 0x174   : > { %v1355_v36 = vpop.f32.mrf.mxu0  ;;  %v1943_v38 = vpop.f32.mrf.mxu1 }
 0x175   : > { %1654 = vst.msk [vmem:[#allocation3 + $0xa8] sm:$0xff] %vm1632_vm13, %v1579_v5 }
 0x176   : > { %v1358_v34 = vpop.f32.mrf.mxu0  ;;  %v6819_v58 = vpop.f32.mrf.mxu1  ;;  %2716 = vmatmul.mubr.f32.gmra.mxu1 %v7795_v41 }
 0x177   : > { %v1584_v6 = vadd.f32 %v6621_v28, %v1358_v34  ;;  %2720 = vmatprep.mubr.f32.mxu1 %v7795_v41 }
 0x178   : > { %v1360_v48 = vpop.f32.mrf.mxu0  ;;  %v1948_v30 = vpop.f32.mrf.mxu1 }
 0x179   : > { %1655 = vst.msk [vmem:[#allocation3 + $0xb0] sm:$0xff] %vm1632_vm13, %v1584_v6 }
 0x17a   : > { %v1363_v51 = vpop.f32.mrf.mxu0  ;;  %v6825_v56 = vpop.f32.mrf.mxu1  ;;  %2721 = vmatmul.mubr.f32.gmra.mxu1 %v7795_v41 }
 0x17b   : > { %v1589_v52 = vadd.f32 %v6612_v11, %v1363_v51 }
 0x17c   : > { %v1365_v29 = vpop.f32.mrf.mxu0  ;;  %v1953_v50 = vpop.f32.mrf.mxu1 }
 0x17d   : > { %1656 = vst.msk [vmem:[#allocation3 + $0xb8] sm:$0xff] %vm1632_vm13, %v1589_v52  ;;  %v2261_v29 = vld [vmem:[#allocation3 + $0x8] sm:$0xff] }
 0x17e   : > { %v1368_v59 = vpop.f32.mrf.mxu0  ;;  %v6830_v21 = vpop.f32.mrf.mxu1 }
 0x17f   : > { %v1594_v28 = vadd.f32 %v6635_v40, %v1368_v59 }
 0x180   : > { %v1370_v2 = vpop.f32.mrf.mxu0  ;;  %v1958_v44 = vpop.f32.mrf.mxu1 }
 0x181   : > { %1657 = vst.msk [vmem:[#allocation3 + $0xc0] sm:$0xff] %vm1632_vm13, %v1594_v28  ;;  %v2260_v2 = vld [vmem:[#allocation3] sm:$0xff] }
 0x182   : > { %v1373_v57 = vpop.f32.mrf.mxu0  ;;  %v6834_v1 = vpop.f32.mrf.mxu1 }
 0x183   : > { %v1599_v41 = vadd.f32 %v6624_v63, %v1373_v57 }
 0x184   : > { %v1375_v61 = vpop.f32.mrf.mxu0  ;;  %v1963_v11 = vpop.f32.mrf.mxu1 }
 0x185   : > { %1658 = vst.msk [vmem:[#allocation3 + $0xc8] sm:$0xff] %vm1632_vm13, %v1599_v41  ;;  %v2263_v61 = vld [vmem:[#allocation3 + $0x18] sm:$0xff] }
 0x186   : > { %v1378_v8 = vpop.f32.mrf.mxu0  ;;  %v6838_v49 = vpop.f32.mrf.mxu1 }
 0x187   : > { %v1604_v25 = vadd.f32 %v6647_v14, %v1378_v8 }
 0x188   : > { %v1380_v37 = vpop.f32.mrf.mxu0  ;;  %v1968_v40 = vpop.f32.mrf.mxu1 }
 0x189   : > { %1659 = vst.msk [vmem:[#allocation3 + $0xd0] sm:$0xff] %vm1632_vm13, %v1604_v25  ;;  %v2262_v37 = vld [vmem:[#allocation3 + $0x10] sm:$0xff] }
 0x18a   : > { %v1383_v42 = vpop.f32.mrf.mxu0  ;;  %v6842_v22 = vpop.f32.mrf.mxu1 }
 0x18b   : > { %v1609_v39 = vadd.f32 %v6638_v3, %v1383_v42 }
 0x18c   : > { %v1385_v10 = vpop.f32.mrf.mxu0  ;;  %v1973_v63 = vpop.f32.mrf.mxu1 }
 0x18d   : > { %1660 = vst.msk [vmem:[#allocation3 + $0xd8] sm:$0xff] %vm1632_vm13, %v1609_v39  ;;  %v2265_v10 = vld [vmem:[#allocation3 + $0x28] sm:$0xff] }
 0x18e   : > { %v1388_v45 = vpop.f32.mrf.mxu0  ;;  %v6846_v19 = vpop.f32.mrf.mxu1 }
 0x18f   : > { %v1614_v0 = vadd.f32 %v6661_v62, %v1388_v45 }
 0x190   : > { %v1390_v24 = vpop.f32.mrf.mxu0  ;;  %v1978_v14 = vpop.f32.mrf.mxu1 }
 0x191   : > { %1661 = vst.msk [vmem:[#allocation3 + $0xe0] sm:$0xff] %vm1632_vm13, %v1614_v0  ;;  %v2264_v24 = vld [vmem:[#allocation3 + $0x20] sm:$0xff] }
 0x192   : > { %v1393_v33 = vpop.f32.mrf.mxu0  ;;  %v6850_v60 = vpop.f32.mrf.mxu1 }
 0x193   : > { %v1619_v13 = vadd.f32 %v6650_v32, %v1393_v33 }
 0x194   : > { %v1395_v17 = vpop.f32.mrf.mxu0  ;;  %v1983_v3 = vpop.f32.mrf.mxu1 }
 0x195   : > { %1662 = vst.msk [vmem:[#allocation3 + $0xe8] sm:$0xff] %vm1632_vm13, %v1619_v13  ;;  %v2267_v17 = vld [vmem:[#allocation3 + $0x38] sm:$0xff] }
 0x196   : > { %v1398_v31 = vpop.f32.mrf.mxu0  ;;  %v6854_v55 = vpop.f32.mrf.mxu1 }
 0x197   : > { %v1624_v5 = vadd.f32 %v6678_v18, %v1398_v31 }
 0x198   : > { %v1400_v36 = vpop.f32.mrf.mxu0  ;;  %v1988_v62 = vpop.f32.mrf.mxu1 }
 0x199   : > { %1663 = vst.msk [vmem:[#allocation3 + $0xf0] sm:$0xff] %vm1632_vm13, %v1624_v5  ;;  %v2266_v36 = vld [vmem:[#allocation3 + $0x30] sm:$0xff] }
 0x19a   : > { %v1403_v38 = vpop.f32.mrf.mxu0  ;;  %v6858_v34 = vpop.f32.mrf.mxu1 }
 0x19b   : > { %v1629_v6 = vadd.f32 %v6668_v12, %v1403_v38 }
 0x19c   : > { %v1405_v48 = vpop.f32.mrf.mxu0  ;;  %v1993_v32 = vpop.f32.mrf.mxu1 }
 0x19d   : > { %1664 = vst.msk [vmem:[#allocation3 + $0xf8] sm:$0xff] %vm1632_vm13, %v1629_v6  ;;  %v2269_v48 = vld [vmem:[#allocation3 + $0x48] sm:$0xff] }
 0x19e   : > { %v6862_v30 = vpop.f32.mrf.mxu1  ;;  %v4316_v51 = vpop.f32.mrf.mxu0 }
 0x19f   : > { %v2107_v52 = vadd.f32 %v4316_v51, %v6703_v20 }
 0x1a0   : > { %v1998_v18 = vpop.f32.mrf.mxu1  ;;  %v2101_v50 = vpop.f32.mrf.mxu0 }
 0x1a1   : > { %v2293_v59 = vadd.f32 %v2261_v29, %v2107_v52  ;;  %v2102_v28 = vadd.f32 %v2101_v50, %v6686_v47  ;;  %v2268_v29 = vld [vmem:[#allocation3 + $0x40] sm:$0xff] }
 0x1a2   : > { %v6866_v44 = vpop.f32.mrf.mxu1  ;;  %v4319_v57 = vpop.f32.mrf.mxu0 }
 0x1a3   : > { %2325 = vst.msk [vmem:[#allocation3 + $0x8] sm:$0xff] %vm1632_vm13, %v2293_v59  ;;  %v2292_v12 = vadd.f32 %v2260_v2, %v2102_v28  ;;  %v2117_v41 = vadd.f32 %v4319_v57, %v6726_v26  ;;  %v2271_v28 = vld [vmem:[#allocation3 + $0x58] sm:$0xff] }
 0x1a4   : > { %v2003_v11 = vpop.f32.mrf.mxu1  ;;  %v2111_v8 = vpop.f32.mrf.mxu0 }
 0x1a5   : > { %2324 = vst.msk [vmem:[#allocation3] sm:$0xff] %vm1632_vm13, %v2292_v12  ;;  %v2295_v20 = vadd.f32 %v2263_v61, %v2117_v41  ;;  %v2112_v25 = vadd.f32 %v2111_v8, %v6714_v23  ;;  %v2270_v41 = vld [vmem:[#allocation3 + $0x50] sm:$0xff] }
 0x1a6   : > { %v6872_v40 = vpop.f32.mrf.mxu1  ;;  %v4322_v47 = vpop.f32.mrf.mxu0 }
 0x1a7   : > { %2327 = vst.msk [vmem:[#allocation3 + $0x18] sm:$0xff] %vm1632_vm13, %v2295_v20  ;;  %v2294_v42 = vadd.f32 %v2262_v37, %v2112_v25  ;;  %v2127_v39 = vadd.f32 %v4322_v47, %v6748_v43  ;;  %v2273_v20 = vld [vmem:[#allocation3 + $0x68] sm:$0xff] }
 0x1a8   : > { %v2008_v63 = vpop.f32.mrf.mxu1  ;;  %v2121_v26 = vpop.f32.mrf.mxu0 }
 0x1a9   : > { %2326 = vst.msk [vmem:[#allocation3 + $0x10] sm:$0xff] %vm1632_vm13, %v2294_v42  ;;  %v2297_v45 = vadd.f32 %v2265_v10, %v2127_v39  ;;  %v2122_v0 = vadd.f32 %v2121_v26, %v6736_v15  ;;  %v2272_v42 = vld [vmem:[#allocation3 + $0x60] sm:$0xff]  ;;  %v2275_v26 = vld [vmem:[#allocation3 + $0x78] sm:$0xff] }
 0x1aa   : > { %v6878_v14 = vpop.f32.mrf.mxu1  ;;  %v4325_v23 = vpop.f32.mrf.mxu0 }
 0x1ab   : > { %2329 = vst.msk [vmem:[#allocation3 + $0x28] sm:$0xff] %vm1632_vm13, %v2297_v45  ;;  %v2296_v33 = vadd.f32 %v2264_v24, %v2122_v0  ;;  %v2137_v13 = vadd.f32 %v4325_v23, %v6770_v9  ;;  %v2274_v23 = vld [vmem:[#allocation3 + $0x70] sm:$0xff] }
 0x1ac   : > { %v2013_v3 = vpop.f32.mrf.mxu1  ;;  %v2131_v43 = vpop.f32.mrf.mxu0 }
 0x1ad   : > { %2328 = vst.msk [vmem:[#allocation3 + $0x20] sm:$0xff] %vm1632_vm13, %v2296_v33  ;;  %v2299_v31 = vadd.f32 %v2267_v17, %v2137_v13  ;;  %v2132_v5 = vadd.f32 %v2131_v43, %v6758_v46  ;;  %v2277_v3 = vld [vmem:[#allocation3 + $0x88] sm:$0xff] }
 0x1ae   : > { %v6884_v62 = vpop.f32.mrf.mxu1  ;;  %v4328_v15 = vpop.f32.mrf.mxu0 }
 0x1af   : > { %2331 = vst.msk [vmem:[#allocation3 + $0x38] sm:$0xff] %vm1632_vm13, %v2299_v31  ;;  %v2298_v38 = vadd.f32 %v2266_v36, %v2132_v5  ;;  %v2147_v6 = vadd.f32 %v4328_v15, %v6785_v54  ;;  %v2276_v36 = vld [vmem:[#allocation3 + $0x80] sm:$0xff] }
 0x1b0   : > { %v2018_v32 = vpop.f32.mrf.mxu1  ;;  %v2141_v9 = vpop.f32.mrf.mxu0 }
 0x1b1   : > { %2330 = vst.msk [vmem:[#allocation3 + $0x30] sm:$0xff] %vm1632_vm13, %v2298_v38  ;;  %v2301_v51 = vadd.f32 %v2269_v48, %v2147_v6  ;;  %v2142_v52 = vadd.f32 %v2141_v9, %v6777_v16  ;;  %v2279_v48 = vld [vmem:[#allocation3 + $0x98] sm:$0xff] }
 0x1b2   : > { %v6890_v18 = vpop.f32.mrf.mxu1  ;;  %v4331_v46 = vpop.f32.mrf.mxu0 }
 0x1b3   : > { %2333 = vst.msk [vmem:[#allocation3 + $0x48] sm:$0xff] %vm1632_vm13, %v2301_v51  ;;  %v2300_v50 = vadd.f32 %v2268_v29, %v2142_v52  ;;  %v2157_v59 = vadd.f32 %v4331_v46, %v6799_v4  ;;  %v2278_v52 = vld [vmem:[#allocation3 + $0x90] sm:$0xff] }
 0x1b4   : > { %v2023_v2 = vpop.f32.mrf.mxu1  ;;  %v2151_v54 = vpop.f32.mrf.mxu0 }
 0x1b5   : > { %2332 = vst.msk [vmem:[#allocation3 + $0x40] sm:$0xff] %vm1632_vm13, %v2300_v50  ;;  %v2303_v57 = vadd.f32 %v2271_v28, %v2157_v59  ;;  %v2152_v12 = vadd.f32 %v2151_v54, %v6791_v27  ;;  %v2281_v59 = vld [vmem:[#allocation3 + $0xa8] sm:$0xff] }
 0x1b6   : > { %v6896_v61 = vpop.f32.mrf.mxu1  ;;  %v4334_v16 = vpop.f32.mrf.mxu0 }
 0x1b7   : > { %2335 = vst.msk [vmem:[#allocation3 + $0x58] sm:$0xff] %vm1632_vm13, %v2303_v57  ;;  %v2302_v11 = vadd.f32 %v2270_v41, %v2152_v12  ;;  %v2167_v8 = vadd.f32 %v4334_v16, %v6813_v53  ;;  %v2280_v57 = vld [vmem:[#allocation3 + $0xa0] sm:$0xff] }
 0x1b8   : > { %v2028_v25 = vpop.f32.mrf.mxu1  ;;  %v2161_v4 = vpop.f32.mrf.mxu0 }
 0x1b9   : > { %2334 = vst.msk [vmem:[#allocation3 + $0x50] sm:$0xff] %vm1632_vm13, %v2302_v11  ;;  %v2305_v37 = vadd.f32 %v2273_v20, %v2167_v8  ;;  %v2162_v47 = vadd.f32 %v2161_v4, %v6805_v35  ;;  %v2283_v11 = vld [vmem:[#allocation3 + $0xb8] sm:$0xff]  ;;  %v2282_v4 = vld [vmem:[#allocation3 + $0xb0] sm:$0xff] }
 0x1ba   : > { %v6902_v39 = vpop.f32.mrf.mxu1  ;;  %v4337_v27 = vpop.f32.mrf.mxu0 }
 0x1bb   : > { %2337 = vst.msk [vmem:[#allocation3 + $0x68] sm:$0xff] %vm1632_vm13, %v2305_v37  ;;  %v2304_v10 = vadd.f32 %v2272_v42, %v2162_v47  ;;  %v2177_v63 = vadd.f32 %v4337_v27, %v6825_v56  ;;  %v2285_v27 = vld [vmem:[#allocation3 + $0xc8] sm:$0xff] }
 0x1bc   : > { %v2033_v45 = vpop.f32.mrf.mxu1  ;;  %v2171_v53 = vpop.f32.mrf.mxu0 }
 0x1bd   : > { %2336 = vst.msk [vmem:[#allocation3 + $0x60] sm:$0xff] %vm1632_vm13, %v2304_v10  ;;  %v2307_v0 = vadd.f32 %v2275_v26, %v2177_v63  ;;  %v2172_v24 = vadd.f32 %v2171_v53, %v6819_v58  ;;  %v2284_v45 = vld [vmem:[#allocation3 + $0xc0] sm:$0xff] }
 0x1be   : > { %v4340_v33 = vpop.f32.mrf.mxu0  ;;  %v6908_v35 = vpop.f32.mrf.mxu1 }
 0x1bf   : > { %2339 = vst.msk [vmem:[#allocation3 + $0x78] sm:$0xff] %vm1632_vm13, %v2307_v0  ;;  %v2306_v13 = vadd.f32 %v2274_v23, %v2172_v24  ;;  %v2187_v17 = vadd.f32 %v4340_v33, %v6834_v1  ;;  %v2287_v23 = vld [vmem:[#allocation3 + $0xd8] sm:$0xff] }
 0x1c0   : > { %v2181_v43 = vpop.f32.mrf.mxu0  ;;  %v2569_v56 = vpop.f32.mrf.mxu1 }
 0x1c1   : > { %2338 = vst.msk [vmem:[#allocation3 + $0x70] sm:$0xff] %vm1632_vm13, %v2306_v13  ;;  %v2309_v31 = vadd.f32 %v2277_v3, %v2187_v17  ;;  %v2182_v5 = vadd.f32 %v2181_v43, %v6830_v21  ;;  %v2286_v3 = vld [vmem:[#allocation3 + $0xd0] sm:$0xff] }
 0x1c2   : > { %v4343_v15 = vpop.f32.mrf.mxu0  ;;  %v6914_v58 = vpop.f32.mrf.mxu1 }
 0x1c3   : > { %2341 = vst.msk [vmem:[#allocation3 + $0x88] sm:$0xff] %vm1632_vm13, %v2309_v31  ;;  %v2308_v38 = vadd.f32 %v2276_v36, %v2182_v5  ;;  %v2197_v6 = vadd.f32 %v4343_v15, %v6842_v22  ;;  %v2289_v5 = vld [vmem:[#allocation3 + $0xe8] sm:$0xff] }
 0x1c4   : > { %v2191_v32 = vpop.f32.mrf.mxu0  ;;  %v2574_v1 = vpop.f32.mrf.mxu1 }
 0x1c5   : > { %2340 = vst.msk [vmem:[#allocation3 + $0x80] sm:$0xff] %vm1632_vm13, %v2308_v38  ;;  %v2311_v9 = vadd.f32 %v2279_v48, %v2197_v6  ;;  %v2192_v51 = vadd.f32 %v2191_v32, %v6838_v49  ;;  %v2288_v6 = vld [vmem:[#allocation3 + $0xe0] sm:$0xff] }
 0x1c6   : > { %v4346_v29 = vpop.f32.mrf.mxu0  ;;  %v6920_v21 = vpop.f32.mrf.mxu1 }
 0x1c7   : > { %2343 = vst.msk [vmem:[#allocation3 + $0x98] sm:$0xff] %vm1632_vm13, %v2311_v9  ;;  %v2310_v46 = vadd.f32 %v2278_v52, %v2192_v51  ;;  %v2207_v50 = vadd.f32 %v4346_v29, %v6850_v60  ;;  %v2291_v9 = vld [vmem:[#allocation3 + $0xf8] sm:$0xff] }
 0x1c8   : > { %v2201_v28 = vpop.f32.mrf.mxu0  ;;  %v2579_v22 = vpop.f32.mrf.mxu1 }
 0x1c9   : > { %2342 = vst.msk [vmem:[#allocation3 + $0x90] sm:$0xff] %vm1632_vm13, %v2310_v46  ;;  %v2313_v2 = vadd.f32 %v2281_v59, %v2207_v50  ;;  %v2202_v54 = vadd.f32 %v2201_v28, %v6846_v19  ;;  %v2290_v46 = vld [vmem:[#allocation3 + $0xf0] sm:$0xff]  ;;  %v2952_v22 = vld [vmem:[#allocation3 + $0x8] sm:$0xff] }
 0x1ca   : > { %v4349_v12 = vpop.f32.mrf.mxu0  ;;  %v6926_v49 = vpop.f32.mrf.mxu1 }
 0x1cb   : > { %2345 = vst.msk [vmem:[#allocation3 + $0xa8] sm:$0xff] %vm1632_vm13, %v2313_v2  ;;  %v2312_v41 = vadd.f32 %v2280_v57, %v2202_v54  ;;  %v2217_v16 = vadd.f32 %v4349_v12, %v6858_v34  ;;  %v2951_v12 = vld [vmem:[#allocation3] sm:$0xff] }
 0x1cc   : > { %v2211_v8 = vpop.f32.mrf.mxu0  ;;  %v2584_v60 = vpop.f32.mrf.mxu1 }
 0x1cd   : > { %2344 = vst.msk [vmem:[#allocation3 + $0xa0] sm:$0xff] %vm1632_vm13, %v2312_v41  ;;  %v2315_v20 = vadd.f32 %v2283_v11, %v2217_v16  ;;  %v2212_v25 = vadd.f32 %v2211_v8, %v6854_v55  ;;  %v2954_v8 = vld [vmem:[#allocation3 + $0x18] sm:$0xff] }
 0x1ce   : > { %v4352_v37 = vpop.f32.mrf.mxu0  ;;  %v6932_v19 = vpop.f32.mrf.mxu1 }
 0x1cf   : > { %2347 = vst.msk [vmem:[#allocation3 + $0xb8] sm:$0xff] %vm1632_vm13, %v2315_v20  ;;  %v2314_v47 = vadd.f32 %v2282_v4, %v2212_v25  ;;  %v2227_v42 = vadd.f32 %v4352_v37, %v6866_v44  ;;  %v2953_v4 = vld [vmem:[#allocation3 + $0x10] sm:$0xff] }
 0x1d0   : > { %v2221_v10 = vpop.f32.mrf.mxu0  ;;  %v2589_v34 = vpop.f32.mrf.mxu1 }
 0x1d1   : > { %2346 = vst.msk [vmem:[#allocation3 + $0xb0] sm:$0xff] %vm1632_vm13, %v2314_v47  ;;  %v2317_v63 = vadd.f32 %v2285_v27, %v2227_v42  ;;  %v2222_v26 = vadd.f32 %v2221_v10, %v6862_v30  ;;  %v2956_v27 = vld [vmem:[#allocation3 + $0x28] sm:$0xff] }
 0x1d2   : > { %v4355_v53 = vpop.f32.mrf.mxu0  ;;  %v6938_v55 = vpop.f32.mrf.mxu1 }
 0x1d3   : > { %2349 = vst.msk [vmem:[#allocation3 + $0xc8] sm:$0xff] %vm1632_vm13, %v2317_v63  ;;  %v2316_v0 = vadd.f32 %v2284_v45, %v2222_v26  ;;  %v2237_v24 = vadd.f32 %v4355_v53, %v6878_v14  ;;  %v2955_v45 = vld [vmem:[#allocation3 + $0x20] sm:$0xff] }
 0x1d4   : > { %v2231_v33 = vpop.f32.mrf.mxu0  ;;  %v2594_v44 = vpop.f32.mrf.mxu1 }
 0x1d5   : > { %2348 = vst.msk [vmem:[#allocation3 + $0xc0] sm:$0xff] %vm1632_vm13, %v2316_v0  ;;  %v2319_v13 = vadd.f32 %v2287_v23, %v2237_v24  ;;  %v2232_v17 = vadd.f32 %v2231_v33, %v6872_v40  ;;  %v2958_v44 = vld [vmem:[#allocation3 + $0x38] sm:$0xff] }
 0x1d6   : > { %v4358_v43 = vpop.f32.mrf.mxu0  ;;  %v6944_v30 = vpop.f32.mrf.mxu1 }
 0x1d7   : > { %2351 = vst.msk [vmem:[#allocation3 + $0xd8] sm:$0xff] %vm1632_vm13, %v2319_v13  ;;  %v2318_v56 = vadd.f32 %v2286_v3, %v2232_v17  ;;  %v2247_v31 = vadd.f32 %v4358_v43, %v6890_v18 }
 0x1d8   : > { %v2241_v36 = vpop.f32.mrf.mxu0  ;;  %v2599_v14 = vpop.f32.mrf.mxu1 }
 0x1d9   : > { %2350 = vst.msk [vmem:[#allocation3 + $0xd0] sm:$0xff] %vm1632_vm13, %v2318_v56  ;;  %v2321_v15 = vadd.f32 %v2289_v5, %v2247_v31  ;;  %v2242_v38 = vadd.f32 %v2241_v36, %v6884_v62  ;;  %v2957_v5 = vld [vmem:[#allocation3 + $0x30] sm:$0xff] }
 0x1da   : > { %v4361_v48 = vpop.f32.mrf.mxu0  ;;  %v2602_v40 = vpop.f32.mrf.mxu1 }
 0x1db   : > { %2353 = vst.msk [vmem:[#allocation3 + $0xe8] sm:$0xff] %vm1632_vm13, %v2321_v15  ;;  %v2320_v32 = vadd.f32 %v2288_v6, %v2242_v38  ;;  %v2257_v1 = vadd.f32 %v4361_v48, %v6902_v39 }
 0x1dc   : > { %v2251_v51 = vpop.f32.mrf.mxu0  ;;  %v2604_v52 = vpop.f32.mrf.mxu1 }
 0x1dd   : > { %2352 = vst.msk [vmem:[#allocation3 + $0xe0] sm:$0xff] %vm1632_vm13, %v2320_v32  ;;  %v2323_v18 = vadd.f32 %v2291_v9, %v2257_v1  ;;  %v2252_v29 = vadd.f32 %v2251_v51, %v6896_v61  ;;  %v2960_v51 = vld [vmem:[#allocation3 + $0x48] sm:$0xff] }
 0x1de   : > { %v6954_v50 = vpop.f32.mrf.mxu1  ;;  %v4396_v62 = vpop.f32.mrf.mxu0 }
 0x1df   : > { %2355 = vst.msk [vmem:[#allocation3 + $0xf8] sm:$0xff] %vm1632_vm13, %v2323_v18  ;;  %v2322_v59 = vadd.f32 %v2290_v46, %v2252_v29  ;;  %v2798_v28 = vadd.f32 %v4396_v62, %v6914_v58  ;;  %v2959_v46 = vld [vmem:[#allocation3 + $0x40] sm:$0xff] }
 0x1e0   : > { %v2609_v2 = vpop.f32.mrf.mxu1  ;;  %v2792_v39 = vpop.f32.mrf.mxu0 }
 0x1e1   : > { %2354 = vst.msk [vmem:[#allocation3 + $0xf0] sm:$0xff] %vm1632_vm13, %v2322_v59  ;;  %v2984_v54 = vadd.f32 %v2952_v22, %v2798_v28  ;;  %v2793_v57 = vadd.f32 %v2792_v39, %v6908_v35 }
 0x1e2   : > { %v2612_v41 = vpop.f32.mrf.mxu1  ;;  %v4399_v61 = vpop.f32.mrf.mxu0 }
 0x1e3   : > { %3016 = vst.msk [vmem:[#allocation3 + $0x8] sm:$0xff] %vm1632_vm13, %v2984_v54  ;;  %v2983_v16 = vadd.f32 %v2951_v12, %v2793_v57  ;;  %v2808_v11 = vadd.f32 %v4399_v61, %v6926_v49  ;;  %v6971_v49 = vld [vmem:[%s7373_s2] ss:$0 sm:$0xff]  ;;  %v2962_v61 = vld [vmem:[#allocation3 + $0x58] sm:$0xff] }
 0x1e4   : > { %v2614_v60 = vpop.f32.mrf.mxu1  ;;  %v2802_v20 = vpop.f32.mrf.mxu0 }
 0x1e5   : > { %3015 = vst.msk [vmem:[#allocation3] sm:$0xff] %vm1632_vm13, %v2983_v16  ;;  %v2986_v58 = vadd.f32 %v2954_v8, %v2808_v11  ;;  %v2803_v25 = vadd.f32 %v2802_v20, %v6920_v21  ;;  %v2961_v60 = vld [vmem:[#allocation3 + $0x50] sm:$0xff] }
 0x1e6   : > { %v6964_v37 = vpop.f32.mrf.mxu1  ;;  %v4402_v35 = vpop.f32.mrf.mxu0 }
 0x1e7   : > { %3018 = vst.msk [vmem:[#allocation3 + $0x18] sm:$0xff] %vm1632_vm13, %v2986_v58  ;;  %v2985_v47 = vadd.f32 %v2953_v4, %v2803_v25  ;;  %v2818_v42 = vadd.f32 %v4402_v35, %v6938_v55 }
 0x1e8   : > { %v2619_v10 = vpop.f32.mrf.mxu1  ;;  %v2812_v34 = vpop.f32.mrf.mxu0 }
 0x1e9   : > { %3017 = vst.msk [vmem:[#allocation3 + $0x10] sm:$0xff] %vm1632_vm13, %v2985_v47  ;;  %v2988_v21 = vadd.f32 %v2956_v27, %v2818_v42  ;;  %v2813_v63 = vadd.f32 %v2812_v34, %v6932_v19  ;;  %v2964_v34 = vld [vmem:[#allocation3 + $0x68] sm:$0xff] }
 0x1ea   : > { %v3048_v26 = vld [vmem:[#allocation3 + $0x8] sm:$0xff]  ;;  %v2622_v53 = vpop.f32.mrf.mxu1  ;;  %v4405_v0 = vpop.f32.mrf.mxu0 }
 0x1eb   : > { %v6976_v24 = vadd.f32 %v6971_v49, %v3048_v26  ;;  %3020 = vst.msk [vmem:[#allocation3 + $0x28] sm:$0xff] %vm1632_vm13, %v2988_v21  ;;  %v2987_v55 = vadd.f32 %v2955_v45, %v2813_v63  ;;  %v2828_v23 = vadd.f32 %v4405_v0, %v2602_v40  ;;  %v2963_v45 = vld [vmem:[#allocation3 + $0x60] sm:$0xff] }
 0x1ec   : > { %v3047_v33 = vld [vmem:[#allocation3] sm:$0xff]  ;;  %v2624_v13 = vpop.f32.mrf.mxu1  ;;  %v2822_v17 = vpop.f32.mrf.mxu0 }
 0x1ed   : > { %v3826_v3 = vmul.f32 -1.442695, %v6976_v24  ;;  %v6981_v43 = vadd.f32 %v6971_v49, %v3047_v33  ;;  %3019 = vst.msk [vmem:[#allocation3 + $0x20] sm:$0xff] %vm1632_vm13, %v2987_v55  ;;  %v2990_v19 = vadd.f32 %v2958_v44, %v2828_v23  ;;  %v2823_v56 = vadd.f32 %v2822_v17, %v6944_v30 }
 0x1ee   : > { %v3050_v31 = vld [vmem:[#allocation3 + $0x18] sm:$0xff]  ;;  %v2627_v36 = vpop.f32.mrf.mxu1  ;;  %v4408_v14 = vpop.f32.mrf.mxu0 }
 0x1ef   : > { %4517 = vpow2.f32 %v3826_v3  ;;  %v3825_v15 = vmul.f32 -1.442695, %v6981_v43  ;;  %v6987_v38 = vadd.f32 %v6971_v49, %v3050_v31  ;;  %3022 = vst.msk [vmem:[#allocation3 + $0x38] sm:$0xff] %vm1632_vm13, %v2990_v19  ;;  %v2989_v6 = vadd.f32 %v2957_v5, %v2823_v56  ;;  %v2966_v3 = vld [vmem:[#allocation3 + $0x78] sm:$0xff] }
 0x1f0   : > { %v3049_v48 = vld [vmem:[#allocation3 + $0x10] sm:$0xff]  ;;  %v2838_v40 = vadd.f32 %v4408_v14, %v2612_v41  ;;  %v2629_v32 = vpop.f32.mrf.mxu1  ;;  %v2832_v1 = vpop.f32.mrf.mxu0 }
 0x1f1   : > { %4519 = vpow2.f32 %v3825_v15  ;;  %v3828_v30 = vmul.f32 -1.442695, %v6987_v38  ;;  %v6992_v9 = vadd.f32 %v6971_v49, %v3049_v48  ;;  %3021 = vst.msk [vmem:[#allocation3 + $0x30] sm:$0xff] %vm1632_vm13, %v2989_v6  ;;  %v2833_v52 = vadd.f32 %v2832_v1, %v6954_v50 }
 0x1f2   : > { %v3052_v18 = vld [vmem:[#allocation3 + $0x28] sm:$0xff]  ;;  %v2992_v29 = vadd.f32 %v2960_v51, %v2838_v40  ;;  %v2632_v62 = vpop.f32.mrf.mxu1  ;;  %v4411_v59 = vpop.f32.mrf.mxu0 }
 0x1f3   : > { %4521 = vpow2.f32 %v3828_v30  ;;  %v3827_v28 = vmul.f32 -1.442695, %v6992_v9  ;;  %v6998_v22 = vadd.f32 %v6971_v49, %v3052_v18  ;;  %v2991_v2 = vadd.f32 %v2959_v46, %v2833_v52  ;;  %v2965_v30 = vld [vmem:[#allocation3 + $0x70] sm:$0xff] }
 0x1f4   : > { %v3051_v39 = vld [vmem:[#allocation3 + $0x20] sm:$0xff]  ;;  %3024 = vst.msk [vmem:[#allocation3 + $0x48] sm:$0xff] %vm1632_vm13, %v2992_v29  ;;  %v2848_v54 = vadd.f32 %v4411_v59, %v2622_v53  ;;  %v2634_v57 = vpop.f32.mrf.mxu1  ;;  %v2842_v12 = vpop.f32.mrf.mxu0 }
 0x1f5   : > { %4523 = vpow2.f32 %v3827_v28  ;;  %v3830_v50 = vmul.f32 -1.442695, %v6998_v22  ;;  %v7003_v41 = vadd.f32 %v6971_v49, %v3051_v39  ;;  %3023 = vst.msk [vmem:[#allocation3 + $0x40] sm:$0xff] %vm1632_vm13, %v2991_v2  ;;  %v2843_v16 = vadd.f32 %v2842_v12, %v6964_v37  ;;  %v2967_v39 = vld [vmem:[#allocation3 + $0x80] sm:$0xff] }
 0x1f6   : > { %v3054_v11 = vld [vmem:[#allocation3 + $0x38] sm:$0xff]  ;;  %v2994_v8 = vadd.f32 %v2962_v61, %v2848_v54  ;;  %v2637_v20 = vpop.f32.mrf.mxu1  ;;  %v4414_v58 = vpop.f32.mrf.mxu0 }
 0x1f7   : > { %4525 = vpow2.f32 %v3830_v50  ;;  %v3829_v25 = vmul.f32 -1.442695, %v7003_v41  ;;  %v7009_v4 = vadd.f32 %v6971_v49, %v3054_v11  ;;  %v2993_v35 = vadd.f32 %v2961_v60, %v2843_v16 }
 0x1f8   : > { %v3053_v47 = vld [vmem:[#allocation3 + $0x30] sm:$0xff]  ;;  %3026 = vst.msk [vmem:[#allocation3 + $0x58] sm:$0xff] %vm1632_vm13, %v2994_v8  ;;  %v2858_v42 = vadd.f32 %v4414_v58, %v2632_v62  ;;  %v2639_v27 = vpop.f32.mrf.mxu1  ;;  %v2852_v10 = vpop.f32.mrf.mxu0  ;;  %v2968_v58 = vld [vmem:[#allocation3 + $0x88] sm:$0xff] }
 0x1f9   : > { %4527 = vpow2.f32 %v3829_v25  ;;  %v7013_v37 = vadd.f32 %v6971_v49, %v3053_v47  ;;  %3025 = vst.msk [vmem:[#allocation3 + $0x50] sm:$0xff] %vm1632_vm13, %v2993_v35  ;;  %v2853_v21 = vadd.f32 %v2852_v10, %v2627_v36  ;;  %v3832_v63 = vmul.f32 -1.442695, %v7009_v4 }
 0x1fa   : > { %v2996_v26 = vadd.f32 %v2964_v34, %v2858_v42  ;;  %v2642_v53 = vpop.f32.mrf.mxu1  ;;  %v4417_v0 = vpop.f32.mrf.mxu0 }
 0x1fb   : > { %v3831_v55 = vmul.f32 -1.442695, %v7013_v37  ;;  %v2995_v23 = vadd.f32 %v2963_v45, %v2853_v21  ;;  %v2868_v33 = vadd.f32 %v4417_v0, %v2642_v53  ;;  %v3056_v13 = vld [vmem:[#allocation3 + $0x48] sm:$0xff]  ;;  %v2969_v0 = vld [vmem:[#allocation3 + $0x90] sm:$0xff] }
 0x1fc   : > { %v4518_v44 = vpop.eup %4517  ;;  %v3055_v17 = vld [vmem:[#allocation3 + $0x40] sm:$0xff]  ;;  %3028 = vst.msk [vmem:[#allocation3 + $0x68] sm:$0xff] %vm1632_vm13, %v2996_v26  ;;  %v2644_v19 = vpop.f32.mrf.mxu1  ;;  %v7024_v32 = vadd.f32 %v6971_v49, %v3056_v13 }
 0x1fd   : > { %v2862_v56 = vpop.f32.mrf.mxu0  ;;  %v3215_v31 = vadd.f32 1.0, %v4518_v44  ;;  %4529 = vpow2.f32 %v3831_v55  ;;  %v7020_v5 = vadd.f32 %v6971_v49, %v3055_v17  ;;  %3027 = vst.msk [vmem:[#allocation3 + $0x60] sm:$0xff] %vm1632_vm13, %v2995_v23  ;;  %v2998_v36 = vadd.f32 %v2966_v3, %v2868_v33 }
 0x1fe   : > { %v4520_v14 = vpop.eup %4519  ;;  %4531 = vpow2.f32 %v3832_v63  ;;  %v2863_v15 = vadd.f32 %v2862_v56, %v2637_v20  ;;  %v2647_v6 = vpop.f32.mrf.mxu1  ;;  %v3834_v50 = vmul.f32 -1.442695, %v7024_v32 }
 0x1ff   : > { %v4420_v48 = vpop.f32.mrf.mxu0  ;;  %4533 = vrcp.f32 %v3215_v31  ;;  %v3214_v40 = vadd.f32 1.0, %v4520_v14  ;;  %v3833_v1 = vmul.f32 -1.442695, %v7020_v5  ;;  %3030 = vst.msk [vmem:[#allocation3 + $0x78] sm:$0xff] %vm1632_vm13, %v2998_v36  ;;  %v3058_v11 = vld [vmem:[#allocation3 + $0x58] sm:$0xff] }
 0x200   : > { %v4522_v51 = vpop.eup %4521  ;;  %v3057_v52 = vld [vmem:[#allocation3 + $0x50] sm:$0xff]  ;;  %v2997_v18 = vadd.f32 %v2965_v30, %v2863_v15  ;;  %v2649_v29 = vpop.f32.mrf.mxu1  ;;  %v7036_v21 = vadd.f32 %v6971_v49, %v3058_v11  ;;  %v2970_v31 = vld [vmem:[#allocation3 + $0x98] sm:$0xff] }
 0x201   : > { %v2872_v46 = vpop.f32.mrf.mxu0  ;;  %4535 = vrcp.f32 %v3214_v40  ;;  %v3217_v62 = vadd.f32 1.0, %v4522_v51  ;;  %v7029_v59 = vadd.f32 %v6971_v49, %v3057_v52 }
 0x202   : > { %v2873_v28 = vadd.f32 %v2872_v46, %v2647_v6  ;;  %v4524_v2 = vpop.eup %4523  ;;  %4537 = vpow2.f32 %v3833_v1  ;;  %3029 = vst.msk [vmem:[#allocation3 + $0x70] sm:$0xff] %vm1632_vm13, %v2997_v18  ;;  %v2652_v54 = vpop.f32.mrf.mxu1  ;;  %v3836_v17 = vmul.f32 -1.442695, %v7036_v21 }
 0x203   : > { %v4423_v57 = vpop.f32.mrf.mxu0  ;;  %4539 = vrcp.f32 %v3217_v62  ;;  %v3216_v12 = vadd.f32 1.0, %v4524_v2  ;;  %v3835_v8 = vmul.f32 -1.442695, %v7029_v59  ;;  %v2878_v60 = vadd.f32 %v4420_v48, %v2652_v54  ;;  %v3060_v3 = vld [vmem:[#allocation3 + $0x68] sm:$0xff]  ;;  %v2971_v2 = vld [vmem:[#allocation3 + $0xa0] sm:$0xff] }
 0x204   : > { %v2999_v61 = vadd.f32 %v2967_v39, %v2873_v28  ;;  %v4526_v16 = vpop.eup %4525  ;;  %v2654_v20 = vpop.f32.mrf.mxu1  ;;  %v3059_v47 = vld [vmem:[#allocation3 + $0x60] sm:$0xff]  ;;  %v7046_v30 = vadd.f32 %v6971_v49, %v3060_v3 }
 0x205   : > { %4541 = vrcp.f32 %v3216_v12  ;;  %v2882_v25 = vpop.f32.mrf.mxu0  ;;  %v3000_v42 = vadd.f32 %v2968_v58, %v2878_v60  ;;  %v3219_v10 = vadd.f32 1.0, %v4526_v16  ;;  %v7040_v53 = vadd.f32 %v6971_v49, %v3059_v47  ;;  %v2972_v47 = vld [vmem:[#allocation3 + $0xa8] sm:$0xff] }
 0x206   : > { %3031 = vst.msk [vmem:[#allocation3 + $0x80] sm:$0xff] %vm1632_vm13, %v2999_v61  ;;  %v4528_v35 = vpop.eup %4527  ;;  %v2657_v27 = vpop.f32.mrf.mxu1  ;;  %4543 = vpow2.f32 %v3834_v50  ;;  %v3062_v60 = vld [vmem:[#allocation3 + $0x78] sm:$0xff] }
 0x207   : > { %v3218_v34 = vadd.f32 1.0, %v4528_v35  ;;  %4545 = vpow2.f32 %v3835_v8  ;;  %3032 = vst.msk [vmem:[#allocation3 + $0x88] sm:$0xff] %vm1632_vm13, %v3000_v42  ;;  %v2883_v63 = vadd.f32 %v2882_v25, %v2657_v27  ;;  %v4426_v45 = vpop.f32.mrf.mxu0  ;;  %v3837_v15 = vmul.f32 -1.442695, %v7040_v53 }
 0x208   : > { %v2659_v26 = vpop.f32.mrf.mxu1 }
 0x209   : > { %4547 = vrcp.f32 %v3218_v34  ;;  %v3001_v23 = vadd.f32 %v2969_v0, %v2883_v63  ;;  %v2892_v14 = vpop.f32.mrf.mxu0  ;;  %v3061_v6 = vld [vmem:[#allocation3 + $0x70] sm:$0xff] }
 0x20a   : > { %v4530_v55 = vpop.eup %4529  ;;  %v2662_v33 = vpop.f32.mrf.mxu1  ;;  %4549 = vrcp.f32 %v3219_v10  ;;  %v7052_v28 = vadd.f32 %v6971_v49, %v3061_v6 }
 0x20b   : > { %v4532_v44 = vpop.eup %4531  ;;  %v3220_v13 = vadd.f32 1.0, %v4530_v55  ;;  %v2888_v19 = vadd.f32 %v4423_v57, %v2662_v33  ;;  %3033 = vst.msk [vmem:[#allocation3 + $0x90] sm:$0xff] %vm1632_vm13, %v3001_v23  ;;  %v4429_v54 = vpop.f32.mrf.mxu0 }
 0x20c   : > { %v4534_v56 = vpop.eup %4533  ;;  %v2664_v36 = vpop.f32.mrf.mxu1  ;;  %v3221_v1 = vadd.f32 1.0, %v4532_v44  ;;  %v3839_v35 = vmul.f32 -1.442695, %v7052_v28 }
 0x20d   : > { %4551 = vrcp.f32 %v3220_v13  ;;  %v3002_v48 = vadd.f32 %v2970_v31, %v2888_v19  ;;  %v3311_v18 = vmul.f32 %v4534_v56, %v6976_v24  ;;  %v3838_v24 = vmul.f32 -1.442695, %v7046_v30  ;;  %v2902_v27 = vpop.f32.mrf.mxu0  ;;  %v3063_v63 = vld [vmem:[#allocation3 + $0x80] sm:$0xff] }
 0x20e   : > { %v4536_v40 = vpop.eup %4535  ;;  %v2667_v51 = vpop.f32.mrf.mxu1  ;;  %4553 = vpow2.f32 %v3836_v17  ;;  %v7069_v3 = vadd.f32 %v6971_v49, %v3063_v63 }
 0x20f   : > { %v4538_v52 = vpop.eup %4537  ;;  %v3310_v29 = vmul.f32 %v4536_v40, %v6981_v43  ;;  %3034 = vst.msk [vmem:[#allocation3 + $0x98] sm:$0xff] %vm1632_vm13, %v3002_v48  ;;  %v2893_v46 = vadd.f32 %v2892_v14, %v2667_v51  ;;  %4555 = vpow2.f32 %v3837_v15  ;;  %v3343_v16 = vsel %vm1632_vm13, %v3311_v18, 0.0  ;;  %v4432_v56 = vpop.f32.mrf.mxu0  ;;  %v3064_v14 = vld [vmem:[#allocation3 + $0x88] sm:$0xff]  ;;  %v2973_v15 = vld [vmem:[#allocation3 + $0xb0] sm:$0xff] }
 0x210   : > { %v4540_v62 = vpop.eup %4539  ;;  %v2669_v39 = vpop.f32.mrf.mxu1  ;;  %v3222_v12 = vadd.f32 1.0, %v4538_v52  ;;  %4557 = vrcp.f32 %v3221_v1 }
 0x211   : > { %v3342_v57 = vsel %vm1632_vm13, %v3310_v29, 0.0  ;;  %v3003_v50 = vadd.f32 %v2971_v2, %v2893_v46  ;;  %v3313_v11 = vmul.f32 %v4540_v62, %v6987_v38  ;;  %v3841_v29 = vmul.f32 -1.442695, %v7069_v3  ;;  %v2912_v39 = vpop.f32.mrf.mxu0 }
 0x212   : > { %v4542_v61 = vpop.eup %4541  ;;  %v2672_v43 = vpop.f32.mrf.mxu1  ;;  %v3344_v25 = vadd.f32 %v3343_v16, %v3342_v57  ;;  %4559 = vrcp.f32 %v3222_v12  ;;  %v3065_v51 = vld [vmem:[#allocation3 + $0x90] sm:$0xff]  ;;  %v7076_v46 = vadd.f32 %v6971_v49, %v3064_v14  ;;  %v2974_v12 = vld [vmem:[#allocation3 + $0xb8] sm:$0xff] }
 0x213   : > { %v3312_v8 = vmul.f32 %v4542_v61, %v6992_v9  ;;  %3035 = vst.msk [vmem:[#allocation3 + $0xa0] sm:$0xff] %vm1632_vm13, %v3003_v50  ;;  %v2898_v20 = vadd.f32 %v4426_v45, %v2672_v43  ;;  %v4544_v58 = vpop.eup %4543  ;;  %4561 = vpow2.f32 %v3838_v24  ;;  %v7063_v9 = vadd.f32 %v6971_v49, %v3062_v60 }
 0x214   : > { %v2674_v42 = vpop.f32.mrf.mxu1  ;;  %v4546_v10 = vpop.eup %4545  ;;  %v3347_v55 = vsel %vm1632_vm13, %v3313_v11, 0.0  ;;  %v3223_v33 = vadd.f32 1.0, %v4544_v58  ;;  %4563 = vpow2.f32 %v3839_v35  ;;  %v7081_v61 = vadd.f32 %v6971_v49, %v3065_v51 }
 0x215   : > { %v3345_v34 = vsel %vm1632_vm13, %v3312_v8, 0.0  ;;  %v3004_v26 = vadd.f32 %v2972_v47, %v2898_v20  ;;  %v3224_v36 = vadd.f32 1.0, %v4546_v10  ;;  %v3840_v1 = vmul.f32 -1.442695, %v7063_v9  ;;  %v4435_v47 = vpop.f32.mrf.mxu0 }
 0x216   : > { %v4548_v38 = vpop.eup %4547  ;;  %v3346_v0 = vadd.f32 %v3345_v34, %v3344_v25  ;;  %v2677_v45 = vpop.f32.mrf.mxu1  ;;  %4565 = vrcp.f32 %v3223_v33  ;;  %v2975_v25 = vld [vmem:[#allocation3 + $0xc0] sm:$0xff]  ;;  %v3843_v63 = vmul.f32 -1.442695, %v7081_v61 }
 0x217   : > { %v3314_v23 = vmul.f32 %v4548_v38, %v7003_v41  ;;  %3036 = vst.msk [vmem:[#allocation3 + $0xa8] sm:$0xff] %vm1632_vm13, %v3004_v26  ;;  %v2903_v44 = vadd.f32 %v2902_v27, %v2677_v45  ;;  %v4550_v13 = vpop.eup %4549  ;;  %4567 = vrcp.f32 %v3224_v36 }
 0x218   : > { %v3348_v17 = vadd.f32 %v3347_v55, %v3346_v0  ;;  %v2679_v19 = vpop.f32.mrf.mxu1  ;;  %v3315_v40 = vmul.f32 %v4550_v13, %v6998_v22  ;;  %v3066_v22 = vld [vmem:[#allocation3 + $0x98] sm:$0xff]  ;;  %4569 = vpow2.f32 %v3840_v1 }
 0x219   : > { %v3349_v31 = vsel %vm1632_vm13, %v3314_v23, 0.0  ;;  %v3005_v48 = vadd.f32 %v2973_v15, %v2903_v44  ;;  %4571 = vpow2.f32 %v3841_v29  ;;  %v7086_v58 = vadd.f32 %v6971_v49, %v3066_v22  ;;  %v2977_v29 = vld [vmem:[#allocation3 + $0xd0] sm:$0xff] }
 0x21a   : > { %v4552_v6 = vpop.eup %4551  ;;  %v2682_v41 = vpop.f32.mrf.mxu1  ;;  %v3350_v18 = vadd.f32 %v3349_v31, %v3348_v17  ;;  %v3351_v11 = vsel %vm1632_vm13, %v3315_v40, 0.0  ;;  %v3067_v60 = vld [vmem:[#allocation3 + $0xa0] sm:$0xff]  ;;  %v2976_v17 = vld [vmem:[#allocation3 + $0xc8] sm:$0xff] }
 0x21b   : > { %v4554_v52 = vpop.eup %4553  ;;  %3037 = vst.msk [vmem:[#allocation3 + $0xb0] sm:$0xff] %vm1632_vm13, %v3005_v48  ;;  %v2908_v62 = vadd.f32 %v4429_v54, %v2682_v41  ;;  %v3316_v57 = vmul.f32 %v4552_v6, %v7013_v37  ;;  %v3842_v37 = vmul.f32 -1.442695, %v7076_v46  ;;  %v7092_v26 = vadd.f32 %v6971_v49, %v3067_v60  ;;  %v2922_v31 = vpop.f32.mrf.mxu0 }
 0x21c   : > { %v2684_v2 = vpop.f32.mrf.mxu1  ;;  %v4556_v50 = vpop.eup %4555  ;;  %v3225_v8 = vadd.f32 1.0, %v4554_v52  ;;  %v3352_v20 = vadd.f32 %v3351_v11, %v3350_v18  ;;  %v3844_v13 = vmul.f32 -1.442695, %v7086_v58 }
 0x21d   : > { %v3006_v24 = vadd.f32 %v2974_v12, %v2908_v62  ;;  %v4558_v16 = vpop.eup %4557  ;;  %v3353_v42 = vsel %vm1632_vm13, %v3316_v57, 0.0  ;;  %v3226_v27 = vadd.f32 1.0, %v4556_v50  ;;  %v4438_v2 = vpop.f32.mrf.mxu0 }
 0x21e   : > { %v2687_v43 = vpop.f32.mrf.mxu1  ;;  %v3068_v38 = vld [vmem:[#allocation3 + $0xa8] sm:$0xff]  ;;  %v3317_v55 = vmul.f32 %v4558_v16, %v7009_v4  ;;  %4573 = vrcp.f32 %v3225_v8  ;;  %v3354_v44 = vadd.f32 %v3353_v42, %v3352_v20  ;;  %v3845_v4 = vmul.f32 -1.442695, %v7092_v26 }
 0x21f   : > { %v2913_v54 = vadd.f32 %v2912_v39, %v2687_v43  ;;  %3038 = vst.msk [vmem:[#allocation3 + $0xb8] sm:$0xff] %vm1632_vm13, %v3006_v24  ;;  %v4560_v34 = vpop.eup %4559  ;;  %4575 = vpow2.f32 %v3842_v37  ;;  %v7099_v6 = vadd.f32 %v6971_v49, %v3068_v38  ;;  %v2978_v37 = vld [vmem:[#allocation3 + $0xd8] sm:$0xff] }
 0x220   : > { %v2689_v35 = vpop.f32.mrf.mxu1  ;;  %v4562_v45 = vpop.eup %4561  ;;  %v3318_v14 = vmul.f32 %v4560_v34, %v7020_v5  ;;  %4577 = vrcp.f32 %v3226_v27  ;;  %v3355_v41 = vsel %vm1632_vm13, %v3317_v55, 0.0 }
 0x221   : > { %v3007_v10 = vadd.f32 %v2975_v25, %v2913_v54  ;;  %v4564_v36 = vpop.eup %4563  ;;  %4579 = vpow2.f32 %v3843_v63  ;;  %v3227_v40 = vadd.f32 1.0, %v4562_v45  ;;  %v3356_v52 = vadd.f32 %v3355_v41, %v3354_v44  ;;  %v2932_v35 = vpop.f32.mrf.mxu0  ;;  %v2979_v44 = vld [vmem:[#allocation3 + $0xe0] sm:$0xff] }
 0x222   : > { %v2692_v0 = vpop.f32.mrf.mxu1  ;;  %v3069_v33 = vld [vmem:[#allocation3 + $0xb0] sm:$0xff]  ;;  %v3228_v18 = vadd.f32 1.0, %v4564_v36  ;;  %4581 = vpow2.f32 %v3844_v13  ;;  %v3357_v39 = vsel %vm1632_vm13, %v3318_v14, 0.0  ;;  %v3846_v12 = vmul.f32 -1.442695, %v7099_v6 }
 0x223   : > { %3039 = vst.msk [vmem:[#allocation3 + $0xc0] sm:$0xff] %vm1632_vm13, %v3007_v10  ;;  %v2918_v23 = vadd.f32 %v4432_v56, %v2692_v0  ;;  %v7103_v48 = vadd.f32 %v6971_v49, %v3069_v33  ;;  %v4566_v5 = vpop.eup %4565  ;;  %4583 = vpow2.f32 %v3845_v4  ;;  %v3358_v20 = vadd.f32 %v3357_v39, %v3356_v52  ;;  %v4441_v13 = vpop.f32.mrf.mxu0 }
 0x224   : > { %v2694_v19 = vpop.f32.mrf.mxu1  ;;  %v4568_v50 = vpop.eup %4567  ;;  %v3319_v11 = vmul.f32 %v4566_v5, %v7024_v32  ;;  %4585 = vrcp.f32 %v3227_v40 }
 0x225   : > { %v3008_v15 = vadd.f32 %v2976_v17, %v2918_v23  ;;  %v3847_v16 = vmul.f32 -1.442695, %v7103_v48  ;;  %v4570_v54 = vpop.eup %4569  ;;  %4587 = vrcp.f32 %v3228_v18  ;;  %v3320_v27 = vmul.f32 %v4568_v50, %v7029_v59  ;;  %v2980_v18 = vld [vmem:[#allocation3 + $0xe8] sm:$0xff] }
 0x226   : > { %v2697_v56 = vpop.f32.mrf.mxu1  ;;  %v3070_v51 = vld [vmem:[#allocation3 + $0xb8] sm:$0xff]  ;;  %v4572_v42 = vpop.eup %4571  ;;  %4589 = vpow2.f32 %v3846_v12  ;;  %v3359_v38 = vsel %vm1632_vm13, %v3319_v11, 0.0  ;;  %v3229_v0 = vadd.f32 1.0, %v4570_v54 }
 0x227   : > { %3040 = vst.msk [vmem:[#allocation3 + $0xc8] sm:$0xff] %vm1632_vm13, %v3008_v15  ;;  %v2923_v1 = vadd.f32 %v2922_v31, %v2697_v56  ;;  %v7109_v22 = vadd.f32 %v6971_v49, %v3070_v51  ;;  %4591 = vpow2.f32 %v3847_v16  ;;  %v3360_v23 = vadd.f32 %v3359_v38, %v3358_v20 }
 0x228   : > { %v2699_v62 = vpop.f32.mrf.mxu1  ;;  %v3230_v33 = vadd.f32 1.0, %v4572_v42  ;;  %v3361_v31 = vsel %vm1632_vm13, %v3320_v27, 0.0 }
 0x229   : > { %v3009_v57 = vadd.f32 %v2977_v29, %v2923_v1  ;;  %v3848_v32 = vmul.f32 -1.442695, %v7109_v22  ;;  %v3362_v5 = vadd.f32 %v3361_v31, %v3360_v23  ;;  %v2942_v62 = vpop.f32.mrf.mxu0 }
 0x22a   : > { %v2702_v24 = vpop.f32.mrf.mxu1  ;;  %v3071_v43 = vld [vmem:[#allocation3 + $0xc0] sm:$0xff] }
 0x22b   : > { %3041 = vst.msk [vmem:[#allocation3 + $0xd0] sm:$0xff] %vm1632_vm13, %v3009_v57  ;;  %v2928_v8 = vadd.f32 %v4435_v47, %v2702_v24  ;;  %v7116_v60 = vadd.f32 %v6971_v49, %v3071_v43  ;;  %v4574_v55 = vpop.eup %4573  ;;  %4593 = vpow2.f32 %v3848_v32 }
 0x22c   : > { %v2704_v25 = vpop.f32.mrf.mxu1  ;;  %v4576_v19 = vpop.eup %4575  ;;  %v3321_v40 = vmul.f32 %v4574_v55, %v7036_v21 }
 0x22d   : > { %v3010_v10 = vadd.f32 %v2978_v37, %v2928_v8  ;;  %v3849_v47 = vmul.f32 -1.442695, %v7116_v60  ;;  %v4578_v14 = vpop.eup %4577  ;;  %v3231_v52 = vadd.f32 1.0, %v4576_v19  ;;  %v2981_v37 = vld [vmem:[#allocation3 + $0xf0] sm:$0xff]  ;;  %v3515_v55 = vpop.xlane.xlu1 %3514 }
 0x22e   : > { %v2707_v34 = vpop.f32.mrf.mxu1  ;;  %v3072_v63 = vld [vmem:[#allocation3 + $0xc8] sm:$0xff]  ;;  %v4580_v41 = vpop.eup %4579  ;;  %v3322_v57 = vmul.f32 %v4578_v14, %v7040_v53  ;;  %v3363_v16 = vsel %vm1632_vm13, %v3321_v40, 0.0 }
 0x22f   : > { %3042 = vst.msk [vmem:[#allocation3 + $0xd8] sm:$0xff] %vm1632_vm13, %v3010_v10  ;;  %v2933_v45 = vadd.f32 %v2932_v35, %v2707_v34  ;;  %v7124_v17 = vadd.f32 %v6971_v49, %v3072_v63  ;;  %4595 = vpow2.f32 %v3849_v47  ;;  %v4582_v39 = vpop.eup %4581  ;;  %v3232_v50 = vadd.f32 1.0, %v4580_v41  ;;  %v3498_v41 = vpop.xlane.xlu0 %3497 }
 0x230   : > { %v2709_v59 = vpop.f32.mrf.mxu1  ;;  %4597 = vrcp.f32 %v3229_v0  ;;  %v3364_v20 = vadd.f32 %v3363_v16, %v3362_v5  ;;  %v3233_v53 = vadd.f32 1.0, %v4582_v39  ;;  %v3365_v42 = vsel %vm1632_vm13, %v3322_v57, 0.0 }
 0x231   : > { %v3011_v36 = vadd.f32 %v2979_v44, %v2933_v45  ;;  %v3850_v56 = vmul.f32 -1.442695, %v7124_v17  ;;  %4599 = vrcp.f32 %v3230_v33  ;;  %v2982_v44 = vld [vmem:[#allocation3 + $0xf8] sm:$0xff]  ;;  %v3516_v5 = vmax.f32 %v3515_v55, 0.0 }
 0x232   : > { %v2712_v15 = vpop.f32.mrf.mxu1  ;;  %v3073_v4 = vld [vmem:[#allocation3 + $0xd0] sm:$0xff]  ;;  %v3366_v33 = vadd.f32 %v3365_v42, %v3364_v20 }
 0x233   : > { %3043 = vst.msk [vmem:[#allocation3 + $0xe0] sm:$0xff] %vm1632_vm13, %v3011_v36  ;;  %v2938_v1 = vadd.f32 %v4438_v2, %v2712_v15  ;;  %v7131_v51 = vadd.f32 %v6971_v49, %v3073_v4  ;;  %4601 = vpow2.f32 %v3850_v56  ;;  %v4584_v2 = vpop.eup %4583 }
 0x234   : > { %v2714_v29 = vpop.f32.mrf.mxu1  ;;  %v4586_v54 = vpop.eup %4585  ;;  %v3234_v34 = vadd.f32 1.0, %v4584_v2  ;;  %v3858_v2 = vld [vmem:[%s7375_s4] ss:$0 sm:$0xff] }
 0x235   : > { %v3012_v12 = vadd.f32 %v2980_v18, %v2938_v1  ;;  %v3851_v21 = vmul.f32 -1.442695, %v7131_v51  ;;  %v4588_v35 = vpop.eup %4587  ;;  %v3323_v0 = vmul.f32 %v4586_v54, %v7046_v30  ;;  %v3532_v29 = vpop.xlane.xlu1 %3531 }
 0x236   : > { %v2717_v24 = vpop.f32.mrf.mxu1  ;;  %v3074_v43 = vld [vmem:[#allocation3 + $0xd8] sm:$0xff]  ;;  %v4590_v32 = vpop.eup %4589  ;;  %v3324_v19 = vmul.f32 %v4588_v35, %v7052_v28  ;;  %v3533_v42 = vmax.f32 %v3532_v29, 0.0 }
 0x237   : > { %3044 = vst.msk [vmem:[#allocation3 + $0xe8] sm:$0xff] %vm1632_vm13, %v3012_v12  ;;  %v2943_v11 = vadd.f32 %v2942_v62, %v2717_v24  ;;  %v7138_v8 = vadd.f32 %v6971_v49, %v3074_v43  ;;  %4603 = vpow2.f32 %v3851_v21  ;;  %v4592_v38 = vpop.eup %4591  ;;  %v3235_v14 = vadd.f32 1.0, %v4590_v32  ;;  %v3860_v12 = vld [vmem:[%s7375_s4 + $0x1] ss:$0 sm:$0xff] }
 0x238   : > { %v2719_v25 = vpop.f32.mrf.mxu1  ;;  %4605 = vrcp.f32 %v3231_v52  ;;  %v4594_v15 = vpop.eup %4593  ;;  %v3236_v4 = vadd.f32 1.0, %v4592_v38  ;;  %v3367_v56 = vsel %vm1632_vm13, %v3323_v0, 0.0  ;;  %v3369_v18 = vsel %vm1632_vm13, %v3324_v19, 0.0 }
 0x239   : > { %v3013_v27 = vadd.f32 %v2981_v37, %v2943_v11  ;;  %v3852_v10 = vmul.f32 -1.442695, %v7138_v8  ;;  %4607 = vrcp.f32 %v3232_v50  ;;  %v3368_v28 = vadd.f32 %v3367_v56, %v3366_v33 }
 0x23a   : > { %v2722_v63 = vpop.f32.mrf.mxu1  ;;  %v3075_v47 = vld [vmem:[#allocation3 + $0xe0] sm:$0xff]  ;;  %v3237_v39 = vadd.f32 1.0, %v4594_v15  ;;  %v3499_v21 = vmax.f32 %v3498_v41, 0.0 }
 0x23b   : > { %3045 = vst.msk [vmem:[#allocation3 + $0xf0] sm:$0xff] %vm1632_vm13, %v3013_v27  ;;  %v2948_v45 = vadd.f32 %v4441_v13, %v2722_v63  ;;  %v7145_v23 = vadd.f32 %v6971_v49, %v3075_v47  ;;  %4609 = vpow2.f32 %v3852_v10  ;;  %v3370_v54 = vadd.f32 %v3369_v18, %v3368_v28  ;;  %v3862_v63 = vld [vmem:[%s7375_s4 + $0x2] ss:$0 sm:$0xff]  ;;  %v3549_v47 = vpop.xlane.xlu1 %3548  ;;  %v3864_v15 = vld [vmem:[%s7375_s4 + $0x3] ss:$0 sm:$0xff] }
 0x23c   : > { %4611 = vrcp.f32 %v3233_v53  ;;  %v2724_v59 = vpop.f32.mrf.mxu1  ;;  %v4596_v13 = vpop.eup %4595  ;;  %v3522_v53 = vmul.f32 %v3860_v12, %v3516_v5  ;;  %v3539_v19 = vmul.f32 %v3862_v63, %v3533_v42 }
 0x23d   : > { %v3014_v31 = vadd.f32 %v2982_v44, %v2948_v45  ;;  %v3853_v36 = vmul.f32 -1.442695, %v7145_v23  ;;  %4613 = vrcp.f32 %v3234_v34  ;;  %v4598_v1 = vpop.eup %4597  ;;  %v3238_v24 = vadd.f32 1.0, %v4596_v13 }
 0x23e   : > { %v3076_v30 = vld [vmem:[#allocation3 + $0xe8] sm:$0xff]  ;;  %v4600_v52 = vpop.eup %4599  ;;  %v3325_v43 = vmul.f32 %v4598_v1, %v7063_v9  ;;  %v3505_v9 = vmul.f32 %v3858_v2, %v3499_v21 }
 0x23f   : > { %3046 = vst.msk [vmem:[#allocation3 + $0xf8] sm:$0xff] %vm1632_vm13, %v3014_v31  ;;  %v7152_v40 = vadd.f32 %v6971_v49, %v3076_v30  ;;  %4615 = vpow2.f32 %v3853_v36  ;;  %v3326_v20 = vmul.f32 %v4600_v52, %v7069_v3  ;;  %v3550_v36 = vmax.f32 %v3549_v47, 0.0 }
 0x240   : > { %4617 = vrcp.f32 %v3235_v14  ;;  %v4602_v57 = vpop.eup %4601  ;;  %v3371_v34 = vsel %vm1632_vm13, %v3325_v43, 0.0  ;;  %v3523_v31 = vadd.f32 %v3522_v53, %v3505_v9 }
 0x241   : > { %v3854_v62 = vmul.f32 -1.442695, %v7152_v40  ;;  %4619 = vrcp.f32 %v3236_v4  ;;  %v3239_v25 = vadd.f32 1.0, %v4602_v57  ;;  %v3373_v0 = vsel %vm1632_vm13, %v3326_v20, 0.0 }
 0x242   : > { %v3077_v50 = vld [vmem:[#allocation3 + $0xf0] sm:$0xff]  ;;  %v3372_v45 = vadd.f32 %v3371_v34, %v3370_v54  ;;  %v3540_v1 = vadd.f32 %v3539_v19, %v3523_v31  ;;  %v3556_v28 = vmul.f32 %v3864_v15, %v3550_v36 }
 0x243   : > { %v7164_v16 = vadd.f32 %v6971_v49, %v3077_v50  ;;  %4621 = vpow2.f32 %v3854_v62 }
 0x244   : > { %v4604_v11 = vpop.eup %4603  ;;  %4623 = vrcp.f32 %v3237_v39  ;;  %v3374_v4 = vadd.f32 %v3373_v0, %v3372_v45 }
 0x245   : > { %v3855_v37 = vmul.f32 -1.442695, %v7164_v16  ;;  %v4606_v35 = vpop.eup %4605  ;;  %v3240_v10 = vadd.f32 1.0, %v4604_v11  ;;  %4625 = vrcp.f32 %v3238_v24 }
 0x246   : > { %v3078_v27 = vld [vmem:[#allocation3 + $0xf8] sm:$0xff]  ;;  %v4608_v32 = vpop.eup %4607  ;;  %v3327_v33 = vmul.f32 %v4606_v35, %v7076_v46 }
 0x247   : > { %v7173_v3 = vadd.f32 %v6971_v49, %v3078_v27  ;;  %4627 = vpow2.f32 %v3855_v37  ;;  %v3328_v49 = vmul.f32 %v4608_v32, %v7081_v61 }
 0x248   : > { %v4610_v38 = vpop.eup %4609  ;;  %4629 = vrcp.f32 %v3239_v25  ;;  %v3375_v56 = vsel %vm1632_vm13, %v3327_v33, 0.0 }
 0x249   : > { %v4612_v55 = vpop.eup %4611  ;;  %v3856_v44 = vmul.f32 -1.442695, %v7173_v3  ;;  %v3241_v59 = vadd.f32 1.0, %v4610_v38  ;;  %4631 = vrcp.f32 %v3240_v10  ;;  %v3377_v52 = vsel %vm1632_vm13, %v3328_v49, 0.0 }
 0x24a   : > { %v4614_v14 = vpop.eup %4613  ;;  %v3329_v46 = vmul.f32 %v4612_v55, %v7086_v58  ;;  %v3376_v29 = vadd.f32 %v3375_v56, %v3374_v4  ;;  %v3557_v58 = vadd.f32 %v3556_v28, %v3540_v1 }
 0x24b   : > { %4633 = vpow2.f32 %v3856_v44  ;;  %v3330_v61 = vmul.f32 %v4614_v14, %v7092_v26 }
 0x24c   : > { %v4616_v30 = vpop.eup %4615  ;;  %4635 = vrcp.f32 %v3241_v59  ;;  %v3379_v57 = vsel %vm1632_vm13, %v3329_v46, 0.0  ;;  %v3378_v21 = vadd.f32 %v3377_v52, %v3376_v29 }
 0x24d   : > { %v3242_v13 = vadd.f32 1.0, %v4616_v30  ;;  %v4618_v41 = vpop.eup %4617  ;;  %v3381_v43 = vsel %vm1632_vm13, %v3330_v61, 0.0 }
 0x24e   : > { %v4620_v5 = vpop.eup %4619  ;;  %v3331_v39 = vmul.f32 %v4618_v41, %v7099_v6  ;;  %v3380_v26 = vadd.f32 %v3379_v57, %v3378_v21  ;;  %v3865_v6 = vmul.f32 -1.442695, %v3557_v58 }
 0x24f   : > { %4637 = vrcp.f32 %v3242_v13  ;;  %v3332_v24 = vmul.f32 %v4620_v5, %v7103_v48 }
 0x250   : > { %v4622_v18 = vpop.eup %4621  ;;  %v3383_v20 = vsel %vm1632_vm13, %v3331_v39, 0.0  ;;  %v3382_v37 = vadd.f32 %v3381_v43, %v3380_v26  ;;  %v3579_v43 = vsub.s32 1, %v4876_v7  ;;  %v4686_v7 = vld [vmem:[%s4999_s15 + $0x18] sm:$0xff] }
 0x251   : > { %v3243_v62 = vadd.f32 1.0, %v4622_v18  ;;  %v4624_v12 = vpop.eup %4623  ;;  %v3385_v42 = vsel %vm1632_vm13, %v3332_v24, 0.0 }
 0x252   : > { %v4626_v50 = vpop.eup %4625  ;;  %v3333_v54 = vmul.f32 %v4624_v12, %v7109_v22  ;;  %v3384_v48 = vadd.f32 %v3383_v20, %v3382_v37  ;;  %v4684_v20 = vld [vmem:[%s4999_s15 + $0x8] sm:$0xff] }
 0x253   : > { %4639 = vrcp.f32 %v3243_v62  ;;  %v3334_v35 = vmul.f32 %v4626_v50, %v7116_v60 }
 0x254   : > { %v4628_v2 = vpop.eup %4627  ;;  %v3387_v32 = vsel %vm1632_vm13, %v3333_v54, 0.0  ;;  %v3386_v22 = vadd.f32 %v3385_v42, %v3384_v48 }
 0x255   : > { %v3244_v11 = vadd.f32 1.0, %v4628_v2  ;;  %v4630_v53 = vpop.eup %4629  ;;  %v3389_v47 = vsel %vm1632_vm13, %v3334_v35, 0.0  ;;  %v4687_v35 = vld [vmem:[%s4999_s15 + $0x20] sm:$0xff] }
 0x256   : > { %v4632_v25 = vpop.eup %4631  ;;  %v3335_v10 = vmul.f32 %v4630_v53, %v7124_v17  ;;  %v3388_v0 = vadd.f32 %v3387_v32, %v3386_v22  ;;  %v4690_v32 = vld [vmem:[%s4999_s15 + $0x38] sm:$0xff]  ;;  %v4691_v22 = vld [vmem:[%s4999_s15 + $0x40] sm:$0xff] }
 0x257   : > { %4641 = vrcp.f32 %v3244_v11  ;;  %v3336_v63 = vmul.f32 %v4632_v25, %v7131_v51  ;;  %v4683_v11 = vld [vmem:[%s4999_s15] sm:$0xff] }
 0x258   : > { %v4634_v9 = vpop.eup %4633  ;;  %4643 = vpow2.f32 %v3865_v6  ;;  %v3391_v45 = vsel %vm1632_vm13, %v3335_v10, 0.0  ;;  %v3390_v55 = vadd.f32 %v3389_v47, %v3388_v0  ;;  %v4685_v6 = vld [vmem:[%s4999_s15 + $0x10] sm:$0xff]  ;;  %v4692_v47 = vld [vmem:[%s4999_s15 + $0x48] sm:$0xff] }
 0x259   : > { %v3245_v27 = vadd.f32 1.0, %v4634_v9  ;;  %v4636_v34 = vpop.eup %4635  ;;  %v3393_v17 = vsel %vm1632_vm13, %v3336_v63, 0.0  ;;  %v4688_v9 = vld [vmem:[%s4999_s15 + $0x28] sm:$0xff]  ;;  %v4693_v0 = vld [vmem:[%s4999_s15 + $0x50] sm:$0xff] }
 0x25a   : > { %v3337_v60 = vmul.f32 %v4636_v34, %v7138_v8  ;;  %v3392_v59 = vadd.f32 %v3391_v45, %v3390_v55  ;;  %v4694_v45 = vld [vmem:[%s4999_s15 + $0x58] sm:$0xff] }
 0x25b   : > { %4645 = vrcp.f32 %v3245_v27  ;;  %v4689_v27 = vld [vmem:[%s4999_s15 + $0x30] sm:$0xff] }
 0x25c   : > { %v4638_v38 = vpop.eup %4637  ;;  %v3395_v31 = vsel %vm1632_vm13, %v3337_v60, 0.0  ;;  %v3394_v51 = vadd.f32 %v3393_v17, %v3392_v59 }
 0x25d   : > { %v3338_v33 = vmul.f32 %v4638_v38, %v7145_v23 }
 0x25e   : > { %v3396_v49 = vadd.f32 %v3395_v31, %v3394_v51  ;;  %v4698_v51 = vld [vmem:[%s4999_s15 + $0x78] sm:$0xff] }
 0x25f   : > { %v3397_v36 = vsel %vm1632_vm13, %v3338_v33, 0.0  ;;  %v4695_v33 = vld [vmem:[%s4999_s15 + $0x60] sm:$0xff] }
 0x260   : > { %v4640_v44 = vpop.eup %4639  ;;  %v3398_v30 = vadd.f32 %v3397_v36, %v3396_v49 }
 0x261   : > { %v3339_v19 = vmul.f32 %v4640_v44, %v7152_v40  ;;  %v4696_v44 = vld [vmem:[%s4999_s15 + $0x68] sm:$0xff] }
 0x263   : > { %v3399_v15 = vsel %vm1632_vm13, %v3339_v19, 0.0  ;;  %v4697_v19 = vld [vmem:[%s4999_s15 + $0x70] sm:$0xff] }
 0x264   : > { %v4642_v14 = vpop.eup %4641  ;;  %v3400_v46 = vadd.f32 %v3399_v15, %v3398_v30  ;;  %v4701_v30 = vld [vmem:[%s4999_s15 + $0x90] sm:$0xff] }
 0x265   : > { %v3340_v8 = vmul.f32 %v4642_v14, %v7164_v16  ;;  %v4644_v4 = vpop.eup %4643  ;;  %v4699_v14 = vld [vmem:[%s4999_s15 + $0x80] sm:$0xff] }
 0x266   : > { %v3561_v40 = vadd.f32 1.0, %v4644_v4 }
 0x267   : > { %v3401_v23 = vsel %vm1632_vm13, %v3340_v8, 0.0  ;;  %v4700_v8 = vld [vmem:[%s4999_s15 + $0x88] sm:$0xff] }
 0x268   : > { %v4646_v13 = vpop.eup %4645  ;;  %v3402_v41 = vadd.f32 %v3401_v23, %v3400_v46  ;;  %4647 = vrcp.f32 %v3561_v40  ;;  %v4702_v23 = vld [vmem:[%s4999_s15 + $0x98] sm:$0xff]  ;;  %v4703_v46 = vld [vmem:[%s4999_s15 + $0xa0] sm:$0xff]  ;;  %v4704_v40 = vld [vmem:[%s4999_s15 + $0xa8] sm:$0xff] }
 0x269   : > { %v3341_v56 = vmul.f32 %v4646_v13, %v7173_v3 }
 0x26b   : > { %v3403_v1 = vsel %vm1632_vm13, %v3341_v56, 0.0 }
 0x26c   : > { %v3404_v28 = vadd.f32 %v3403_v1, %v3402_v41  ;;  %v4705_v1 = vld [vmem:[%s4999_s15 + $0xb0] sm:$0xff] }
 0x26e   : > { %v3405_v5 = vrot.slane %v3404_v28, 4 }
 0x270   : > { %v3406_v61 = vadd.f32 %v3405_v5, %v3404_v28  ;;  %v4706_v5 = vld [vmem:[%s4999_s15 + $0xb8] sm:$0xff] }
 0x272   : > { %v3407_v52 = vrot.slane %v3406_v61, 2 }
 0x274   : > { %v3408_v16 = vadd.f32 %v3407_v52, %v3406_v61  ;;  %v4707_v52 = vld [vmem:[%s4999_s15 + $0xc0] sm:$0xff] }
 0x275   : > { %v4648_v39 = vpop.eup %4647 }
 0x276   : > { %v3409_v18 = vrot.slane %v3408_v16, 1 }
 0x278   : > { %v3410_v29 = vadd.f32 %v3409_v18, %v3408_v16  ;;  %v4708_v18 = vld [vmem:[%s4999_s15 + $0xc8] sm:$0xff] }
 0x27a   : > { %v3412_v62 = vmul.f32 0.00390625, %v3410_v29 }
 0x27c   : > { %v3564_v57 = vmul.f32 %v4648_v39, %v3412_v62  ;;  %v4709_v62 = vld [vmem:[%s4999_s15 + $0xd0] sm:$0xff] }
 0x27e   : > { %v3566_v12 = vrot.slane %v3564_v57, 7 }
 0x280   : > { %3567 = vrot.lane.b32.xlu1 %v3566_v12, %s4778_s13  ;;  %s7242_s13 = scalar_lea.vmem [#allocation4], %s3725_s26 }
 0x281   : > { %s3659_s6 = sshll.u32 %s7242_s13, 4  ;;  %s7307_s6 = int_to_ptr.vmem [resolvable:$true] %s3659_s6 }
 0x282   : > { %p4722_p0 = scmp.lt.s32.totalorder %s7307_s6, %s4720_s11 }
 0x2f2   : > { %v3568_v3 = vpop.permute.xlu1 %3567 }
 0x2f3   : > { %v3570_v58 = vsel %vm1632_vm13, %v3564_v57, %v3568_v3  ;;  %v4710_v57 = vld [vmem:[%s4999_s15 + $0xd8] sm:$0xff]  ;;  %v4711_v3 = vld [vmem:[%s4999_s15 + $0xe0] sm:$0xff] }
 0x2f4   : > { %v3866_v21 = vmul.f32 -1.442695, %v3570_v58 }
 0x2f6   : > { %4649 = vpow2.f32 %v3866_v21  ;;  %v4712_v21 = vld [vmem:[%s4999_s15 + $0xe8] sm:$0xff] }
 0x303   : > { %v4650_v50 = vpop.eup %4649 }
 0x304   : > { %v3574_v24 = vadd.f32 1.0, %v4650_v50 }
 0x306   : > { %4651 = vrcp.f32 %v3574_v24  ;;  %v4713_v24 = vld [vmem:[%s4999_s15 + $0xf0] sm:$0xff] }
 0x313   : > { %v4652_v2 = vpop.eup %4651 }
 0x314   : > { %v7216_v26 = vrot.slane %v4652_v2, %v3579_v43  ;;  %v4714_v2 = vld [vmem:[%s4999_s15 + $0xf8] sm:$0xff]  ;;  %s4715_s15 = scalar_lea.vmem %s7307_s6, 4096 }
 0x315   : > { %p4716_p11 = scmp.ne.s32.totalorder %s7307_s6, %s4715_s15  ;;  %p4723_p1 = scmp.lt.s32.totalorder %s4721_s12, %s4715_s15 }
 0x316   : > { %v3581_v54 = vmul.f32 %v4683_v11, %v7216_v26  ;;  %v3582_v53 = vmul.f32 %v4684_v20, %v7216_v26  ;;  %v3583_v37 = vmul.f32 %v4685_v6, %v7216_v26  ;;  %v3584_v25 = vmul.f32 %v4686_v7, %v7216_v26 }
 0x317   : > { %v3585_v42 = vmul.f32 %v4687_v35, %v7216_v26  ;;  %v3586_v48 = vmul.f32 %v4688_v9, %v7216_v26  ;;  %v3587_v10 = vmul.f32 %v4689_v27, %v7216_v26  ;;  %v3588_v34 = vmul.f32 %v4690_v32, %v7216_v26  ;;  %p4717_p12 = pnand %p4716_p11, %p4850_p5  ;;  %p4724_p2 = por %p4723_p1, %p4722_p0 }
 0x318   : > { %v3589_v63 = vmul.f32 %v4691_v22, %v7216_v26  ;;  %v3590_v38 = vmul.f32 %v4692_v47, %v7216_v26  ;;  %v3591_v60 = vmul.f32 %v4693_v0, %v7216_v26  ;;  %v3592_v55 = vmul.f32 %v4694_v45, %v7216_v26  ;;  %3613 = vst [vmem:[%s7242_s13] sm:$0xff] %v3581_v54 }
 0x319   : > { %3614 = vst [vmem:[%s7242_s13 + $0x8] sm:$0xff] %v3582_v53  ;;  %3615 = vst [vmem:[%s7242_s13 + $0x10] sm:$0xff] %v3583_v37  ;;  %v3593_v17 = vmul.f32 %v4695_v33, %v7216_v26  ;;  %v3594_v59 = vmul.f32 %v4696_v44, %v7216_v26  ;;  %v3595_v31 = vmul.f32 %v4697_v19, %v7216_v26  ;;  %p4718_p13 = pneg %p4717_p12 }
 0x31a   : > { %3616 = vst [vmem:[%s7242_s13 + $0x18] sm:$0xff] %v3584_v25  ;;  %v3596_v36 = vmul.f32 %v4698_v51, %v7216_v26  ;;  %3617 = vst [vmem:[%s7242_s13 + $0x20] sm:$0xff] %v3585_v42  ;;  %v3597_v49 = vmul.f32 %v4699_v14, %v7216_v26  ;;  %v3598_v15 = vmul.f32 %v4700_v8, %v7216_v26 }
 0x31b   : > { %3618 = vst [vmem:[%s7242_s13 + $0x28] sm:$0xff] %v3586_v48  ;;  %3619 = vst [vmem:[%s7242_s13 + $0x30] sm:$0xff] %v3587_v10  ;;  %v3599_v4 = vmul.f32 %v4701_v30, %v7216_v26  ;;  %v3600_v13 = vmul.f32 %v4702_v23, %v7216_v26  ;;  %v3601_v56 = vmul.f32 %v4703_v46, %v7216_v26  ;;  %p4725_p3 = pnand %p4724_p2, %p4718_p13 }
 0x31c   : > { %3620 = vst [vmem:[%s7242_s13 + $0x38] sm:$0xff] %v3588_v34  ;;  %3621 = vst [vmem:[%s7242_s13 + $0x40] sm:$0xff] %v3589_v63  ;;  %v3602_v41 = vmul.f32 %v4704_v40, %v7216_v26  ;;  %v3603_v28 = vmul.f32 %v4705_v1, %v7216_v26  ;;  %v3604_v61 = vmul.f32 %v4706_v5, %v7216_v26 }
 0x31d   : > { %3622 = vst [vmem:[%s7242_s13 + $0x48] sm:$0xff] %v3590_v38  ;;  %3623 = vst [vmem:[%s7242_s13 + $0x50] sm:$0xff] %v3591_v60  ;;  %v3605_v16 = vmul.f32 %v4707_v52, %v7216_v26  ;;  %v3606_v29 = vmul.f32 %v4708_v18, %v7216_v26  ;;  %v3607_v39 = vmul.f32 %v4709_v62, %v7216_v26 }
 0x31e   : > { %3624 = vst [vmem:[%s7242_s13 + $0x58] sm:$0xff] %v3592_v55  ;;  %3625 = vst [vmem:[%s7242_s13 + $0x60] sm:$0xff] %v3593_v17  ;;  %v3608_v12 = vmul.f32 %v4710_v57, %v7216_v26  ;;  %v3609_v58 = vmul.f32 %v4711_v3, %v7216_v26  ;;  %v3610_v50 = vmul.f32 %v4712_v21, %v7216_v26 }
 0x31f   : > { %3626 = vst [vmem:[%s7242_s13 + $0x68] sm:$0xff] %v3594_v59  ;;  %3627 = vst [vmem:[%s7242_s13 + $0x70] sm:$0xff] %v3595_v31  ;;  %v3611_v43 = vmul.f32 %v4713_v24, %v7216_v26  ;;  %v3612_v11 = vmul.f32 %v4714_v2, %v7216_v26 }
 0x320   : > { %3628 = vst [vmem:[%s7242_s13 + $0x78] sm:$0xff] %v3596_v36  ;;  %3629 = vst [vmem:[%s7242_s13 + $0x80] sm:$0xff] %v3597_v49 }
 0x321   : > { %3630 = vst [vmem:[%s7242_s13 + $0x88] sm:$0xff] %v3598_v15  ;;  %3631 = vst [vmem:[%s7242_s13 + $0x90] sm:$0xff] %v3599_v4 }
 0x322   : > { %3632 = vst [vmem:[%s7242_s13 + $0x98] sm:$0xff] %v3600_v13  ;;  %3633 = vst [vmem:[%s7242_s13 + $0xa0] sm:$0xff] %v3601_v56 }
 0x323   : > { %3634 = vst [vmem:[%s7242_s13 + $0xa8] sm:$0xff] %v3602_v41  ;;  %3635 = vst [vmem:[%s7242_s13 + $0xb0] sm:$0xff] %v3603_v28 }
 0x324   : > { %3636 = vst [vmem:[%s7242_s13 + $0xb8] sm:$0xff] %v3604_v61  ;;  %3637 = vst [vmem:[%s7242_s13 + $0xc0] sm:$0xff] %v3605_v16 }
 0x325   : > { %3638 = vst [vmem:[%s7242_s13 + $0xc8] sm:$0xff] %v3606_v29  ;;  %3639 = vst [vmem:[%s7242_s13 + $0xd0] sm:$0xff] %v3607_v39 }
 0x326   : > { %3640 = vst [vmem:[%s7242_s13 + $0xd8] sm:$0xff] %v3608_v12  ;;  %3641 = vst [vmem:[%s7242_s13 + $0xe0] sm:$0xff] %v3609_v58 }
 0x327   : > { %3642 = vst [vmem:[%s7242_s13 + $0xe8] sm:$0xff] %v3610_v50  ;;  %3643 = vst [vmem:[%s7242_s13 + $0xf0] sm:$0xff] %v3611_v43 }
 0x328   : > { %3644 = vst [vmem:[%s7242_s13 + $0xf8] sm:$0xff] %v3612_v11 }
 0x329   : > { %4728 = shalt.err (!%p4725_p3)
}
 0x32a   : > { %s4729_s14 = scalar_lea.hbm %s7303_s9, 4096  ;;  %s4733_s23 = scalar_lea.hbm %s7376_s5, 8192 }
 0x32b   : > { %p4730_p4 = scmp.ne.s32.totalorder %s7303_s9, %s4729_s14  ;;  %p4734_p9 = scmp.lt.s32.totalorder %s7303_s9, %s7376_s5 }
 0x32c   : > { %p4735_p10 = scmp.lt.s32.totalorder %s4733_s23, %s4729_s14 }
 0x32d   : > { %p4731_p7 = pnand %p4730_p4, %p4850_p5 }
 0x32e   : > { %p4736_p11 = por %p4735_p10, %p4734_p9 }
 0x32f   : > { %p4732_p8 = pneg %p4731_p7 }
 0x331   : > { %p4737_p12 = pnand %p4736_p11, %p4732_p8 }
 0x333   : > { %4740 = shalt.err (!%p4737_p12)
}
 0x334   : > { %s4780_s13 = smov 128   ;;  %s4781_s30 = smov 8  }
 0x335   : > { %4442 = dma.vmem_to_hbm [thread:$0]  (%p4850_p5), %s7307_s6, 4096, %s7303_s9, %s7331_s22, %s4780_s13, %s4780_s13, %s4781_s30  }
 0x336 PF: > { %p4480_p13 = scmp.ge.s32.totalorder %s4775_s21, 2  ;;  %s3674_s7 = sand.u32 1, %s4763_s18  }
 0x337   : > { %s3675_s8 = scalar_lea.sflag [#allocation5], %s3674_s7 }
 0x338   : > { %p4445_p0 = pnand %p4480_p13, %p4854_p6 }
 0x33a   : > { %p4446_p1 = pneg %p4445_p0 }
 0x33c   : > { %4758 = dma.done.wait (%p4446_p1), %s3675_s8, 4096  }
 0x33d   : > { %4760 = vsyncadd (%p4446_p1), %s3675_s8, 4294963200  ;;  %p15_p2 = scmp.ge.s32.totalorder %s4837_s24, 4   ;;  %s7810_s18 = smov %s4767_s19 }
 0x33e   : > { %s7811_s19 = smov %s4771_s20  ;;  %s7812_s20 = smov %s4848_s27 }
 0x33f   : > { %s7813_s21 = smov %s4837_s24  ;;  %17 = sbr.rel (!%p15_p2) target bundleno = 3 (0x3), region = 77 }
 0x344   :  { %3680 = vsyncpa [#allocation5], 1 }
 0x345   :  { %3682 = vsyncpa [#allocation5 + $0x1], 1 }

</bundles_post_ra>
